<compile_context>
chip_gen: v5e
topology: v5e:2x2
jax: 0.10.0
libtpu: 0.0.40
codegen_flags: <defaults>
</compile_context>

<pallas_src>
import functools

import numpy as np

import jax
import jax.numpy as jnp
from jax import lax
from jax.experimental import pallas as pl
from jax.experimental.pallas import tpu as pltpu


# ---------------------------------------------------------------------------
# Host-side helpers (static constants, built once per input shape)
# ---------------------------------------------------------------------------
def _round_up(x, m):
    return (x + m - 1) // m * m


def _reflect(i, n):
    if i < 0:
        return -i
    if i > n - 1:
        return 2 * (n - 1) - i
    return i


def _conv_taps(B, H, W, HO, WO, k=4, s=2, p=1):
    """Flat source indices (into a (B*H*W,)-flattened map, (b,h,w)-major) for
    every tap/output position of a kxk, stride-s, reflect-pad-p conv."""
    idx = np.zeros((k * k, B * HO * WO), np.int64)
    for kh in range(k):
        for kw in range(k):
            t = kh * k + kw
            m = 0
            for b in range(B):
                for ho in range(HO):
                    for wo in range(WO):
                        r = _reflect(s * ho + kh - p, H)
                        c = _reflect(s * wo + kw - p, W)
                        idx[t, m] = (b * H + r) * W + c
                        m += 1
    return idx


def _avgpool_matrix(B, H, W):
    """AvgPool2d(3, stride=2, padding=1, count_include_pad=False) as a
    (B*H*W, B*Ho*Wo) matrix acting on flattened (b,h,w)-major maps."""
    Ho = (H - 1) // 2 + 1
    Wo = (W - 1) // 2 + 1
    P = np.zeros((B * H * W, B * Ho * Wo), np.float64)
    for b in range(B):
        for ho in range(Ho):
            for wo in range(Wo):
                rows = [r for r in range(2 * ho - 1, 2 * ho + 2) if 0 <= r < H]
                cols = [c for c in range(2 * wo - 1, 2 * wo + 2) if 0 <= c < W]
                w = 1.0 / (len(rows) * len(cols))
                o = (b * Ho + ho) * Wo + wo
                for r in rows:
                    for c in cols:
                        P[(b * H + r) * W + c, o] = w
    return P, Ho, Wo


# ---------------------------------------------------------------------------
# Fused Pallas kernel: one grid step == one complete discriminator scale
# ---------------------------------------------------------------------------
def _disc_kernel(x_ref, g1_ref, g2_ref, w1_ref, b1_ref, w2_ref, b2_ref,
                 w3_ref, b3_ref, o_ref, *, m1p, m2p, slope):
    """conv4x4/s2 + lrelu -> conv4x4/s2 + lrelu -> conv1x1, all in VMEM/vregs.

    Layout is spatial-on-lanes ((C, M)).  Avg-pool / reflection pad / im2col
    are folded into the precomputed gather matrices g1 (f32, pool weights) and
    g2 (bf16, exact 0/1 one-hot).  Each conv is a single MXU contraction.
    """
    # ---- layer 1: (pool + pad + im2col) gather, then one K=16*Cin dot -------
    p1c = jnp.dot(x_ref[...], g1_ref[...],
                  preferred_element_type=jnp.float32)            # (Cin, 16*M1P)
    p1k = jnp.concatenate(
        [p1c[:, t * m1p:(t + 1) * m1p] for t in range(16)], axis=0)  # (16*Cin, M1P)
    a1 = jnp.dot(w1_ref[...], p1k, preferred_element_type=jnp.float32)
    a1 = a1 + b1_ref[...]
    a1 = jnp.where(a1 >= 0, a1, slope * a1)                       # (C1, M1P)

    # ---- layer 2: bf16 one-hot gather, then one K=16*C1 (=128) dot ----------
    p2c = jnp.dot(a1, g2_ref[...].astype(jnp.float32),
                  preferred_element_type=jnp.float32)            # (C1, 16*M2P)
    p2k = jnp.concatenate(
        [p2c[:, t * m2p:(t + 1) * m2p] for t in range(16)], axis=0)  # (16*C1, M2P)
    a2 = jnp.dot(w2_ref[...], p2k, preferred_element_type=jnp.float32)
    a2 = a2 + b2_ref[...]
    a2 = jnp.where(a2 >= 0, a2, slope * a2)                       # (C2, M2P)

    # ---- layer 3: 1x1 conv, lane-dense (1, M2P) store ------------------------
    o_ref[...] = (jnp.dot(w3_ref[...], a2, preferred_element_type=jnp.float32)
                  + b3_ref[...])


def _fused_forward(x0, g1, g2, w1, b1, w2, b2, w3, b3, *, m1p, m2p, slope):
    S = g1.shape[0]
    cinp, M0 = x0.shape
    c1p = w1.shape[1]
    c2p = w2.shape[1]
    kernel = functools.partial(_disc_kernel, m1p=m1p, m2p=m2p, slope=slope)
    return pl.pallas_call(
        kernel,
        out_shape=jax.ShapeDtypeStruct((S, 1, m2p), jnp.float32),
        grid=(S,),
        in_specs=[
            pl.BlockSpec((cinp, M0), lambda s: (0, 0)),               # x0 (shared)
            pl.BlockSpec((None, M0, 16 * m1p), lambda s: (s, 0, 0)),  # g1
            pl.BlockSpec((None, m1p, 16 * m2p), lambda s: (s, 0, 0)), # g2
            pl.BlockSpec((None, c1p, 16 * cinp), lambda s: (s, 0, 0)),
            pl.BlockSpec((None, c1p, 1), lambda s: (s, 0, 0)),
            pl.BlockSpec((None, c2p, 16 * c1p), lambda s: (s, 0, 0)),
            pl.BlockSpec((None, c2p, 1), lambda s: (s, 0, 0)),
            pl.BlockSpec((None, 1, c2p), lambda s: (s, 0, 0)),
            pl.BlockSpec((None, 1, 1), lambda s: (s, 0, 0)),
        ],
        out_specs=pl.BlockSpec((None, 1, m2p), lambda s: (s, 0, 0)),
        compiler_params=pltpu.CompilerParams(
            dimension_semantics=("parallel",),
            vmem_limit_bytes=32 * 1024 * 1024),
    )(x0, g1, g2, w1, b1, w2, b2, w3, b3)


# ---------------------------------------------------------------------------
# Discriminator (forward pass only, norm='none')
# ---------------------------------------------------------------------------
class PallasDiscriminator:
    """Forward pass of the multi-scale patch-GAN discriminator; the whole
    forward (both scales, pools, pads, convs) is a single fused Pallas call."""

    def __init__(self, input_dim, params, key):
        self.n_layer = params["N_LAYER"]
        self.dim = params["FIRST_DIM"]
        self.num_scales = params["NUM_SCALES"]
        self.activ = params["ACTIVATION"]
        self.norm = params["NORM"]
        self.pad_type = params["PAD_TYPE"]
        self.input_dim = input_dim
        self.slope = 0.01  # nn.LeakyReLU(0.01) in the reference ConvBlock
        assert self.norm == "none" and self.activ == "lrelu" and self.pad_type == "mirror"
        # TODO(synk): generalize beyond N_LAYER=2 (add one gather + contraction
        # stage per extra ConvBlock).
        assert self.n_layer == 2

        c1, c2 = self.dim, self.dim * 2
        self.c1, self.c2 = c1, c2
        self.cinp = _round_up(input_dim, 8)
        self.c1p = _round_up(c1, 8)
        self.c2p = _round_up(c2, 8)

        self.torch_weights = []   # PyTorch-layout weights (used by the reference)
        w1s, b1s, w2s, b2s, w3s, b3s = [], [], [], [], [], []
        for _ in range(self.num_scales):
            key, *ks = jax.random.split(key, 7)
            w1 = jax.random.normal(ks[0], (c1, input_dim, 4, 4), jnp.float32) / float(np.sqrt(input_dim * 16))
            b1 = jax.random.normal(ks[1], (c1,), jnp.float32) * 0.01
            w2 = jax.random.normal(ks[2], (c2, c1, 4, 4), jnp.float32) / float(np.sqrt(c1 * 16))
            b2 = jax.random.normal(ks[3], (c2,), jnp.float32) * 0.01
            w3 = jax.random.normal(ks[4], (1, c2, 1, 1), jnp.float32) / float(np.sqrt(c2))
            b3 = jax.random.normal(ks[5], (1,), jnp.float32) * 0.01
            self.torch_weights.append((w1, b1, w2, b2, w3, b3))
            # kernel layout: (C_out, 16*C_in), K ordered tap-major / cin-minor
            w1k = jnp.pad(jnp.transpose(w1, (0, 2, 3, 1)),
                          ((0, self.c1p - c1), (0, 0), (0, 0), (0, self.cinp - input_dim)))
            w2k = jnp.pad(jnp.transpose(w2, (0, 2, 3, 1)),
                          ((0, self.c2p - c2), (0, 0), (0, 0), (0, self.c1p - c1)))
            w1s.append(w1k.reshape(self.c1p, 16 * self.cinp))
            w2s.append(w2k.reshape(self.c2p, 16 * self.c1p))
            b1s.append(jnp.pad(b1, (0, self.c1p - c1)).reshape(self.c1p, 1))
            b2s.append(jnp.pad(b2, (0, self.c2p - c2)).reshape(self.c2p, 1))
            w3s.append(jnp.pad(w3.reshape(1, c2), ((0, 0), (0, self.c2p - c2))))
            b3s.append(b3.reshape(1, 1))
        self.kernel_weights = tuple(jnp.stack(a) for a in (w1s, b1s, w2s, b2s, w3s, b3s))
        self._gather_cache = {}
        self._jit_forward = jax.jit(self._forward)

    # -- static shape bookkeeping per (B, H, W) -------------------------------
    def _shape_plan(self, B, H, W):
        scales = []
        Hs, Ws = H, W
        for _ in range(self.num_scales):
            H1 = (Hs - 2) // 2 + 1
            W1 = (Ws - 2) // 2 + 1
            H2 = (H1 - 2) // 2 + 1
            W2 = (W1 - 2) // 2 + 1
            scales.append((Hs, Ws, H1, W1, H2, W2))
            Hs = (Hs - 1) // 2 + 1
            Ws = (Ws - 1) // 2 + 1
        m1p = _round_up(max(B * s[2] * s[3] for s in scales), 128)
        m2p = _round_up(max(B * s[4] * s[5] for s in scales), 128)
        return scales, m1p, m2p

    # -- precomputed gather constants (pool + reflect-pad + im2col folded) ----
    def _build_gathers(self, B, H, W):
        scales, m1p, m2p = self._shape_plan(B, H, W)
        M0 = B * H * W
        g1s, g2s = [], []
        pool_t = np.eye(M0, dtype=np.float64)  # composed pool: original -> scale input
        for s, (Hs, Ws, H1, W1, H2, W2) in enumerate(scales):
            M1, M2 = B * H1 * W1, B * H2 * W2
            idx1 = _conv_taps(B, Hs, Ws, H1, W1)
            g1 = np.zeros((M0, 16 * m1p), np.float64)
            for t in range(16):
                g1[:, t * m1p: t * m1p + M1] = pool_t[:, idx1[t]]
            g1s.append(g1)
            idx2 = _conv_taps(B, H1, W1, H2, W2)
            g2 = np.zeros((m1p, 16 * m2p), np.float32)
            for t in range(16):
                g2[idx2[t], t * m2p + np.arange(M2)] = 1.0
            g2s.append(g2)
            if s + 1 < self.num_scales:
                P, _, _ = _avgpool_matrix(B, Hs, Ws)
                pool_t = pool_t @ P
        g1 = jnp.asarray(np.stack(g1s).astype(np.float32))
        g2 = jnp.asarray(np.stack(g2s)).astype(jnp.bfloat16)  # exact 0/1 one-hot
        return g1, g2

    # -- jitted forward --------------------------------------------------------
    def _forward(self, kernel_weights, g1, g2, x):
        B, Cin, H, W = x.shape
        scales, m1p, m2p = self._shape_plan(B, H, W)
        x0 = jnp.transpose(x, (1, 0, 2, 3)).reshape(Cin, B * H * W)
        x0 = jnp.pad(x0, ((0, self.cinp - Cin), (0, 0)))
        w1, b1, w2, b2, w3, b3 = kernel_weights
        out = _fused_forward(x0, g1, g2, w1, b1, w2, b2, w3, b3,
                             m1p=m1p, m2p=m2p, slope=self.slope)
        results = []
        for s, (_, _, _, _, H2, W2) in enumerate(scales):
            m2 = B * H2 * W2
            results.append(out[s, 0, :m2].reshape(B, 1, H2, W2))
        return results

    def __call__(self, x):
        # x: (B, input_dim, H, W) NCHW, like PyTorch
        B, _, H, W = x.shape
        ck = (B, H, W)
        if ck not in self._gather_cache:
            self._gather_cache[ck] = self._build_gathers(B, H, W)
        g1, g2 = self._gather_cache[ck]
        return self._jit_forward(self.kernel_weights, g1, g2, x)

    # TODO(synk): calc_dis_loss / calc_gen_loss (training losses) are not
    # implemented; only the forward pass is translated.


# ---------------------------------------------------------------------------
# Pure-JAX reference (lax.conv) of the same module, for the numerical check
# ---------------------------------------------------------------------------
def avg_pool_3x3_s2_nchw(x):
    window = (1, 1, 3, 3)
    strides = (1, 1, 2, 2)
    pad = ((0, 0), (0, 0), (1, 1), (1, 1))
    ssum = lax.reduce_window(x, 0.0, lax.add, window, strides, pad)
    cnt = lax.reduce_window(jnp.ones_like(x), 0.0, lax.add, window, strides, pad)
    return ssum / cnt


def _ref_conv_block(x, w, b, stride, pad, slope):
    if pad:
        x = jnp.pad(x, ((0, 0), (0, 0), (pad, pad), (pad, pad)), mode="reflect")
    y = lax.conv_general_dilated(
        x, w, (stride, stride), "VALID",
        dimension_numbers=("NCHW", "OIHW", "NCHW"),
        precision=lax.Precision.HIGHEST)
    y = y + b.reshape(1, -1, 1, 1)
    if slope is not None:
        y = jnp.where(y >= 0, y, slope * y)
    return y


def reference_forward(torch_weights, x, num_scales, slope):
    outs = []
    for s in range(num_scales):
        w1, b1, w2, b2, w3, b3 = torch_weights[s]
        y = _ref_conv_block(x, w1, b1, 2, 1, slope)
        y = _ref_conv_block(y, w2, b2, 2, 1, slope)
        y = _ref_conv_block(y, w3, b3, 1, 0, None)
        outs.append(y)
        if s + 1 < num_scales:
            x = avg_pool_3x3_s2_nchw(x)
    return outs


# ---------------------------------------------------------------------------
if __name__ == "__main__":
    params = {
        "N_LAYER": 2,
        "GAN_TYPE": "lsgan",
        "FIRST_DIM": 8,
        "NORM": "none",
        "ACTIVATION": "lrelu",
        "NUM_SCALES": 2,
        "PAD_TYPE": "mirror",
    }
    key = jax.random.PRNGKey(0)
    key, kx = jax.random.split(key)
    x = jax.random.normal(kx, (2, 3, 16, 16), jnp.float32)  # NCHW

    disc = PallasDiscriminator(input_dim=3, params=params, key=key)
    outs = disc(x)
    outs = [jax.block_until_ready(o) for o in outs]

    # scale 0: (2,1,4,4), scale 1: (2,1,2,2)
    assert outs[0].shape == (2, 1, 4, 4), outs[0].shape
    assert outs[1].shape == (2, 1, 2, 2), outs[1].shape

    # numerical check against a pure-JAX (lax.conv) reference of the module
    refs = reference_forward(disc.torch_weights, x, disc.num_scales, disc.slope)
    for o, r in zip(outs, refs):
        err = float(jnp.max(jnp.abs(o - r)))
        assert jnp.allclose(o, r, rtol=1e-3, atol=1e-3), err

    print("KERNEL_OK")
</pallas_src>

<mosaic_0001>
module attributes {stable_mosaic.version = 11 : i64} {
  func.func @_disc_kernel(%arg0: i32, %arg1: memref<8x512xf32, #tpu.memory_space<vmem>>, %arg2: memref<1x512x2048xf32, #tpu.memory_space<vmem>>, %arg3: memref<1x128x2048xbf16, #tpu.memory_space<vmem>>, %arg4: memref<1x8x128xf32, #tpu.memory_space<vmem>>, %arg5: memref<1x8x1xf32, #tpu.memory_space<vmem>>, %arg6: memref<1x16x128xf32, #tpu.memory_space<vmem>>, %arg7: memref<1x16x1xf32, #tpu.memory_space<vmem>>, %arg8: memref<1x1x16xf32, #tpu.memory_space<vmem>>, %arg9: memref<1x1x1xf32, #tpu.memory_space<vmem>>, %arg10: memref<1x1x128xf32, #tpu.memory_space<vmem>>) attributes {dimension_semantics = [#tpu.dimension_semantics<parallel>], iteration_bounds = array<i64: 2>, scalar_prefetch = 0 : i64, scratch_operands = 0 : i64, tpu.core_type = #tpu.core_type<tc>, window_params = [{pipeline_mode = #tpu.pipeline_mode<synchronous>, transform_indices = @transform_0, window_bounds = array<i64: 8, 512>}, {transform_indices = @transform_1, window_bounds = array<i64: 1, 512, 2048>}, {transform_indices = @transform_2, window_bounds = array<i64: 1, 128, 2048>}, {transform_indices = @transform_3, window_bounds = array<i64: 1, 8, 128>}, {transform_indices = @transform_4, window_bounds = array<i64: 1, 8, 1>}, {transform_indices = @transform_5, window_bounds = array<i64: 1, 16, 128>}, {transform_indices = @transform_6, window_bounds = array<i64: 1, 16, 1>}, {transform_indices = @transform_7, window_bounds = array<i64: 1, 1, 16>}, {transform_indices = @transform_8, window_bounds = array<i64: 1, 1, 1>}, {transform_indices = @transform_9, window_bounds = array<i64: 1, 1, 128>}]} {
    %c0 = arith.constant 0 : index
    %c0_0 = arith.constant 0 : index
    %0 = vector.load %arg1[%c0, %c0_0] : memref<8x512xf32, #tpu.memory_space<vmem>>, vector<8x512xf32>
    %c0_1 = arith.constant 0 : index
    %c0_2 = arith.constant 0 : index
    %c0_3 = arith.constant 0 : index
    %1 = vector.load %arg2[%c0_1, %c0_2, %c0_3] : memref<1x512x2048xf32, #tpu.memory_space<vmem>>, vector<1x512x2048xf32>
    %2 = vector.shape_cast %1 : vector<1x512x2048xf32> to vector<512x2048xf32>
    %cst = arith.constant dense<0.000000e+00> : vector<8x2048xf32>
    %3 = tpu.matmul %0, %2, %cst {dimension_numbers = #tpu.dot_dimension_numbers<[1], [0], [0], [1], [0, 0, 1, 1], [], []>} : vector<8x512xf32>, vector<512x2048xf32>, vector<8x2048xf32> -> vector<8x2048xf32>
    %4 = vector.extract_strided_slice %3 {offsets = [0, 0], sizes = [8, 128], strides = [1, 1]} : vector<8x2048xf32> to vector<8x128xf32>
    %5 = vector.extract_strided_slice %3 {offsets = [0, 128], sizes = [8, 128], strides = [1, 1]} : vector<8x2048xf32> to vector<8x128xf32>
    %6 = vector.extract_strided_slice %3 {offsets = [0, 256], sizes = [8, 128], strides = [1, 1]} : vector<8x2048xf32> to vector<8x128xf32>
    %7 = vector.extract_strided_slice %3 {offsets = [0, 384], sizes = [8, 128], strides = [1, 1]} : vector<8x2048xf32> to vector<8x128xf32>
    %8 = vector.extract_strided_slice %3 {offsets = [0, 512], sizes = [8, 128], strides = [1, 1]} : vector<8x2048xf32> to vector<8x128xf32>
    %9 = vector.extract_strided_slice %3 {offsets = [0, 640], sizes = [8, 128], strides = [1, 1]} : vector<8x2048xf32> to vector<8x128xf32>
    %10 = vector.extract_strided_slice %3 {offsets = [0, 768], sizes = [8, 128], strides = [1, 1]} : vector<8x2048xf32> to vector<8x128xf32>
    %11 = vector.extract_strided_slice %3 {offsets = [0, 896], sizes = [8, 128], strides = [1, 1]} : vector<8x2048xf32> to vector<8x128xf32>
    %12 = vector.extract_strided_slice %3 {offsets = [0, 1024], sizes = [8, 128], strides = [1, 1]} : vector<8x2048xf32> to vector<8x128xf32>
    %13 = vector.extract_strided_slice %3 {offsets = [0, 1152], sizes = [8, 128], strides = [1, 1]} : vector<8x2048xf32> to vector<8x128xf32>
    %14 = vector.extract_strided_slice %3 {offsets = [0, 1280], sizes = [8, 128], strides = [1, 1]} : vector<8x2048xf32> to vector<8x128xf32>
    %15 = vector.extract_strided_slice %3 {offsets = [0, 1408], sizes = [8, 128], strides = [1, 1]} : vector<8x2048xf32> to vector<8x128xf32>
    %16 = vector.extract_strided_slice %3 {offsets = [0, 1536], sizes = [8, 128], strides = [1, 1]} : vector<8x2048xf32> to vector<8x128xf32>
    %17 = vector.extract_strided_slice %3 {offsets = [0, 1664], sizes = [8, 128], strides = [1, 1]} : vector<8x2048xf32> to vector<8x128xf32>
    %18 = vector.extract_strided_slice %3 {offsets = [0, 1792], sizes = [8, 128], strides = [1, 1]} : vector<8x2048xf32> to vector<8x128xf32>
    %19 = vector.extract_strided_slice %3 {offsets = [0, 1920], sizes = [8, 128], strides = [1, 1]} : vector<8x2048xf32> to vector<8x128xf32>
    %20 = tpu.concatenate %4, %5, %6, %7, %8, %9, %10, %11, %12, %13, %14, %15, %16, %17, %18, %19 in 0 : vector<8x128xf32>, vector<8x128xf32>, vector<8x128xf32>, vector<8x128xf32>, vector<8x128xf32>, vector<8x128xf32>, vector<8x128xf32>, vector<8x128xf32>, vector<8x128xf32>, vector<8x128xf32>, vector<8x128xf32>, vector<8x128xf32>, vector<8x128xf32>, vector<8x128xf32>, vector<8x128xf32>, vector<8x128xf32> -> vector<128x128xf32>
    %c0_4 = arith.constant 0 : index
    %c0_5 = arith.constant 0 : index
    %c0_6 = arith.constant 0 : index
    %21 = vector.load %arg4[%c0_4, %c0_5, %c0_6] : memref<1x8x128xf32, #tpu.memory_space<vmem>>, vector<1x8x128xf32>
    %22 = vector.shape_cast %21 : vector<1x8x128xf32> to vector<8x128xf32>
    %cst_7 = arith.constant dense<0.000000e+00> : vector<8x128xf32>
    %23 = tpu.matmul %22, %20, %cst_7 {dimension_numbers = #tpu.dot_dimension_numbers<[1], [0], [0], [1], [0, 0, 1, 1], [], []>} : vector<8x128xf32>, vector<128x128xf32>, vector<8x128xf32> -> vector<8x128xf32>
    %c0_8 = arith.constant 0 : index
    %c0_9 = arith.constant 0 : index
    %c0_10 = arith.constant 0 : index
    %24 = vector.load %arg5[%c0_8, %c0_9, %c0_10] : memref<1x8x1xf32, #tpu.memory_space<vmem>>, vector<1x8x1xf32>
    %25 = vector.shape_cast %24 : vector<1x8x1xf32> to vector<8x1xf32>
    %26 = vector.broadcast %25 : vector<8x1xf32> to vector<8x128xf32>
    %27 = arith.addf %23, %26 : vector<8x128xf32>
    %cst_11 = arith.constant 0.000000e+00 : f32
    %28 = vector.broadcast %cst_11 : f32 to vector<8x128xf32>
    %29 = arith.cmpf oge, %27, %28 : vector<8x128xf32>
    %cst_12 = arith.constant 0.00999999977 : f32
    %30 = vector.broadcast %cst_12 : f32 to vector<8x128xf32>
    %31 = arith.mulf %30, %27 : vector<8x128xf32>
    %32 = arith.select %29, %27, %31 : vector<8x128xi1>, vector<8x128xf32>
    %c0_13 = arith.constant 0 : index
    %c0_14 = arith.constant 0 : index
    %c0_15 = arith.constant 0 : index
    %33 = vector.load %arg3[%c0_13, %c0_14, %c0_15] : memref<1x128x2048xbf16, #tpu.memory_space<vmem>>, vector<1x128x2048xbf16>
    %34 = vector.shape_cast %33 : vector<1x128x2048xbf16> to vector<128x2048xbf16>
    %35 = arith.extf %34 : vector<128x2048xbf16> to vector<128x2048xf32>
    %cst_16 = arith.constant dense<0.000000e+00> : vector<8x2048xf32>
    %36 = tpu.matmul %32, %35, %cst_16 {dimension_numbers = #tpu.dot_dimension_numbers<[1], [0], [0], [1], [0, 0, 1, 1], [], []>} : vector<8x128xf32>, vector<128x2048xf32>, vector<8x2048xf32> -> vector<8x2048xf32>
    %37 = vector.extract_strided_slice %36 {offsets = [0, 0], sizes = [8, 128], strides = [1, 1]} : vector<8x2048xf32> to vector<8x128xf32>
    %38 = vector.extract_strided_slice %36 {offsets = [0, 128], sizes = [8, 128], strides = [1, 1]} : vector<8x2048xf32> to vector<8x128xf32>
    %39 = vector.extract_strided_slice %36 {offsets = [0, 256], sizes = [8, 128], strides = [1, 1]} : vector<8x2048xf32> to vector<8x128xf32>
    %40 = vector.extract_strided_slice %36 {offsets = [0, 384], sizes = [8, 128], strides = [1, 1]} : vector<8x2048xf32> to vector<8x128xf32>
    %41 = vector.extract_strided_slice %36 {offsets = [0, 512], sizes = [8, 128], strides = [1, 1]} : vector<8x2048xf32> to vector<8x128xf32>
    %42 = vector.extract_strided_slice %36 {offsets = [0, 640], sizes = [8, 128], strides = [1, 1]} : vector<8x2048xf32> to vector<8x128xf32>
    %43 = vector.extract_strided_slice %36 {offsets = [0, 768], sizes = [8, 128], strides = [1, 1]} : vector<8x2048xf32> to vector<8x128xf32>
    %44 = vector.extract_strided_slice %36 {offsets = [0, 896], sizes = [8, 128], strides = [1, 1]} : vector<8x2048xf32> to vector<8x128xf32>
    %45 = vector.extract_strided_slice %36 {offsets = [0, 1024], sizes = [8, 128], strides = [1, 1]} : vector<8x2048xf32> to vector<8x128xf32>
    %46 = vector.extract_strided_slice %36 {offsets = [0, 1152], sizes = [8, 128], strides = [1, 1]} : vector<8x2048xf32> to vector<8x128xf32>
    %47 = vector.extract_strided_slice %36 {offsets = [0, 1280], sizes = [8, 128], strides = [1, 1]} : vector<8x2048xf32> to vector<8x128xf32>
    %48 = vector.extract_strided_slice %36 {offsets = [0, 1408], sizes = [8, 128], strides = [1, 1]} : vector<8x2048xf32> to vector<8x128xf32>
    %49 = vector.extract_strided_slice %36 {offsets = [0, 1536], sizes = [8, 128], strides = [1, 1]} : vector<8x2048xf32> to vector<8x128xf32>
    %50 = vector.extract_strided_slice %36 {offsets = [0, 1664], sizes = [8, 128], strides = [1, 1]} : vector<8x2048xf32> to vector<8x128xf32>
    %51 = vector.extract_strided_slice %36 {offsets = [0, 1792], sizes = [8, 128], strides = [1, 1]} : vector<8x2048xf32> to vector<8x128xf32>
    %52 = vector.extract_strided_slice %36 {offsets = [0, 1920], sizes = [8, 128], strides = [1, 1]} : vector<8x2048xf32> to vector<8x128xf32>
    %53 = tpu.concatenate %37, %38, %39, %40, %41, %42, %43, %44, %45, %46, %47, %48, %49, %50, %51, %52 in 0 : vector<8x128xf32>, vector<8x128xf32>, vector<8x128xf32>, vector<8x128xf32>, vector<8x128xf32>, vector<8x128xf32>, vector<8x128xf32>, vector<8x128xf32>, vector<8x128xf32>, vector<8x128xf32>, vector<8x128xf32>, vector<8x128xf32>, vector<8x128xf32>, vector<8x128xf32>, vector<8x128xf32>, vector<8x128xf32> -> vector<128x128xf32>
    %c0_17 = arith.constant 0 : index
    %c0_18 = arith.constant 0 : index
    %c0_19 = arith.constant 0 : index
    %54 = vector.load %arg6[%c0_17, %c0_18, %c0_19] : memref<1x16x128xf32, #tpu.memory_space<vmem>>, vector<1x16x128xf32>
    %55 = vector.shape_cast %54 : vector<1x16x128xf32> to vector<16x128xf32>
    %cst_20 = arith.constant dense<0.000000e+00> : vector<16x128xf32>
    %56 = tpu.matmul %55, %53, %cst_20 {dimension_numbers = #tpu.dot_dimension_numbers<[1], [0], [0], [1], [0, 0, 1, 1], [], []>} : vector<16x128xf32>, vector<128x128xf32>, vector<16x128xf32> -> vector<16x128xf32>
    %c0_21 = arith.constant 0 : index
    %c0_22 = arith.constant 0 : index
    %c0_23 = arith.constant 0 : index
    %57 = vector.load %arg7[%c0_21, %c0_22, %c0_23] : memref<1x16x1xf32, #tpu.memory_space<vmem>>, vector<1x16x1xf32>
    %58 = vector.shape_cast %57 : vector<1x16x1xf32> to vector<16x1xf32>
    %59 = vector.broadcast %58 : vector<16x1xf32> to vector<16x128xf32>
    %60 = arith.addf %56, %59 : vector<16x128xf32>
    %cst_24 = arith.constant 0.000000e+00 : f32
    %61 = vector.broadcast %cst_24 : f32 to vector<16x128xf32>
    %62 = arith.cmpf oge, %60, %61 : vector<16x128xf32>
    %cst_25 = arith.constant 0.00999999977 : f32
    %63 = vector.broadcast %cst_25 : f32 to vector<16x128xf32>
    %64 = arith.mulf %63, %60 : vector<16x128xf32>
    %65 = arith.select %62, %60, %64 : vector<16x128xi1>, vector<16x128xf32>
    %c0_26 = arith.constant 0 : index
    %c0_27 = arith.constant 0 : index
    %c0_28 = arith.constant 0 : index
    %66 = vector.load %arg8[%c0_26, %c0_27, %c0_28] : memref<1x1x16xf32, #tpu.memory_space<vmem>>, vector<1x1x16xf32>
    %67 = vector.shape_cast %66 : vector<1x1x16xf32> to vector<1x16xf32>
    %cst_29 = arith.constant dense<0.000000e+00> : vector<1x128xf32>
    %68 = tpu.matmul %67, %65, %cst_29 {dimension_numbers = #tpu.dot_dimension_numbers<[1], [0], [0], [1], [0, 0, 1, 1], [], []>} : vector<1x16xf32>, vector<16x128xf32>, vector<1x128xf32> -> vector<1x128xf32>
    %c0_30 = arith.constant 0 : index
    %c0_31 = arith.constant 0 : index
    %c0_32 = arith.constant 0 : index
    %69 = vector.load %arg9[%c0_30, %c0_31, %c0_32] : memref<1x1x1xf32, #tpu.memory_space<vmem>>, vector<1x1x1xf32>
    %70 = vector.shape_cast %69 : vector<1x1x1xf32> to vector<1x1xf32>
    %71 = vector.broadcast %70 : vector<1x1xf32> to vector<1x128xf32>
    %72 = arith.addf %68, %71 : vector<1x128xf32>
    %c0_33 = arith.constant 0 : index
    %c0_34 = arith.constant 0 : index
    %c0_35 = arith.constant 0 : index
    %73 = vector.load %arg10[%c0_33, %c0_34, %c0_35] : memref<1x1x128xf32, #tpu.memory_space<vmem>>, vector<1x1x128xf32>
    %74 = vector.shape_cast %73 : vector<1x1x128xf32> to vector<1x128xf32>
    %75 = vector.shape_cast %72 : vector<1x128xf32> to vector<1x1x128xf32>
    tpu.vector_store %arg10[%c0_33, %c0_34, %c0_35], %75 {strides = array<i32>} : memref<1x1x128xf32, #tpu.memory_space<vmem>>, vector<1x1x128xf32>,
    return
  }
  func.func @transform_0(%arg0: i32) -> (i32, i32) {
    %c0_i32 = arith.constant 0 : i32
    %c0_i32_0 = arith.constant 0 : i32
    %c0_i32_1 = arith.constant 0 : i32
    return %c0_i32, %c0_i32_0 : i32, i32
  }
  func.func @transform_1(%arg0: i32) -> (i32, i32, i32) {
    %c0_i32 = arith.constant 0 : i32
    %c0_i32_0 = arith.constant 0 : i32
    %c0_i32_1 = arith.constant 0 : i32
    return %arg0, %c0_i32, %c0_i32_0 : i32, i32, i32
  }
  func.func @transform_2(%arg0: i32) -> (i32, i32, i32) {
    %c0_i32 = arith.constant 0 : i32
    %c0_i32_0 = arith.constant 0 : i32
    %c0_i32_1 = arith.constant 0 : i32
    return %arg0, %c0_i32, %c0_i32_0 : i32, i32, i32
  }
  func.func @transform_3(%arg0: i32) -> (i32, i32, i32) {
    %c0_i32 = arith.constant 0 : i32
    %c0_i32_0 = arith.constant 0 : i32
    %c0_i32_1 = arith.constant 0 : i32
    return %arg0, %c0_i32, %c0_i32_0 : i32, i32, i32
  }
  func.func @transform_4(%arg0: i32) -> (i32, i32, i32) {
    %c0_i32 = arith.constant 0 : i32
    %c0_i32_0 = arith.constant 0 : i32
    %c0_i32_1 = arith.constant 0 : i32
    return %arg0, %c0_i32, %c0_i32_0 : i32, i32, i32
  }
  func.func @transform_5(%arg0: i32) -> (i32, i32, i32) {
    %c0_i32 = arith.constant 0 : i32
    %c0_i32_0 = arith.constant 0 : i32
    %c0_i32_1 = arith.constant 0 : i32
    return %arg0, %c0_i32, %c0_i32_0 : i32, i32, i32
  }
  func.func @transform_6(%arg0: i32) -> (i32, i32, i32) {
    %c0_i32 = arith.constant 0 : i32
    %c0_i32_0 = arith.constant 0 : i32
    %c0_i32_1 = arith.constant 0 : i32
    return %arg0, %c0_i32, %c0_i32_0 : i32, i32, i32
  }
  func.func @transform_7(%arg0: i32) -> (i32, i32, i32) {
    %c0_i32 = arith.constant 0 : i32
    %c0_i32_0 = arith.constant 0 : i32
    %c0_i32_1 = arith.constant 0 : i32
    return %arg0, %c0_i32, %c0_i32_0 : i32, i32, i32
  }
  func.func @transform_8(%arg0: i32) -> (i32, i32, i32) {
    %c0_i32 = arith.constant 0 : i32
    %c0_i32_0 = arith.constant 0 : i32
    %c0_i32_1 = arith.constant 0 : i32
    return %arg0, %c0_i32, %c0_i32_0 : i32, i32, i32
  }
  func.func @transform_9(%arg0: i32) -> (i32, i32, i32) {
    %c0_i32 = arith.constant 0 : i32
    %c0_i32_0 = arith.constant 0 : i32
    %c0_i32_1 = arith.constant 0 : i32
    return %arg0, %c0_i32, %c0_i32_0 : i32, i32, i32
  }
}

</mosaic_0001>

<bundles_post_ra>
// kernel: squeeze.2
= control target key start
LH: loop header
LB: loop body
LE: loop exit
PB: predicated region body
PF: predicated region fallthrough
CT: control target
= control target key end

     0   :  { %s142_s0 = inlined_call_operand.vmem [shape: f32[32], index: 0, kind: input, shape index: {}]   ;;  %s143_s1 = inlined_call_operand.hbm [shape: f32[2,1,4,4], index: 1, kind: output, shape index: {}]  }
   0x1   :  { %v5_v0 = vld [vmem:[%s142_s0] sm:$0x1] }
   0x2   :  { %6 = vst [vmem:[#allocation3] sm:$0x1] %v5_v0 }
   0x3   :  { %2 = vsyncpa [#allocation1], 0  ;;  %s110_s0 = smov 124   ;;  %s111_s8 = smov 116   ;;  %vm8_vm0 = vcmask 31744  }
   0x4   :  { %s112_s9 = smov 108   ;;  %s113_s10 = smov 120  }
   0x5   :  { %s114_s11 = smov 112   ;;  %s115_s12 = smov 104  }
   0x6   :  { %s116_s13 = smov 100   ;;  %s117_s14 = smov [#allocation0]  }
   0x7   :  { %s67_s15 = sshll.u32 %s117_s14, 4  ;;  %s69_s1 = sshll.u32 %s143_s1, 4  ;;  %s68_s15 = int_to_ptr.vmem [resolvable:$true] %s67_s15  ;;  %s70_s1 = int_to_ptr.hbm [resolvable:$true] %s69_s1 }
   0x9   :  { %v10_v1 = vld [vmem:[#allocation3] sm:$0x1]  }
   0xa   :  { %v22_v2 = vld [vmem:[#allocation3] sm:$0x1]   ;;  %11 = vrot.lane.b32.xlu0 %v10_v1, %s110_s0 }
   0xb   :  { %23 = vrot.lane.b32.xlu1 %v22_v2, %s111_s8  ;;  %v34_v3 = vld [vmem:[#allocation3] sm:$0x1]  }
   0xc   :  { %35 = vrot.lane.b32.xlu2 %v34_v3, %s112_s9  ;;  %v16_v4 = vld [vmem:[#allocation3] sm:$0x1]  }
   0xd   :  { %v28_v5 = vld [vmem:[#allocation3] sm:$0x1]  }
   0xe   :  { %v40_v6 = vld [vmem:[#allocation3] sm:$0x1]  }
   0xf   :  { %v46_v7 = vld [vmem:[#allocation3] sm:$0x1]  }
  0x10   :  { %v7_v8 = vld [vmem:[#allocation3] sm:$0x1]  }
  0x11   :  { %9 = vst.msk [vmem:[#allocation2] sm:$0x1] %vm8_vm0, %v7_v8  }
  0x12   :  { %17 = vrot.lane.b32.xlu0 %v16_v4, %s113_s10 }
  0x13   :  { %29 = vrot.lane.b32.xlu1 %v28_v5, %s114_s11 }
  0x14   :  { %41 = vrot.lane.b32.xlu2 %v40_v6, %s115_s12 }
  0x1a   :  { %47 = vrot.lane.b32.xlu0 %v46_v7, %s116_s13 }
  0x66   :  { %v36_v9 = vpop.permute.xlu2 %35  }
  0x67   :  { %39 = vst.msk [vmem:[#allocation2 + $0x9] sm:$0x1] %vm8_vm0, %v36_v9  }
  0x6e   :  { %v42_v10 = vpop.permute.xlu2 %41  }
  0x6f   :  { %45 = vst.msk [vmem:[#allocation2 + $0xa] sm:$0x1] %vm8_vm0, %v42_v10  }
  0x7c   :  { %v12_v11 = vpop.permute.xlu0 %11  }
  0x7d   :  { %v24_v12 = vpop.permute.xlu1 %23   ;;  %15 = vst.msk [vmem:[#allocation2 + $0x1] sm:$0x1] %vm8_vm0, %v12_v11  }
  0x7e   :  { %27 = vst.msk [vmem:[#allocation2 + $0x3] sm:$0x1] %vm8_vm0, %v24_v12  }
  0x84   :  { %v18_v13 = vpop.permute.xlu0 %17  }
  0x85   :  { %v30_v14 = vpop.permute.xlu1 %29   ;;  %21 = vst.msk [vmem:[#allocation2 + $0x2] sm:$0x1] %vm8_vm0, %v18_v13  }
  0x86   :  { %33 = vst.msk [vmem:[#allocation2 + $0x8] sm:$0x1] %vm8_vm0, %v30_v14  }
  0x8c   :  { %v48_v15 = vpop.permute.xlu0 %47   ;;  %v54_v16 = vld [vmem:[#allocation2] sm:$0xf] }
  0x8d   :  { %51 = vst.msk [vmem:[#allocation2 + $0xb] sm:$0x1] %vm8_vm0, %v48_v15  }
  0x8e   :  { %57 = vst [vmem:[#allocation0] sm:$0xf] %v54_v16 }
  0x94   :  { %v59_v17 = vld [vmem:[#allocation2 + $0x8] sm:$0xf] }
  0x95   :  { %63 = vst [vmem:[#allocation0 + $0x4] sm:$0xf] %v59_v17 }
  0x96   :  { %72 = dma.vmem_to_hbm [thread:$0]  %s68_s15, 128, %s70_s1, [#allocation1]  }
  0x97   :  { %108 = dma.done.wait [#allocation1], 128  }
  0x98   :  { %109 = vsyncadd [#allocation1], 4294967168 }
  0x99   :  { %75 = vsyncpa [#allocation1], 1 }

// kernel: squeeze.3
= control target key start
LH: loop header
LB: loop body
LE: loop exit
PB: predicated region body
PF: predicated region fallthrough
CT: control target
= control target key end

     0   :  { %s102_s0 = inlined_call_operand.vmem [shape: f32[8], index: 0, kind: input, shape index: {}]   ;;  %s103_s1 = inlined_call_operand.hbm [shape: f32[2,1,2,2], index: 1, kind: output, shape index: {}]  }
   0x1   :  { %v5_v0 = vld [vmem:[%s102_s0] sm:$0x1] }
   0x2   :  { %6 = vst [vmem:[#allocation3] sm:$0x1] %v5_v0 }
   0x3   :  { %2 = vsyncpa [#allocation1], 0  ;;  %s82_s0 = smov 126   ;;  %s83_s8 = smov 122   ;;  %vm8_vm0 = vcmask 15360  }
   0x4   :  { %s84_s9 = smov 124   ;;  %s85_s10 = smov [#allocation0]  }
   0x5   :  { %s43_s11 = sshll.u32 %s85_s10, 4  ;;  %s45_s1 = sshll.u32 %s103_s1, 4  ;;  %s44_s11 = int_to_ptr.vmem [resolvable:$true] %s43_s11  ;;  %s46_s1 = int_to_ptr.hbm [resolvable:$true] %s45_s1 }
   0x9   :  { %v10_v1 = vld [vmem:[#allocation3] sm:$0x1]  }
   0xa   :  { %v22_v2 = vld [vmem:[#allocation3] sm:$0x1]   ;;  %11 = vrot.lane.b32.xlu0 %v10_v1, %s82_s0 }
   0xb   :  { %23 = vrot.lane.b32.xlu1 %v22_v2, %s83_s8  ;;  %v16_v3 = vld [vmem:[#allocation3] sm:$0x1]  }
   0xc   :  { %v7_v4 = vld [vmem:[#allocation3] sm:$0x1]  }
   0xd   :  { %9 = vst.msk [vmem:[#allocation2] sm:$0x1] %vm8_vm0, %v7_v4  }
  0x12   :  { %17 = vrot.lane.b32.xlu0 %v16_v3, %s84_s9 }
  0x7c   :  { %v12_v5 = vpop.permute.xlu0 %11  }
  0x7d   :  { %v24_v6 = vpop.permute.xlu1 %23   ;;  %15 = vst.msk [vmem:[#allocation2 + $0x1] sm:$0x1] %vm8_vm0, %v12_v5  }
  0x7e   :  { %27 = vst.msk [vmem:[#allocation2 + $0x9] sm:$0x1] %vm8_vm0, %v24_v6  }
  0x84   :  { %v18_v7 = vpop.permute.xlu0 %17   ;;  %v30_v8 = vld [vmem:[#allocation2] sm:$0x3] }
  0x85   :  { %21 = vst.msk [vmem:[#allocation2 + $0x8] sm:$0x1] %vm8_vm0, %v18_v7  }
  0x86   :  { %33 = vst [vmem:[#allocation0] sm:$0x3] %v30_v8 }
  0x8c   :  { %v35_v9 = vld [vmem:[#allocation2 + $0x8] sm:$0x3] }
  0x8d   :  { %39 = vst [vmem:[#allocation0 + $0x2] sm:$0x3] %v35_v9 }
  0x8e   :  { %48 = dma.vmem_to_hbm [thread:$0]  %s44_s11, 64, %s46_s1, [#allocation1]  }
  0x8f   :  { %80 = dma.done.wait [#allocation1], 64  }
  0x90   :  { %81 = vsyncadd [#allocation1], 4294967232 }
  0x91   :  { %51 = vsyncpa [#allocation1], 1 }

// kernel: _forward.1
= control target key start
LH: loop header
LB: loop body
LE: loop exit
PB: predicated region body
PF: predicated region fallthrough
CT: control target
= control target key end

     0   :  { %s5878_s0 = inlined_call_operand.vmem [shape: f32[8,512], index: 0, kind: input, shape index: {}]   ;;  %s5879_s1 = inlined_call_operand.hbm [shape: f32[2,512,2048], index: 1, kind: input, shape index: {}]   ;;  %s5880_s2 = inlined_call_operand.hbm [shape: bf16[2,128,2048], index: 2, kind: input, shape index: {}]   ;;  %s5881_s3 = inlined_call_operand.hbm [shape: f32[2,8,128], index: 3, kind: input, shape index: {}]   ;;  %s5882_s4 = inlined_call_operand.vmem [shape: f32[2,8,1], index: 4, kind: input, shape index: {}]   ;;  %s5883_s5 = inlined_call_operand.hbm [shape: f32[2,16,128], index: 5, kind: input, shape index: {}]   ;;  %s5884_s6 = inlined_call_operand.vmem [shape: f32[2,16,1], index: 6, kind: input, shape index: {}]   ;;  %s5885_s7 = inlined_call_operand.hbm [shape: f32[2,1,16], index: 7, kind: input, shape index: {}]   ;;  %s5886_s8 = inlined_call_operand.vmem [shape: f32[2,1,1], index: 8, kind: input, shape index: {}]   ;;  %s5887_s9 = inlined_call_operand.vmem [shape: f32[2,1,128], index: 9, kind: output, shape index: {}]  }
   0x1   :  { %5893 = sst [smem:[#allocation16_spill]] %s5879_s1 }
   0x2   :  { %5894 = sst [smem:[#allocation17_spill]] %s5880_s2 }
   0x3   :  { %5895 = sst [smem:[#allocation18_spill]] %s5883_s5 }
   0x4   :  { %5896 = sst [smem:[#allocation19_spill]] %s5886_s8 }
   0x5   :  { %5897 = sst [smem:[#allocation20_spill]] %s5887_s9 }
   0x6   :  { %14 = vsyncpa [#allocation3], 0 }
   0x7   :  { %16 = vsyncpa [#allocation3 + $0x1], 0 }
   0x8   :  { %17 = vsyncpa [#allocation5], 0 }
   0x9   :  { %19 = vsyncpa [#allocation5 + $0x1], 0 }
   0xa   :  { %20 = vsyncpa [#allocation8], 0 }
   0xb   :  { %22 = vsyncpa [#allocation8 + $0x1], 0  ;;  %s4204_s30 = smov 0   ;;  %s4206_s10 = smov 0  }
   0xc   :  { %s4208_s11 = smov 0   ;;  %s4210_s12 = smov 0  }
   0xd LB: > { %5898 = sst [smem:[#allocation13_spill]] %s4142_s11  ;;  %s4223_s13 = sadd.s32 4294967295, %s4146_s12   ;;  %s4146_s12 = sphi %s4210_s12, %s5912_s12   ;;  %s4142_s11 = sphi %s4208_s11, %s5914_s11   ;;  %s4138_s10 = sphi %s4206_s10, %s5916_s10   ;;  %s4134_s30 = sphi %s4204_s30, %s5915_s30  }
   0xe   : > { %s4226_s14 = sadd.s32 1, %s4146_s12   ;;  %s56_s16 = sadd.s32 1, %s4142_s11 }
   0xf   : > { %5899 = sst [smem:[#allocation14_spill]] %s4226_s14  ;;  %s53_s15 = ssub.s32 %s4146_s12, %s4226_s14 }
  0x10   : > { %p54_p0 = scmp.eq.s32.totalorder %s53_s15, 0  ;;  %p63_p1 = scmp.ne.s32.totalorder %s4142_s11, %s4138_s10 }
  0x11   : > { %p64_p2 = scmp.eq.s32.totalorder %s4146_s12, 0  ;;  %p69_p3 = scmp.ne.s32.totalorder %s4138_s10, %s4134_s30 }
  0x12   : > { %s4236_s17 = scalar_select %p54_p0, %s4142_s11, %s56_s16  }
  0x13   : > { %p65_p4 = por %p64_p2, %p63_p1  ;;  %p70_p5 = scmp.eq.s32.totalorder %s4223_s13, 0 }
  0x14   : > { %5900 = sst [smem:[#allocation15_spill]] %s4236_s17  ;;  %p3901_p6 = scmp.lt.s32.totalorder %s4146_s12, 2 }
  0x15   : > { %p4240_p7 = por %p70_p5, %p69_p3  ;;  %s4245_s19 = sand.u32 1, %s4142_s11  }
  0x16   : > { %p4247_p8 = pnand %p3901_p6, %p65_p4  ;;  %s5888_s21 = sand.u32 1, %s4146_s12  }
  0x17   : > { %s3852_s22 = sshll.u32 %s4245_s19, 10  ;;  %s3872_s23 = sshll.u32 %s4146_s12, 10 }
  0x18   : > { %s330_s24 = scalar_lea.vmem [#allocation4], %s3852_s22  ;;  %s5903_s2 = sld [smem:[#allocation17_spill]] }
  0x19   : > { %s338_s25 = sshll.u32 %s330_s24, 4  ;;  %s4259_s30 = scalar_lea.sflag [#allocation5], %s5888_s21  ;;  %s339_s25 = int_to_ptr.vmem [resolvable:$true] %s338_s25 }
  0x1a   : > { %p4263_p10 = pneg %p4247_p8 }
  0x1e   : > { %s335_s28 = scalar_lea.hbm %s5903_s2, %s3872_s23  ;;  %s3961_s24 = scalar_lea.hbm %s5903_s2, 2048 }
  0x1f   : > { %s336_s29 = sshll.u32 %s335_s28, 4  ;;  %s337_s29 = int_to_ptr.hbm [resolvable:$true] %s336_s29 }
  0x20   : > { %s3954_s15 = sshra.s32 %s337_s29, 4  ;;  %s3955_s15 = int_to_ptr.hbm [resolvable:$true] %s3954_s15 }
  0x21   : > { %s3956_s16 = scalar_lea.hbm %s3955_s15, 1024  ;;  %p3962_p13 = scmp.lt.s32.totalorder %s3955_s15, %s5903_s2 }
  0x22   : > { %p3957_p9 = scmp.ne.s32.totalorder %s3955_s15, %s3956_s16  ;;  %p3963_p0 = scmp.lt.s32.totalorder %s3961_s24, %s3956_s16 }
  0x24   : > { %p3959_p11 = pnand %p4263_p10, %p3957_p9  ;;  %p3964_p1 = por %p3963_p0, %p3962_p13 }
  0x26   : > { %p3960_p12 = pneg %p3959_p11 }
  0x28   : > { %p3965_p2 = pnand %p3964_p1, %p3960_p12 }
  0x2a   : > { %3968 = shalt.err (!%p3965_p2)
}
  0x2b   : > { %s4148_s28 = smov 1024   ;;  %s4149_s21 = smov 64  }
  0x2c   : > { %3891 = dma.hbm_to_vmem [thread:$0]  (!%p4247_p8), %s337_s29, 16384, %s339_s25, %s4259_s30, %s4148_s28, %s4148_s28, %s4149_s21  }
  0x2d   : > { %p3860_p3 = scmp.ge.s32.totalorder %s4146_s12, 1  ;;  %p425_p4 = scmp.lt.s32.totalorder %s4146_s12, 3 }
  0x2e   : > { %s3857_s16 = sshll.u32 %s4245_s19, 4  ;;  %s3873_s22 = sshll.u32 %s4146_s12, 4 }
  0x2f   : > { %p4280_p5 = pnand %p3860_p3, %p425_p4  ;;  %s5906_s5 = sld [smem:[#allocation18_spill]] }
  0x30   : > { %s378_s27 = scalar_lea.vmem [#allocation7], %s3857_s16  ;;  %s5907_s14 = sand.u32 1, %s4146_s12  }
  0x31   : > { %s386_s2 = sshll.u32 %s378_s27, 4  ;;  %s4291_s21 = scalar_lea.sflag [#allocation8], %s5907_s14  ;;  %s387_s2 = int_to_ptr.vmem [resolvable:$true] %s386_s2 }
  0x35   : > { %s383_s26 = scalar_lea.hbm %s5906_s5, %s3873_s22  ;;  %s3991_s23 = scalar_lea.hbm %s5906_s5, 32 }
  0x36   : > { %s384_s11 = sshll.u32 %s383_s26, 4  ;;  %s385_s11 = int_to_ptr.hbm [resolvable:$true] %s384_s11 }
  0x37   : > { %s3984_s25 = sshra.s32 %s385_s11, 4  ;;  %s3985_s25 = int_to_ptr.hbm [resolvable:$true] %s3984_s25 }
  0x38   : > { %s3986_s29 = scalar_lea.hbm %s3985_s25, 16  ;;  %p3992_p12 = scmp.lt.s32.totalorder %s3985_s25, %s5906_s5 }
  0x39   : > { %p3987_p6 = scmp.ne.s32.totalorder %s3985_s25, %s3986_s29  ;;  %p3993_p13 = scmp.lt.s32.totalorder %s3991_s23, %s3986_s29 }
  0x3b   : > { %p3989_p9 = pnand %p3987_p6, %p4263_p10  ;;  %p3994_p0 = por %p3993_p13, %p3992_p12 }
  0x3d   : > { %p3990_p11 = pneg %p3989_p9 }
  0x3f   : > { %p3995_p1 = pnand %p3994_p0, %p3990_p11 }
  0x41   : > { %3998 = shalt.err (!%p3995_p1)
}
  0x42   : > { %s5892_s14 = smov 128   ;;  %s4151_s24 = smov 8  }
  0x43   : > { %3897 = dma.hbm_to_vmem [thread:$0]  (!%p4247_p8), %s385_s11, 256, %s387_s2, %s4291_s21, %s5892_s14, %s5892_s14, %s4151_s24  }
  0x44   : > { %s3849_s9 = sshll.u32 %s4245_s19, 13  ;;  %s3871_s26 = sshll.u32 %s4146_s12, 13 }
  0x45   : > { %s5908_s1 = sld [smem:[#allocation16_spill]]  ;;  %s308_s28 = scalar_lea.vmem [#allocation2], %s3849_s9 }
  0x46   : > { %s316_s23 = sshll.u32 %s308_s28, 4  ;;  %s305_s16 = scalar_lea.sflag [#allocation3], %s4245_s19  ;;  %s317_s23 = int_to_ptr.vmem [resolvable:$true] %s316_s23 }
  0x4b   : > { %s313_s29 = scalar_lea.hbm %s5908_s1, %s3871_s26  ;;  %s4021_s24 = scalar_lea.hbm %s5908_s1, 16384 }
  0x4c   : > { %s314_s22 = sshll.u32 %s313_s29, 4  ;;  %s315_s22 = int_to_ptr.hbm [resolvable:$true] %s314_s22 }
  0x4d   : > { %s4014_s5 = sshra.s32 %s315_s22, 4  ;;  %s4015_s5 = int_to_ptr.hbm [resolvable:$true] %s4014_s5 }
  0x4e   : > { %s4016_s8 = scalar_lea.hbm %s4015_s5, 8192  ;;  %p4022_p6 = scmp.lt.s32.totalorder %s4015_s5, %s5908_s1 }
  0x4f   : > { %p4017_p2 = scmp.ne.s32.totalorder %s4015_s5, %s4016_s8  ;;  %p4023_p9 = scmp.lt.s32.totalorder %s4021_s24, %s4016_s8 }
  0x51   : > { %p4019_p3 = pnand %p4017_p2, %p4263_p10  ;;  %p4024_p11 = por %p4023_p9, %p4022_p6 }
  0x53   : > { %p4020_p4 = pneg %p4019_p3 }
  0x55   : > { %p4025_p12 = pnand %p4024_p11, %p4020_p4 }
  0x57   : > { %4028 = shalt.err (!%p4025_p12)
}
  0x58   : > { %s4152_s9 = smov 2048   ;;  %s5909_s26 = smov 128  }
  0x59   : > { %3888 = dma.hbm_to_vmem [thread:$0]  (!%p4247_p8), %s315_s22, 131072, %s317_s23, %s305_s16, %s4152_s9, %s4152_s9, %s5909_s26  }
  0x5a   : > { %s3855_s25 = sshll.u32 %s4245_s19, 3  ;;  %s3856_s29 = sshll.u32 %s4146_s12, 3 }
  0x5b   : > { %s356_s11 = scalar_lea.hbm %s5881_s3, %s3856_s29  ;;  %s352_s5 = scalar_lea.vmem [#allocation6], %s3855_s25 }
  0x5c   : > { %s358_s14 = sshll.u32 %s356_s11, 4  ;;  %s360_s8 = sshll.u32 %s352_s5, 4  ;;  %s359_s14 = int_to_ptr.hbm [resolvable:$true] %s358_s14  ;;  %s361_s8 = int_to_ptr.vmem [resolvable:$true] %s360_s8 }
  0x5d   : > { %s4044_s24 = sshra.s32 %s359_s14, 4  ;;  %s4051_s22 = scalar_lea.hbm %s5881_s3, 16  ;;  %s4045_s24 = int_to_ptr.hbm [resolvable:$true] %s4044_s24 }
  0x5e   : > { %s4046_s27 = scalar_lea.hbm %s4045_s24, 8  ;;  %p4052_p2 = scmp.lt.s32.totalorder %s4045_s24, %s5881_s3 }
  0x5f   : > { %p4047_p13 = scmp.ne.s32.totalorder %s4045_s24, %s4046_s27  ;;  %p4053_p3 = scmp.lt.s32.totalorder %s4051_s22, %s4046_s27 }
  0x61   : > { %p4049_p0 = pnand %p4047_p13, %p4263_p10  ;;  %p4054_p4 = por %p4053_p3, %p4052_p2 }
  0x63   : > { %p4050_p1 = pneg %p4049_p0 }
  0x65   : > { %p4055_p6 = pnand %p4054_p4, %p4050_p1 }
  0x67   : > { %4058 = shalt.err (!%p4055_p6)
}
  0x68   : > { %3894 = dma.hbm_to_vmem [thread:$0]  (!%p4247_p8), %s359_s14, 128, %s361_s8, %s4259_s30  }
  0x69   : > { %s410_s1 = scalar_lea.hbm %s5885_s7, %s4146_s12  ;;  %s407_s28 = scalar_lea.vmem [#allocation9], %s4245_s19 }
  0x6a   : > { %s412_s29 = sshll.u32 %s410_s1, 4  ;;  %s414_s2 = sshll.u32 %s407_s28, 4  ;;  %s413_s29 = int_to_ptr.hbm [resolvable:$true] %s412_s29  ;;  %s415_s2 = int_to_ptr.vmem [resolvable:$true] %s414_s2 }
  0x6b   : > { %s4074_s11 = sshra.s32 %s413_s29, 4  ;;  %s4081_s30 = scalar_lea.hbm %s5885_s7, 2  ;;  %s4075_s11 = int_to_ptr.hbm [resolvable:$true] %s4074_s11 }
  0x6c   : > { %s4076_s5 = scalar_lea.hbm %s4075_s11, 1  ;;  %p4082_p13 = scmp.lt.s32.totalorder %s4075_s11, %s5885_s7 }
  0x6d   : > { %p4077_p9 = scmp.ne.s32.totalorder %s4075_s11, %s4076_s5  ;;  %p4083_p0 = scmp.lt.s32.totalorder %s4081_s30, %s4076_s5 }
  0x6f   : > { %p4079_p11 = pnand %p4077_p9, %p4263_p10  ;;  %p4084_p1 = por %p4083_p0, %p4082_p13 }
  0x71   : > { %p4080_p12 = pneg %p4079_p11 }
  0x73   : > { %p4085_p2 = pnand %p4084_p1, %p4080_p12 }
  0x75   : > { %4088 = shalt.err (!%p4085_p2)
}
  0x76   : > { %3900 = dma.hbm_to_vmem [thread:$0]  (!%p4247_p8), %s413_s29, 16, %s415_s2, %s4291_s21  }
  0x77   : > { %429 = sbr.rel (%p4280_p5) target bundleno = 1506 (0x5e2), region = 56  ;;  %s4358_s12 = sand.u32 (!%p4280_p5), 1, %s4138_s10  }
  0x78   : > { %s3861_s17 = sshll.u32 (!%p4280_p5), %s4358_s12, 13  ;;  %s432_s19 = scalar_lea.sflag (!%p4280_p5), [#allocation3], %s4358_s12 }
  0x79   : > { %s4362_s23 = scalar_lea.vmem (!%p4280_p5), [#allocation2], %s3861_s17 }
  0x7c   : > { %4121 = dma.done.wait (%p4240_p7), %s432_s19, 131072  }
  0x7d   : > { %4123 = vsyncadd (%p4240_p7), %s432_s19, 4294836224  ;;  %s441_s20 = sand.u32 1, %s4223_s13   ;;  %s3862_s15 = sshll.u32 %s4358_s12, 10 }
  0x7e   : > { %s442_s21 = scalar_lea.sflag [#allocation5], %s441_s20  ;;  %s4370_s22 = scalar_lea.vmem [#allocation4], %s3862_s15 }
  0x7f   : > { %4125 = dma.done.wait (%p4240_p7), %s442_s21, 16512  }
  0x80   : > { %4127 = vsyncadd (%p4240_p7), %s442_s21, 4294950784  ;;  %s3863_s16 = sshll.u32 %s4358_s12, 3  ;;  %s3864_s9 = sshll.u32 %s4358_s12, 4 }
  0x81   : > { %s4378_s26 = scalar_lea.vmem [#allocation6], %s3863_s16  ;;  %s462_s25 = scalar_lea.sflag [#allocation8], %s441_s20 }
  0x82   : > { %s4380_s1 = scalar_lea.vmem [#allocation7], %s3864_s9 }
  0x83   : > { %4129 = dma.done.wait (%p4240_p7), %s462_s25, 272  }
  0x84   : > { %4131 = vsyncadd (%p4240_p7), %s462_s25, 4294967024  ;;  %v1054_v0 = vld [vmem:[%s4362_s23 + $0xf80] sm:$0xff]  ;;  %v4433_v44 = vld [vmem:[%s5878_s0 + $0x8] sm:$0xff]  ;;  %p539_p7 = scmp.lt.s32.totalorder %s4223_s13, 1  ;;  %s5910_s29 = sld [smem:[#allocation19_spill]]  ;;  %vm3647_vm3 = vcmask 130048  }
  0x85   : > { %v1038_v1 = vld [vmem:[%s4362_s23 + $0xf00] sm:$0xff]  ;;  %1602 = vmatpush.msra.mxu3 %v1054_v0  ;;  %v1055_v49 = vld [vmem:[%s4362_s23 + $0xf88] sm:$0xff]  ;;  %v4449_v55 = vld [vmem:[%s5878_s0 + $0x10] sm:$0xff]  ;;  %s474_s2 = scalar_lea.vmem [#allocation9], %s4358_s12  ;;  %s5911_s5 = sld [smem:[#allocation20_spill]] }
  0x86   : > { %v1022_v2 = vld [vmem:[%s4362_s23 + $0xe80] sm:$0xff]  ;;  %v1311_v52 = vld [vmem:[%s4362_s23 + $0x1788] sm:$0xff]  ;;  %1682 = vmatpush.msra.mxu1 %v1055_v49  ;;  %s5918_s13 = smov (!%p539_p7, %s4223_s13), 1 }
  0x87   : > { %1603 = vmatpush.msra.mxu3 %v1038_v1  ;;  %v1006_v3 = vld [vmem:[%s4362_s23 + $0xe00] sm:$0xff]  ;;  %v1295_v56 = vld [vmem:[%s4362_s23 + $0x1708] sm:$0xff]  ;;  %s3874_s16 = sshll.u32 %s5918_s13, 4 }
  0x88   : > { %v1310_v4 = vld [vmem:[%s4362_s23 + $0x1780] sm:$0xff]  ;;  %v799_v57 = vld [vmem:[%s4362_s23 + $0x788] sm:$0xff]  ;;  %s5611_s18 = scalar_lea.vmem %s5884_s6, %s3874_s16 }
  0x89   : > { %1604 = vmatpush.msra.mxu3 %v1022_v2  ;;  %v1294_v5 = vld [vmem:[%s4362_s23 + $0x1700] sm:$0xff]  ;;  %1622 = vmatpush.msra.mxu2 %v1310_v4  ;;  %v1039_v59 = vld [vmem:[%s4362_s23 + $0xf08] sm:$0xff] }
  0x8a   : > { %v990_v6 = vld [vmem:[%s4362_s23 + $0xd80] sm:$0xff]  ;;  %v1279_v60 = vld [vmem:[%s4362_s23 + $0x1688] sm:$0xff]  ;;  %1683 = vmatpush.msra.mxu1 %v1039_v59  ;;  %v1296_v59 = vld [vmem:[%s4362_s23 + $0x1710] sm:$0xff]  ;;  %s550_s28 = scalar_lea.vmem %s5910_s29, %s5918_s13 }
  0x8b   : > { %v798_v7 = vld [vmem:[%s4362_s23 + $0x780] sm:$0xff]  ;;  %1605 = vmatpush.msra.mxu3 %v1006_v3  ;;  %1623 = vmatpush.msra.mxu2 %v1294_v5  ;;  %v783_v61 = vld [vmem:[%s4362_s23 + $0x708] sm:$0xff]  ;;  %s553_s24 = scalar_lea.vmem %s5911_s5, %s5918_s13 }
  0x8c   : > { %1582 = vmatpush.msra.mxu0 %v798_v7  ;;  %v1278_v8 = vld [vmem:[%s4362_s23 + $0x1680] sm:$0xff]  ;;  %v1263_v0 = vld [vmem:[%s4362_s23 + $0x1608] sm:$0xff] }
  0x8d   : > { %v782_v9 = vld [vmem:[%s4362_s23 + $0x700] sm:$0xff]  ;;  %1606 = vmatpush.msra.mxu3 %v990_v6  ;;  %1624 = vmatpush.msra.mxu2 %v1278_v8  ;;  %v767_v1 = vld [vmem:[%s4362_s23 + $0x688] sm:$0xff] }
  0x8e   : > { %v974_v10 = vld [vmem:[%s4362_s23 + $0xd00] sm:$0xff]  ;;  %1583 = vmatpush.msra.mxu0 %v782_v9  ;;  %v1023_v3 = vld [vmem:[%s4362_s23 + $0xe88] sm:$0xff] }
  0x8f   : > { %v766_v11 = vld [vmem:[%s4362_s23 + $0x680] sm:$0xff]  ;;  %1607 = vmatpush.msra.mxu3 %v974_v10  ;;  %v1247_v4 = vld [vmem:[%s4362_s23 + $0x1588] sm:$0xff]  ;;  %1684 = vmatpush.msra.mxu1 %v1023_v3 }
  0x90   : > { %v1262_v12 = vld [vmem:[%s4362_s23 + $0x1600] sm:$0xff]  ;;  %1584 = vmatpush.msra.mxu0 %v766_v11  ;;  %v751_v5 = vld [vmem:[%s4362_s23 + $0x608] sm:$0xff] }
  0x91   : > { %v958_v13 = vld [vmem:[%s4362_s23 + $0xc80] sm:$0xff]  ;;  %1625 = vmatpush.msra.mxu2 %v1262_v12  ;;  %v1007_v7 = vld [vmem:[%s4362_s23 + $0xe08] sm:$0xff] }
  0x92   : > { %v750_v14 = vld [vmem:[%s4362_s23 + $0x600] sm:$0xff]  ;;  %1608 = vmatpush.msra.mxu3 %v958_v13  ;;  %v1231_v8 = vld [vmem:[%s4362_s23 + $0x1508] sm:$0xff]  ;;  %1685 = vmatpush.msra.mxu1 %v1007_v7 }
  0x93   : > { %v1246_v15 = vld [vmem:[%s4362_s23 + $0x1580] sm:$0xff]  ;;  %1585 = vmatpush.msra.mxu0 %v750_v14  ;;  %v735_v9 = vld [vmem:[%s4362_s23 + $0x588] sm:$0xff] }
  0x94   : > { %v942_v16 = vld [vmem:[%s4362_s23 + $0xc00] sm:$0xff]  ;;  %1626 = vmatpush.msra.mxu2 %v1246_v15  ;;  %v991_v11 = vld [vmem:[%s4362_s23 + $0xd88] sm:$0xff] }
  0x95   : > { %v734_v17 = vld [vmem:[%s4362_s23 + $0x580] sm:$0xff]  ;;  %1609 = vmatpush.msra.mxu3 %v942_v16  ;;  %v1215_v12 = vld [vmem:[%s4362_s23 + $0x1488] sm:$0xff]  ;;  %1686 = vmatpush.msra.mxu1 %v991_v11 }
  0x96   : > { %v1230_v18 = vld [vmem:[%s4362_s23 + $0x1500] sm:$0xff]  ;;  %1586 = vmatpush.msra.mxu0 %v734_v17  ;;  %v719_v13 = vld [vmem:[%s4362_s23 + $0x508] sm:$0xff] }
  0x97   : > { %v926_v19 = vld [vmem:[%s4362_s23 + $0xb80] sm:$0xff]  ;;  %1627 = vmatpush.msra.mxu2 %v1230_v18  ;;  %v975_v15 = vld [vmem:[%s4362_s23 + $0xd08] sm:$0xff] }
  0x98   : > { %v718_v20 = vld [vmem:[%s4362_s23 + $0x500] sm:$0xff]  ;;  %1610 = vmatpush.msra.mxu3 %v926_v19  ;;  %v1199_v16 = vld [vmem:[%s4362_s23 + $0x1408] sm:$0xff]  ;;  %1687 = vmatpush.msra.mxu1 %v975_v15 }
  0x99   : > { %v1214_v21 = vld [vmem:[%s4362_s23 + $0x1480] sm:$0xff]  ;;  %1587 = vmatpush.msra.mxu0 %v718_v20  ;;  %v703_v17 = vld [vmem:[%s4362_s23 + $0x488] sm:$0xff] }
  0x9a   : > { %v910_v22 = vld [vmem:[%s4362_s23 + $0xb00] sm:$0xff]  ;;  %1628 = vmatpush.msra.mxu2 %v1214_v21  ;;  %v959_v19 = vld [vmem:[%s4362_s23 + $0xc88] sm:$0xff] }
  0x9b   : > { %v702_v23 = vld [vmem:[%s4362_s23 + $0x480] sm:$0xff]  ;;  %1611 = vmatpush.msra.mxu3 %v910_v22  ;;  %v1183_v20 = vld [vmem:[%s4362_s23 + $0x1388] sm:$0xff]  ;;  %1688 = vmatpush.msra.mxu1 %v959_v19 }
  0x9c   : > { %v1198_v24 = vld [vmem:[%s4362_s23 + $0x1400] sm:$0xff]  ;;  %1588 = vmatpush.msra.mxu0 %v702_v23  ;;  %v687_v21 = vld [vmem:[%s4362_s23 + $0x408] sm:$0xff] }
  0x9d   : > { %v894_v25 = vld [vmem:[%s4362_s23 + $0xa80] sm:$0xff]  ;;  %1629 = vmatpush.msra.mxu2 %v1198_v24  ;;  %v943_v23 = vld [vmem:[%s4362_s23 + $0xc08] sm:$0xff] }
  0x9e   : > { %v686_v26 = vld [vmem:[%s4362_s23 + $0x400] sm:$0xff]  ;;  %1612 = vmatpush.msra.mxu3 %v894_v25  ;;  %v1167_v24 = vld [vmem:[%s4362_s23 + $0x1308] sm:$0xff]  ;;  %1689 = vmatpush.msra.mxu1 %v943_v23 }
  0x9f   : > { %v1182_v27 = vld [vmem:[%s4362_s23 + $0x1380] sm:$0xff]  ;;  %1589 = vmatpush.msra.mxu0 %v686_v26  ;;  %v671_v25 = vld [vmem:[%s4362_s23 + $0x388] sm:$0xff] }
  0xa0   : > { %v878_v28 = vld [vmem:[%s4362_s23 + $0xa00] sm:$0xff]  ;;  %1630 = vmatpush.msra.mxu2 %v1182_v27  ;;  %v927_v27 = vld [vmem:[%s4362_s23 + $0xb88] sm:$0xff] }
  0xa1   : > { %v670_v29 = vld [vmem:[%s4362_s23 + $0x380] sm:$0xff]  ;;  %1613 = vmatpush.msra.mxu3 %v878_v28  ;;  %v1151_v28 = vld [vmem:[%s4362_s23 + $0x1288] sm:$0xff]  ;;  %1690 = vmatpush.msra.mxu1 %v927_v27 }
  0xa2   : > { %v1166_v30 = vld [vmem:[%s4362_s23 + $0x1300] sm:$0xff]  ;;  %1590 = vmatpush.msra.mxu0 %v670_v29  ;;  %v655_v29 = vld [vmem:[%s4362_s23 + $0x308] sm:$0xff] }
  0xa3   : > { %v862_v31 = vld [vmem:[%s4362_s23 + $0x980] sm:$0xff]  ;;  %1631 = vmatpush.msra.mxu2 %v1166_v30  ;;  %v1535_v49 = vld [vmem:[%s4362_s23 + $0x1e88] sm:$0xff] }
  0xa4   : > { %v654_v32 = vld [vmem:[%s4362_s23 + $0x300] sm:$0xff]  ;;  %1614 = vmatpush.msra.mxu3 %v862_v31  ;;  %v911_v31 = vld [vmem:[%s4362_s23 + $0xb08] sm:$0xff] }
  0xa5   : > { %v1150_v33 = vld [vmem:[%s4362_s23 + $0x1280] sm:$0xff]  ;;  %1591 = vmatpush.msra.mxu0 %v654_v32  ;;  %v1135_v32 = vld [vmem:[%s4362_s23 + $0x1208] sm:$0xff]  ;;  %1691 = vmatpush.msra.mxu1 %v911_v31 }
  0xa6   : > { %v846_v34 = vld [vmem:[%s4362_s23 + $0x900] sm:$0xff]  ;;  %1632 = vmatpush.msra.mxu2 %v1150_v33  ;;  %v639_v33 = vld [vmem:[%s4362_s23 + $0x288] sm:$0xff] }
  0xa7   : > { %v638_v35 = vld [vmem:[%s4362_s23 + $0x280] sm:$0xff]  ;;  %1615 = vmatpush.msra.mxu3 %v846_v34  ;;  %v1471_v3 = vld [vmem:[%s4362_s23 + $0x1c88] sm:$0xff] }
  0xa8   : > { %v1134_v36 = vld [vmem:[%s4362_s23 + $0x1200] sm:$0xff]  ;;  %1592 = vmatpush.msra.mxu0 %v638_v35  ;;  %v895_v35 = vld [vmem:[%s4362_s23 + $0xa88] sm:$0xff] }
  0xa9   : > { %v830_v37 = vld [vmem:[%s4362_s23 + $0x880] sm:$0xff]  ;;  %1633 = vmatpush.msra.mxu2 %v1134_v36  ;;  %v1119_v36 = vld [vmem:[%s4362_s23 + $0x1188] sm:$0xff]  ;;  %1692 = vmatpush.msra.mxu1 %v895_v35 }
  0xaa   : > { %v622_v38 = vld [vmem:[%s4362_s23 + $0x200] sm:$0xff]  ;;  %1616 = vmatpush.msra.mxu3 %v830_v37  ;;  %v623_v37 = vld [vmem:[%s4362_s23 + $0x208] sm:$0xff] }
  0xab   : > { %v1118_v39 = vld [vmem:[%s4362_s23 + $0x1180] sm:$0xff]  ;;  %1593 = vmatpush.msra.mxu0 %v622_v38  ;;  %v1455_v7 = vld [vmem:[%s4362_s23 + $0x1c08] sm:$0xff] }
  0xac   : > { %v814_v40 = vld [vmem:[%s4362_s23 + $0x800] sm:$0xff]  ;;  %1634 = vmatpush.msra.mxu2 %v1118_v39  ;;  %v879_v39 = vld [vmem:[%s4362_s23 + $0xa08] sm:$0xff] }
  0xad   : > { %v606_v41 = vld [vmem:[%s4362_s23 + $0x180] sm:$0xff]  ;;  %1617 = vmatpush.msra.mxu3 %v814_v40  ;;  %v1567_v40 = vld [vmem:[%s4362_s23 + $0x1f88] sm:$0xff]  ;;  %1693 = vmatpush.msra.mxu1 %v879_v39 }
  0xae   : > { %v1566_v42 = vld [vmem:[%s4362_s23 + $0x1f80] sm:$0xff]  ;;  %1594 = vmatpush.msra.mxu0 %v606_v41  ;;  %1618 = vmatmul.f32.vlgmr.msra.gmra.mxu3 %v4433_v44  ;;  %v1103_v41 = vld [vmem:[%s4362_s23 + $0x1108] sm:$0xff] }
  0xaf   : > { %v1102_v43 = vld [vmem:[%s4362_s23 + $0x1100] sm:$0xff]  ;;  %1642 = vmatpush.msrb.mxu3 %v1566_v42  ;;  %v4510_v42 = vld [vmem:[%s5878_s0 + $0x18] sm:$0xff]  ;;  %v1439_v11 = vld [vmem:[%s4362_s23 + $0x1b88] sm:$0xff] }
  0xb0   : > { %v590_v45 = vld [vmem:[%s4362_s23 + $0x100] sm:$0xff]  ;;  %1635 = vmatpush.msra.mxu2 %v1102_v43  ;;  %v607_v43 = vld [vmem:[%s4362_s23 + $0x188] sm:$0xff] }
  0xb1   : > { %v1550_v46 = vld [vmem:[%s4362_s23 + $0x1f00] sm:$0xff]  ;;  %1595 = vmatpush.msra.mxu0 %v590_v45  ;;  %v1551_v45 = vld [vmem:[%s4362_s23 + $0x1f08] sm:$0xff] }
  0xb2   : > { %v1086_v47 = vld [vmem:[%s4362_s23 + $0x1080] sm:$0xff]  ;;  %1643 = vmatpush.msrb.mxu3 %v1550_v46  ;;  %v863_v46 = vld [vmem:[%s4362_s23 + $0x988] sm:$0xff] }
  0xb3   : > { %v574_v48 = vld [vmem:[%s4362_s23 + $0x80] sm:$0xff]  ;;  %1636 = vmatpush.msra.mxu2 %v1086_v47  ;;  %v1087_v47 = vld [vmem:[%s4362_s23 + $0x1088] sm:$0xff]  ;;  %1694 = vmatpush.msra.mxu1 %v863_v46  ;;  %v880_v46 = vld [vmem:[%s4362_s23 + $0xa10] sm:$0xff] }
  0xb4   : > { %v1534_v50 = vld [vmem:[%s4362_s23 + $0x1e80] sm:$0xff]  ;;  %1596 = vmatpush.msra.mxu0 %v574_v48  ;;  %v591_v48 = vld [vmem:[%s4362_s23 + $0x108] sm:$0xff] }
  0xb5   : > { %v1070_v51 = vld [vmem:[%s4362_s23 + $0x1000] sm:$0xff]  ;;  %1644 = vmatpush.msrb.mxu3 %v1534_v50  ;;  %v847_v50 = vld [vmem:[%s4362_s23 + $0x908] sm:$0xff] }
  0xb6   : > { %v558_v53 = vld [vmem:[%s4362_s23] sm:$0xff]  ;;  %1637 = vmatpush.msra.mxu2 %v1070_v51  ;;  %v1071_v51 = vld [vmem:[%s4362_s23 + $0x1008] sm:$0xff]  ;;  %1695 = vmatpush.msra.mxu1 %v847_v50  ;;  %v864_v50 = vld [vmem:[%s4362_s23 + $0x990] sm:$0xff] }
  0xb7   : > { %v1518_v54 = vld [vmem:[%s4362_s23 + $0x1e00] sm:$0xff]  ;;  %1597 = vmatpush.msra.mxu0 %v558_v53  ;;  %1638 = vmatmul.f32.vlgmr.msra.gmra.mxu2 %v4449_v55  ;;  %v1519_v53 = vld [vmem:[%s4362_s23 + $0x1e08] sm:$0xff] }
  0xb8   : > { %v1502_v58 = vld [vmem:[%s4362_s23 + $0x1d80] sm:$0xff]  ;;  %1702 = vmatpush.msrb.mxu2 %v1311_v52  ;;  %1645 = vmatpush.msrb.mxu3 %v1518_v54  ;;  %v575_v52 = vld [vmem:[%s4362_s23 + $0x88] sm:$0xff]  ;;  %v1312_v54 = vld [vmem:[%s4362_s23 + $0x1790] sm:$0xff] }
  0xb9   : > { %v1486_v62 = vld [vmem:[%s4362_s23 + $0x1d00] sm:$0xff]  ;;  %1662 = vmatpush.msrb.mxu0 %v799_v57  ;;  %v559_v57 = vld [vmem:[%s4362_s23 + $0x8] sm:$0xff] }
  0xba   : > { %1703 = vmatpush.msrb.mxu2 %v1295_v56  ;;  %v4462_v63 = vld [vmem:[%s5878_s0] sm:$0xff]  ;;  %1646 = vmatpush.msrb.mxu3 %v1502_v58  ;;  %v831_v56 = vld [vmem:[%s4362_s23 + $0x888] sm:$0xff] }
  0xbb   : > { %v1470_v2 = vld [vmem:[%s4362_s23 + $0x1c80] sm:$0xff]  ;;  %1663 = vmatpush.msrb.mxu0 %v783_v61  ;;  %v1503_v58 = vld [vmem:[%s4362_s23 + $0x1d88] sm:$0xff]  ;;  %v800_v61 = vld [vmem:[%s4362_s23 + $0x790] sm:$0xff]  ;;  %1696 = vmatpush.msra.mxu1 %v831_v56 }
  0xbc   : > { %1704 = vmatpush.msrb.mxu2 %v1279_v60  ;;  %1647 = vmatpush.msrb.mxu3 %v1486_v62  ;;  %v1454_v6 = vld [vmem:[%s4362_s23 + $0x1c00] sm:$0xff]  ;;  %v815_v60 = vld [vmem:[%s4362_s23 + $0x808] sm:$0xff]  ;;  %v1520_v56 = vld [vmem:[%s4362_s23 + $0x1e10] sm:$0xff] }
  0xbd   : > { %1598 = vmatmul.f32.vlgmr.msra.gmra.mxu0 %v4462_v63  ;;  %v1438_v10 = vld [vmem:[%s4362_s23 + $0x1b80] sm:$0xff]  ;;  %v1487_v62 = vld [vmem:[%s4362_s23 + $0x1d08] sm:$0xff]  ;;  %1697 = vmatpush.msra.mxu1 %v815_v60  ;;  %v1313_v60 = vld [vmem:[%s4362_s23 + $0x1798] sm:$0xff] }
  0xbe   : > { %1705 = vmatpush.msrb.mxu2 %v1263_v0  ;;  %1664 = vmatpush.msrb.mxu0 %v767_v1  ;;  %v1422_v14 = vld [vmem:[%s4362_s23 + $0x1b00] sm:$0xff]  ;;  %v1056_v0 = vld [vmem:[%s4362_s23 + $0xf90] sm:$0xff]  ;;  %v1423_v15 = vld [vmem:[%s4362_s23 + $0x1b08] sm:$0xff] }
  0xbf   : > { %1648 = vmatpush.msrb.mxu3 %v1470_v2  ;;  %v1406_v18 = vld [vmem:[%s4362_s23 + $0x1a80] sm:$0xff]  ;;  %v1280_v1 = vld [vmem:[%s4362_s23 + $0x1690] sm:$0xff]  ;;  %1762 = vmatpush.msrb.mxu1 %v1056_v0  ;;  %v1407_v19 = vld [vmem:[%s4362_s23 + $0x1a88] sm:$0xff] }
  0xc0   : > { %1706 = vmatpush.msrb.mxu2 %v1247_v4  ;;  %1665 = vmatpush.msrb.mxu0 %v751_v5  ;;  %v1390_v22 = vld [vmem:[%s4362_s23 + $0x1a00] sm:$0xff]  ;;  %v784_v2 = vld [vmem:[%s4362_s23 + $0x710] sm:$0xff]  ;;  %v1391_v23 = vld [vmem:[%s4362_s23 + $0x1a08] sm:$0xff] }
  0xc1   : > { %1649 = vmatpush.msrb.mxu3 %v1454_v6  ;;  %v1374_v26 = vld [vmem:[%s4362_s23 + $0x1980] sm:$0xff]  ;;  %v1040_v4 = vld [vmem:[%s4362_s23 + $0xf10] sm:$0xff]  ;;  %v1375_v27 = vld [vmem:[%s4362_s23 + $0x1988] sm:$0xff]  ;;  %1698 = vmatmul.f32.vlgmr.msra.gmra.mxu1 %v4433_v44 }
  0xc2   : > { %1707 = vmatpush.msrb.mxu2 %v1231_v8  ;;  %1666 = vmatpush.msrb.mxu0 %v735_v9  ;;  %v1358_v30 = vld [vmem:[%s4362_s23 + $0x1900] sm:$0xff]  ;;  %v1264_v5 = vld [vmem:[%s4362_s23 + $0x1610] sm:$0xff]  ;;  %v1359_v31 = vld [vmem:[%s4362_s23 + $0x1908] sm:$0xff] }
  0xc3   : > { %1650 = vmatpush.msrb.mxu3 %v1438_v10  ;;  %v1342_v34 = vld [vmem:[%s4362_s23 + $0x1880] sm:$0xff]  ;;  %v768_v6 = vld [vmem:[%s4362_s23 + $0x690] sm:$0xff]  ;;  %1763 = vmatpush.msrb.mxu1 %v1040_v4  ;;  %v1343_v35 = vld [vmem:[%s4362_s23 + $0x1888] sm:$0xff] }
  0xc4   : > { %1708 = vmatpush.msrb.mxu2 %v1215_v12  ;;  %1667 = vmatpush.msrb.mxu0 %v719_v13  ;;  %v1326_v38 = vld [vmem:[%s4362_s23 + $0x1800] sm:$0xff]  ;;  %v1024_v8 = vld [vmem:[%s4362_s23 + $0xe90] sm:$0xff]  ;;  %v1327_v39 = vld [vmem:[%s4362_s23 + $0x1808] sm:$0xff] }
  0xc5   : > { %1651 = vmatpush.msrb.mxu3 %v1422_v14  ;;  %v1248_v9 = vld [vmem:[%s4362_s23 + $0x1590] sm:$0xff]  ;;  %1764 = vmatpush.msrb.mxu1 %v1024_v8  ;;  %v1297_v0 = vld [vmem:[%s4362_s23 + $0x1718] sm:$0xff] }
  0xc6   : > { %1709 = vmatpush.msrb.mxu2 %v1199_v16  ;;  %1668 = vmatpush.msrb.mxu0 %v703_v17  ;;  %v752_v10 = vld [vmem:[%s4362_s23 + $0x610] sm:$0xff]  ;;  %v801_v4 = vld [vmem:[%s4362_s23 + $0x798] sm:$0xff] }
  0xc7   : > { %1652 = vmatpush.msrb.mxu3 %v1406_v18  ;;  %v1008_v12 = vld [vmem:[%s4362_s23 + $0xe10] sm:$0xff]  ;;  %v785_v8 = vld [vmem:[%s4362_s23 + $0x718] sm:$0xff] }
  0xc8   : > { %1710 = vmatpush.msrb.mxu2 %v1183_v20  ;;  %1669 = vmatpush.msrb.mxu0 %v687_v21  ;;  %v1232_v13 = vld [vmem:[%s4362_s23 + $0x1510] sm:$0xff] }
  0xc9   : > { %1653 = vmatpush.msrb.mxu3 %v1390_v22  ;;  %v736_v14 = vld [vmem:[%s4362_s23 + $0x590] sm:$0xff]  ;;  %1765 = vmatpush.msrb.mxu1 %v1008_v12  ;;  %v769_v12 = vld [vmem:[%s4362_s23 + $0x698] sm:$0xff] }
  0xca   : > { %1711 = vmatpush.msrb.mxu2 %v1167_v24  ;;  %1670 = vmatpush.msrb.mxu0 %v671_v25  ;;  %v992_v16 = vld [vmem:[%s4362_s23 + $0xd90] sm:$0xff] }
  0xcb   : > { %1654 = vmatpush.msrb.mxu3 %v1374_v26  ;;  %v1216_v17 = vld [vmem:[%s4362_s23 + $0x1490] sm:$0xff]  ;;  %1766 = vmatpush.msrb.mxu1 %v992_v16  ;;  %v753_v16 = vld [vmem:[%s4362_s23 + $0x618] sm:$0xff] }
  0xcc   : > { %1712 = vmatpush.msrb.mxu2 %v1151_v28  ;;  %1671 = vmatpush.msrb.mxu0 %v655_v29  ;;  %v720_v18 = vld [vmem:[%s4362_s23 + $0x510] sm:$0xff] }
  0xcd   : > { %1655 = vmatpush.msrb.mxu3 %v1358_v30  ;;  %v976_v20 = vld [vmem:[%s4362_s23 + $0xd10] sm:$0xff] }
  0xce   : > { %1713 = vmatpush.msrb.mxu2 %v1135_v32  ;;  %1672 = vmatpush.msrb.mxu0 %v639_v33  ;;  %v1200_v21 = vld [vmem:[%s4362_s23 + $0x1410] sm:$0xff] }
  0xcf   : > { %1656 = vmatpush.msrb.mxu3 %v1342_v34  ;;  %v704_v22 = vld [vmem:[%s4362_s23 + $0x490] sm:$0xff]  ;;  %1767 = vmatpush.msrb.mxu1 %v976_v20  ;;  %v737_v20 = vld [vmem:[%s4362_s23 + $0x598] sm:$0xff] }
  0xd0   : > { %1714 = vmatpush.msrb.mxu2 %v1119_v36  ;;  %1673 = vmatpush.msrb.mxu0 %v623_v37  ;;  %v960_v24 = vld [vmem:[%s4362_s23 + $0xc90] sm:$0xff] }
  0xd1   : > { %1657 = vmatpush.msrb.mxu3 %v1326_v38  ;;  %v1184_v25 = vld [vmem:[%s4362_s23 + $0x1390] sm:$0xff]  ;;  %1768 = vmatpush.msrb.mxu1 %v960_v24  ;;  %v721_v24 = vld [vmem:[%s4362_s23 + $0x518] sm:$0xff] }
  0xd2   : > { %1715 = vmatpush.msrb.mxu2 %v1103_v41  ;;  %1658 = vmatmul.f32.vlgmr.msrb.gmra.mxu3 %v4510_v42  ;;  %v688_v26 = vld [vmem:[%s4362_s23 + $0x410] sm:$0xff] }
  0xd3   : > { %1722 = vmatpush.msra.mxu3 %v1567_v40  ;;  %1674 = vmatpush.msrb.mxu0 %v607_v43  ;;  %v944_v28 = vld [vmem:[%s4362_s23 + $0xc10] sm:$0xff] }
  0xd4   : > { %1716 = vmatpush.msrb.mxu2 %v1087_v47  ;;  %v1168_v29 = vld [vmem:[%s4362_s23 + $0x1310] sm:$0xff]  ;;  %1769 = vmatpush.msrb.mxu1 %v944_v28  ;;  %v705_v28 = vld [vmem:[%s4362_s23 + $0x498] sm:$0xff] }
  0xd5   : > { %1723 = vmatpush.msra.mxu3 %v1551_v45  ;;  %1675 = vmatpush.msrb.mxu0 %v591_v48  ;;  %v672_v30 = vld [vmem:[%s4362_s23 + $0x390] sm:$0xff] }
  0xd6   : > { %1717 = vmatpush.msrb.mxu2 %v1071_v51  ;;  %v928_v32 = vld [vmem:[%s4362_s23 + $0xb90] sm:$0xff] }
  0xd7   : > { %1724 = vmatpush.msra.mxu3 %v1535_v49  ;;  %1676 = vmatpush.msrb.mxu0 %v575_v52  ;;  %v1152_v33 = vld [vmem:[%s4362_s23 + $0x1290] sm:$0xff] }
  0xd8   : > { %1782 = vmatpush.msra.mxu2 %v1312_v54  ;;  %v656_v34 = vld [vmem:[%s4362_s23 + $0x310] sm:$0xff]  ;;  %1770 = vmatpush.msrb.mxu1 %v928_v32  ;;  %v689_v32 = vld [vmem:[%s4362_s23 + $0x418] sm:$0xff] }
  0xd9   : > { %1725 = vmatpush.msra.mxu3 %v1519_v53  ;;  %1677 = vmatpush.msrb.mxu0 %v559_v57  ;;  %v912_v36 = vld [vmem:[%s4362_s23 + $0xb10] sm:$0xff] }
  0xda   : > { %1783 = vmatpush.msra.mxu2 %v1296_v59  ;;  %v1136_v37 = vld [vmem:[%s4362_s23 + $0x1210] sm:$0xff]  ;;  %1771 = vmatpush.msrb.mxu1 %v912_v36  ;;  %v673_v36 = vld [vmem:[%s4362_s23 + $0x398] sm:$0xff] }
  0xdb   : > { %1726 = vmatpush.msra.mxu3 %v1503_v58  ;;  %1742 = vmatpush.msra.mxu0 %v800_v61  ;;  %v640_v38 = vld [vmem:[%s4362_s23 + $0x290] sm:$0xff] }
  0xdc   : > { %1784 = vmatpush.msra.mxu2 %v1280_v1  ;;  %v896_v40 = vld [vmem:[%s4362_s23 + $0xa90] sm:$0xff]  ;;  %1678 = vmatmul.f32.vlgmr.msrb.gmra.mxu0 %v4462_v63 }
  0xdd   : > { %1727 = vmatpush.msra.mxu3 %v1487_v62  ;;  %1743 = vmatpush.msra.mxu0 %v784_v2  ;;  %v1568_v41 = vld [vmem:[%s4362_s23 + $0x1f90] sm:$0xff] }
  0xde   : > { %1785 = vmatpush.msra.mxu2 %v1264_v5  ;;  %v1120_v43 = vld [vmem:[%s4362_s23 + $0x1190] sm:$0xff]  ;;  %1772 = vmatpush.msrb.mxu1 %v896_v40  ;;  %v1153_v40 = vld [vmem:[%s4362_s23 + $0x1298] sm:$0xff] }
  0xdf   : > { %1728 = vmatpush.msra.mxu3 %v1471_v3  ;;  %1744 = vmatpush.msra.mxu0 %v768_v6  ;;  %v624_v45 = vld [vmem:[%s4362_s23 + $0x210] sm:$0xff]  ;;  %v1057_v6 = vld [vmem:[%s4362_s23 + $0xf98] sm:$0xff] }
  0xe0   : > { %1786 = vmatpush.msra.mxu2 %v1248_v9  ;;  %v1552_v47 = vld [vmem:[%s4362_s23 + $0x1f10] sm:$0xff]  ;;  %1773 = vmatpush.msrb.mxu1 %v880_v46  ;;  %v1137_v46 = vld [vmem:[%s4362_s23 + $0x1218] sm:$0xff] }
  0xe1   : > { %1729 = vmatpush.msra.mxu3 %v1455_v7  ;;  %1745 = vmatpush.msra.mxu0 %v752_v10  ;;  %v1104_v48 = vld [vmem:[%s4362_s23 + $0x1110] sm:$0xff]  ;;  %v1281_v7 = vld [vmem:[%s4362_s23 + $0x1698] sm:$0xff] }
  0xe2   : > { %1787 = vmatpush.msra.mxu2 %v1232_v13  ;;  %v608_v49 = vld [vmem:[%s4362_s23 + $0x190] sm:$0xff]  ;;  %1774 = vmatpush.msrb.mxu1 %v864_v50  ;;  %v1041_v10 = vld [vmem:[%s4362_s23 + $0xf18] sm:$0xff] }
  0xe3   : > { %1730 = vmatpush.msra.mxu3 %v1439_v11  ;;  %1746 = vmatpush.msra.mxu0 %v736_v14  ;;  %v1536_v51 = vld [vmem:[%s4362_s23 + $0x1e90] sm:$0xff]  ;;  %v1265_v11 = vld [vmem:[%s4362_s23 + $0x1618] sm:$0xff] }
  0xe4   : > { %1788 = vmatpush.msra.mxu2 %v1216_v17  ;;  %v1088_v52 = vld [vmem:[%s4362_s23 + $0x1090] sm:$0xff]  ;;  %v1025_v14 = vld [vmem:[%s4362_s23 + $0xe98] sm:$0xff] }
  0xe5   : > { %1731 = vmatpush.msra.mxu3 %v1423_v15  ;;  %1747 = vmatpush.msra.mxu0 %v720_v18  ;;  %v592_v53 = vld [vmem:[%s4362_s23 + $0x110] sm:$0xff]  ;;  %v1249_v15 = vld [vmem:[%s4362_s23 + $0x1598] sm:$0xff] }
  0xe6   : > { %1789 = vmatpush.msra.mxu2 %v1200_v21  ;;  %v848_v54 = vld [vmem:[%s4362_s23 + $0x910] sm:$0xff]  ;;  %v1009_v18 = vld [vmem:[%s4362_s23 + $0xe18] sm:$0xff] }
  0xe7   : > { %1732 = vmatpush.msra.mxu3 %v1407_v19  ;;  %1748 = vmatpush.msra.mxu0 %v704_v22  ;;  %v1072_v57 = vld [vmem:[%s4362_s23 + $0x1010] sm:$0xff]  ;;  %v1233_v19 = vld [vmem:[%s4362_s23 + $0x1518] sm:$0xff] }
  0xe8   : > { %1790 = vmatpush.msra.mxu2 %v1184_v25  ;;  %v576_v58 = vld [vmem:[%s4362_s23 + $0x90] sm:$0xff]  ;;  %1775 = vmatpush.msrb.mxu1 %v848_v54  ;;  %v993_v22 = vld [vmem:[%s4362_s23 + $0xd98] sm:$0xff] }
  0xe9   : > { %1733 = vmatpush.msra.mxu3 %v1391_v23  ;;  %1749 = vmatpush.msra.mxu0 %v688_v26  ;;  %v1504_v59 = vld [vmem:[%s4362_s23 + $0x1d90] sm:$0xff]  ;;  %v1217_v23 = vld [vmem:[%s4362_s23 + $0x1498] sm:$0xff] }
  0xea   : > { %1791 = vmatpush.msra.mxu2 %v1168_v29  ;;  %v832_v61 = vld [vmem:[%s4362_s23 + $0x890] sm:$0xff]  ;;  %v977_v26 = vld [vmem:[%s4362_s23 + $0xd18] sm:$0xff] }
  0xeb   : > { %1734 = vmatpush.msra.mxu3 %v1375_v27  ;;  %1750 = vmatpush.msra.mxu0 %v672_v30  ;;  %v1488_v62 = vld [vmem:[%s4362_s23 + $0x1d10] sm:$0xff]  ;;  %v1201_v27 = vld [vmem:[%s4362_s23 + $0x1418] sm:$0xff] }
  0xec   : > { %1792 = vmatpush.msra.mxu2 %v1152_v33  ;;  %v560_v1 = vld [vmem:[%s4362_s23 + $0x10] sm:$0xff]  ;;  %1776 = vmatpush.msrb.mxu1 %v832_v61  ;;  %v961_v30 = vld [vmem:[%s4362_s23 + $0xc98] sm:$0xff] }
  0xed   : > { %1735 = vmatpush.msra.mxu3 %v1359_v31  ;;  %1751 = vmatpush.msra.mxu0 %v656_v34  ;;  %v816_v2 = vld [vmem:[%s4362_s23 + $0x810] sm:$0xff]  ;;  %v1185_v31 = vld [vmem:[%s4362_s23 + $0x1398] sm:$0xff] }
  0xee   : > { %1793 = vmatpush.msra.mxu2 %v1136_v37  ;;  %v1472_v3 = vld [vmem:[%s4362_s23 + $0x1c90] sm:$0xff]  ;;  %1777 = vmatpush.msrb.mxu1 %v816_v2  ;;  %v945_v34 = vld [vmem:[%s4362_s23 + $0xc18] sm:$0xff] }
  0xef   : > { %1736 = vmatpush.msra.mxu3 %v1343_v35  ;;  %1752 = vmatpush.msra.mxu0 %v640_v38  ;;  %v1456_v5 = vld [vmem:[%s4362_s23 + $0x1c10] sm:$0xff]  ;;  %v1169_v35 = vld [vmem:[%s4362_s23 + $0x1318] sm:$0xff] }
  0xf0   : > { %1794 = vmatpush.msra.mxu2 %v1120_v43  ;;  %v1440_v9 = vld [vmem:[%s4362_s23 + $0x1b90] sm:$0xff]  ;;  %1842 = vmatpush.msra.mxu1 %v1057_v6  ;;  %v929_v38 = vld [vmem:[%s4362_s23 + $0xb98] sm:$0xff]  ;;  %v1298_v6 = vld [vmem:[%s4362_s23 + $0x1720] sm:$0xff] }
  0xf1   : > { %1737 = vmatpush.msra.mxu3 %v1327_v39  ;;  %1753 = vmatpush.msra.mxu0 %v624_v45  ;;  %v1424_v13 = vld [vmem:[%s4362_s23 + $0x1b10] sm:$0xff]  ;;  %v1569_v39 = vld [vmem:[%s4362_s23 + $0x1f98] sm:$0xff] }
  0xf2   : > { %1795 = vmatpush.msra.mxu2 %v1104_v48  ;;  %1738 = vmatmul.f32.vlgmr.msra.gmra.mxu3 %v4510_v42  ;;  %v1408_v17 = vld [vmem:[%s4362_s23 + $0x1a90] sm:$0xff]  ;;  %v913_v43 = vld [vmem:[%s4362_s23 + $0xb18] sm:$0xff] }
  0xf3   : > { %1802 = vmatpush.msrb.mxu3 %v1568_v41  ;;  %1754 = vmatpush.msra.mxu0 %v608_v49  ;;  %v1392_v21 = vld [vmem:[%s4362_s23 + $0x1a10] sm:$0xff]  ;;  %v657_v41 = vld [vmem:[%s4362_s23 + $0x318] sm:$0xff] }
  0xf4   : > { %1796 = vmatpush.msra.mxu2 %v1088_v52  ;;  %1843 = vmatpush.msra.mxu1 %v1041_v10  ;;  %v1376_v25 = vld [vmem:[%s4362_s23 + $0x1990] sm:$0xff]  ;;  %v1553_v45 = vld [vmem:[%s4362_s23 + $0x1f18] sm:$0xff]  ;;  %v802_v10 = vld [vmem:[%s4362_s23 + $0x7a0] sm:$0xff] }
  0xf5   : > { %1803 = vmatpush.msrb.mxu3 %v1552_v47  ;;  %1755 = vmatpush.msra.mxu0 %v592_v53  ;;  %v1360_v29 = vld [vmem:[%s4362_s23 + $0x1910] sm:$0xff]  ;;  %v641_v47 = vld [vmem:[%s4362_s23 + $0x298] sm:$0xff] }
  0xf6   : > { %1797 = vmatpush.msra.mxu2 %v1072_v57  ;;  %1844 = vmatpush.msra.mxu1 %v1025_v14  ;;  %v1344_v33 = vld [vmem:[%s4362_s23 + $0x1890] sm:$0xff]  ;;  %v897_v48 = vld [vmem:[%s4362_s23 + $0xa98] sm:$0xff] }
  0xf7   : > { %1804 = vmatpush.msrb.mxu3 %v1536_v51  ;;  %1718 = vmatmul.f32.vlgmr.msrb.gmra.mxu2 %v4449_v55  ;;  %v1328_v37 = vld [vmem:[%s4362_s23 + $0x1810] sm:$0xff]  ;;  %v1537_v49 = vld [vmem:[%s4362_s23 + $0x1e98] sm:$0xff] }
  0xf8   : > { %1756 = vmatpush.msra.mxu0 %v576_v58  ;;  %1862 = vmatpush.msrb.mxu2 %v1313_v60  ;;  %v1121_v50 = vld [vmem:[%s4362_s23 + $0x1198] sm:$0xff] }
  0xf9   : > { %1805 = vmatpush.msrb.mxu3 %v1520_v56  ;;  %1845 = vmatpush.msra.mxu1 %v1009_v18  ;;  %v625_v51 = vld [vmem:[%s4362_s23 + $0x218] sm:$0xff] }
  0xfa   : > { %1863 = vmatpush.msrb.mxu2 %v1297_v0  ;;  %1757 = vmatpush.msra.mxu0 %v560_v1  ;;  %v881_v52 = vld [vmem:[%s4362_s23 + $0xa18] sm:$0xff] }
  0xfb   : > { %1806 = vmatpush.msrb.mxu3 %v1504_v59  ;;  %1846 = vmatpush.msra.mxu1 %v993_v22  ;;  %v1521_v53 = vld [vmem:[%s4362_s23 + $0x1e18] sm:$0xff]  ;;  %v1234_v22 = vld [vmem:[%s4362_s23 + $0x1520] sm:$0xff] }
  0xfc   : > { %1822 = vmatpush.msrb.mxu0 %v801_v4  ;;  %1864 = vmatpush.msrb.mxu2 %v1281_v7  ;;  %v1105_v54 = vld [vmem:[%s4362_s23 + $0x1118] sm:$0xff] }
  0xfd   : > { %1807 = vmatpush.msrb.mxu3 %v1488_v62  ;;  %1847 = vmatpush.msra.mxu1 %v977_v26  ;;  %v609_v56 = vld [vmem:[%s4362_s23 + $0x198] sm:$0xff]  ;;  %v1218_v26 = vld [vmem:[%s4362_s23 + $0x14a0] sm:$0xff] }
  0xfe   : > { %1823 = vmatpush.msrb.mxu0 %v785_v8  ;;  %1865 = vmatpush.msrb.mxu2 %v1265_v11  ;;  %v865_v57 = vld [vmem:[%s4362_s23 + $0x998] sm:$0xff]  ;;  %v1058_v11 = vld [vmem:[%s4362_s23 + $0xfa0] sm:$0xff] }
  0xff   : > { %1808 = vmatpush.msrb.mxu3 %v1472_v3  ;;  %1848 = vmatpush.msra.mxu1 %v961_v30  ;;  %v1505_v58 = vld [vmem:[%s4362_s23 + $0x1d98] sm:$0xff]  ;;  %v1314_v3 = vld [vmem:[%s4362_s23 + $0x17a0] sm:$0xff] }
 0x100   : > { %1824 = vmatpush.msrb.mxu0 %v769_v12  ;;  %1866 = vmatpush.msrb.mxu2 %v1249_v15  ;;  %v1089_v59 = vld [vmem:[%s4362_s23 + $0x1098] sm:$0xff]  ;;  %v1282_v12 = vld [vmem:[%s4362_s23 + $0x16a0] sm:$0xff] }
 0x101   : > { %1809 = vmatpush.msrb.mxu3 %v1456_v5  ;;  %1849 = vmatpush.msra.mxu1 %v945_v34  ;;  %v593_v60 = vld [vmem:[%s4362_s23 + $0x118] sm:$0xff]  ;;  %v1042_v15 = vld [vmem:[%s4362_s23 + $0xf20] sm:$0xff] }
 0x102   : > { %1825 = vmatpush.msrb.mxu0 %v753_v16  ;;  %1867 = vmatpush.msrb.mxu2 %v1233_v19  ;;  %v849_v61 = vld [vmem:[%s4362_s23 + $0x918] sm:$0xff]  ;;  %v1266_v16 = vld [vmem:[%s4362_s23 + $0x1620] sm:$0xff] }
 0x103   : > { %1810 = vmatpush.msrb.mxu3 %v1440_v9  ;;  %1850 = vmatpush.msra.mxu1 %v929_v38  ;;  %v1489_v62 = vld [vmem:[%s4362_s23 + $0x1d18] sm:$0xff]  ;;  %v1250_v19 = vld [vmem:[%s4362_s23 + $0x15a0] sm:$0xff] }
 0x104   : > { %1826 = vmatpush.msrb.mxu0 %v737_v20  ;;  %1868 = vmatpush.msrb.mxu2 %v1217_v23  ;;  %v1073_v0 = vld [vmem:[%s4362_s23 + $0x1018] sm:$0xff]  ;;  %v738_v23 = vld [vmem:[%s4362_s23 + $0x5a0] sm:$0xff] }
 0x105   : > { %1811 = vmatpush.msrb.mxu3 %v1424_v13  ;;  %1851 = vmatpush.msra.mxu1 %v913_v43  ;;  %v577_v1 = vld [vmem:[%s4362_s23 + $0x98] sm:$0xff]  ;;  %v786_v13 = vld [vmem:[%s4362_s23 + $0x720] sm:$0xff] }
 0x106   : > { %1827 = vmatpush.msrb.mxu0 %v721_v24  ;;  %1869 = vmatpush.msrb.mxu2 %v1201_v27  ;;  %v1473_v2 = vld [vmem:[%s4362_s23 + $0x1c98] sm:$0xff]  ;;  %v722_v27 = vld [vmem:[%s4362_s23 + $0x520] sm:$0xff] }
 0x107   : > { %1812 = vmatpush.msrb.mxu3 %v1408_v17  ;;  %1852 = vmatpush.msra.mxu1 %v897_v48  ;;  %v833_v4 = vld [vmem:[%s4362_s23 + $0x898] sm:$0xff]  ;;  %v770_v17 = vld [vmem:[%s4362_s23 + $0x6a0] sm:$0xff] }
 0x108   : > { %1828 = vmatpush.msrb.mxu0 %v705_v28  ;;  %1870 = vmatpush.msrb.mxu2 %v1185_v31  ;;  %v1457_v5 = vld [vmem:[%s4362_s23 + $0x1c18] sm:$0xff]  ;;  %v1202_v30 = vld [vmem:[%s4362_s23 + $0x1420] sm:$0xff] }
 0x109   : > { %1813 = vmatpush.msrb.mxu3 %v1392_v21  ;;  %1853 = vmatpush.msra.mxu1 %v881_v52  ;;  %v561_v7 = vld [vmem:[%s4362_s23 + $0x18] sm:$0xff]  ;;  %v1010_v21 = vld [vmem:[%s4362_s23 + $0xe20] sm:$0xff] }
 0x10a   : > { %1829 = vmatpush.msrb.mxu0 %v689_v32  ;;  %1871 = vmatpush.msrb.mxu2 %v1169_v35  ;;  %v817_v8 = vld [vmem:[%s4362_s23 + $0x818] sm:$0xff]  ;;  %v706_v31 = vld [vmem:[%s4362_s23 + $0x4a0] sm:$0xff] }
 0x10b   : > { %1814 = vmatpush.msrb.mxu3 %v1376_v25  ;;  %1854 = vmatpush.msra.mxu1 %v865_v57  ;;  %v1441_v9 = vld [vmem:[%s4362_s23 + $0x1b98] sm:$0xff]  ;;  %v994_v25 = vld [vmem:[%s4362_s23 + $0xda0] sm:$0xff] }
 0x10c   : > { %1830 = vmatpush.msrb.mxu0 %v673_v36  ;;  %1872 = vmatpush.msrb.mxu2 %v1153_v40  ;;  %v1409_v14 = vld [vmem:[%s4362_s23 + $0x1a98] sm:$0xff]  ;;  %v1570_v34 = vld [vmem:[%s4362_s23 + $0x1fa0] sm:$0xff] }
 0x10d   : > { %1815 = vmatpush.msrb.mxu3 %v1360_v29  ;;  %1855 = vmatpush.msra.mxu1 %v849_v61  ;;  %v1393_v18 = vld [vmem:[%s4362_s23 + $0x1a18] sm:$0xff]  ;;  %v978_v29 = vld [vmem:[%s4362_s23 + $0xd20] sm:$0xff] }
 0x10e   : > { %1831 = vmatpush.msrb.mxu0 %v657_v41  ;;  %1873 = vmatpush.msrb.mxu2 %v1137_v46  ;;  %v1377_v20 = vld [vmem:[%s4362_s23 + $0x1998] sm:$0xff]  ;;  %v1186_v35 = vld [vmem:[%s4362_s23 + $0x13a0] sm:$0xff] }
 0x10f   : > { %1816 = vmatpush.msrb.mxu3 %v1344_v33  ;;  %1798 = vmatmul.f32.vlgmr.msra.gmra.mxu2 %v4449_v55  ;;  %v1425_v55 = vld [vmem:[%s4362_s23 + $0x1b18] sm:$0xff]  ;;  %v962_v33 = vld [vmem:[%s4362_s23 + $0xca0] sm:$0xff] }
 0x110   : > { %1832 = vmatpush.msrb.mxu0 %v641_v47  ;;  %1874 = vmatpush.msrb.mxu2 %v1121_v50  ;;  %v1361_v24 = vld [vmem:[%s4362_s23 + $0x1918] sm:$0xff]  ;;  %v690_v36 = vld [vmem:[%s4362_s23 + $0x420] sm:$0xff] }
 0x111   : > { %1817 = vmatpush.msrb.mxu3 %v1328_v37  ;;  %1856 = vmatpush.msra.mxu1 %v833_v4  ;;  %v1345_v28 = vld [vmem:[%s4362_s23 + $0x1898] sm:$0xff]  ;;  %v946_v37 = vld [vmem:[%s4362_s23 + $0xc20] sm:$0xff] }
 0x112   : > { %1833 = vmatpush.msrb.mxu0 %v625_v51  ;;  %1875 = vmatpush.msrb.mxu2 %v1105_v54  ;;  %v1329_v32 = vld [vmem:[%s4362_s23 + $0x1818] sm:$0xff]  ;;  %v1554_v38 = vld [vmem:[%s4362_s23 + $0x1f20] sm:$0xff] }
 0x113   : > { %1882 = vmatpush.msra.mxu3 %v1569_v39  ;;  %1857 = vmatpush.msra.mxu1 %v817_v8  ;;  %v1170_v39 = vld [vmem:[%s4362_s23 + $0x1320] sm:$0xff] }
 0x114   : > { %1834 = vmatpush.msrb.mxu0 %v609_v56  ;;  %1876 = vmatpush.msrb.mxu2 %v1089_v59  ;;  %v674_v40 = vld [vmem:[%s4362_s23 + $0x3a0] sm:$0xff] }
 0x115   : > { %1883 = vmatpush.msra.mxu3 %v1553_v45  ;;  %1758 = vmatmul.f32.vlgmr.msra.gmra.mxu0 %v4462_v63  ;;  %v1026_v63 = vld [vmem:[%s4362_s23 + $0xea0] sm:$0xff] }
 0x116   : > { %1835 = vmatpush.msrb.mxu0 %v593_v60  ;;  %1877 = vmatpush.msrb.mxu2 %v1073_v0  ;;  %v930_v41 = vld [vmem:[%s4362_s23 + $0xba0] sm:$0xff] }
 0x117   : > { %1884 = vmatpush.msra.mxu3 %v1537_v49  ;;  %1778 = vmatmul.f32.vlgmr.msrb.gmra.mxu1 %v4433_v44  ;;  %v754_v44 = vld [vmem:[%s4362_s23 + $0x620] sm:$0xff] }
 0x118   : > { %1836 = vmatpush.msrb.mxu0 %v577_v1  ;;  %1942 = vmatpush.msra.mxu2 %v1314_v3  ;;  %v1538_v43 = vld [vmem:[%s4362_s23 + $0x1ea0] sm:$0xff] }
 0x119   : > { %1885 = vmatpush.msra.mxu3 %v1521_v53  ;;  %1922 = vmatpush.msrb.mxu1 %v1058_v11  ;;  %v1154_v45 = vld [vmem:[%s4362_s23 + $0x12a0] sm:$0xff] }
 0x11a   : > { %1818 = vmatmul.f32.vlgmr.msrb.gmra.mxu3 %v4510_v42  ;;  %1943 = vmatpush.msra.mxu2 %v1298_v6  ;;  %v658_v46 = vld [vmem:[%s4362_s23 + $0x320] sm:$0xff] }
 0x11b   : > { %1886 = vmatpush.msra.mxu3 %v1505_v58  ;;  %1837 = vmatpush.msrb.mxu0 %v561_v7  ;;  %v914_v47 = vld [vmem:[%s4362_s23 + $0xb20] sm:$0xff] }
 0x11c   : > { %1944 = vmatpush.msra.mxu2 %v1282_v12  ;;  %1923 = vmatpush.msrb.mxu1 %v1042_v15  ;;  %v1522_v48 = vld [vmem:[%s4362_s23 + $0x1e20] sm:$0xff] }
 0x11d   : > { %1887 = vmatpush.msra.mxu3 %v1489_v62  ;;  %1902 = vmatpush.msra.mxu0 %v802_v10  ;;  %v1138_v49 = vld [vmem:[%s4362_s23 + $0x1220] sm:$0xff] }
 0x11e   : > { %1945 = vmatpush.msra.mxu2 %v1266_v16  ;;  %1924 = vmatpush.msrb.mxu1 %v1026_v63  ;;  %v642_v50 = vld [vmem:[%s4362_s23 + $0x2a0] sm:$0xff] }
 0x11f   : > { %1888 = vmatpush.msra.mxu3 %v1473_v2  ;;  %1903 = vmatpush.msra.mxu0 %v786_v13  ;;  %v898_v51 = vld [vmem:[%s4362_s23 + $0xaa0] sm:$0xff]  ;;  %v4736_v13 = vld [vmem:[%s5878_s0 + $0x10] sm:$0xff] }
 0x120   : > { %1946 = vmatpush.msra.mxu2 %v1250_v19  ;;  %1925 = vmatpush.msrb.mxu1 %v1010_v21  ;;  %v1506_v52 = vld [vmem:[%s4362_s23 + $0x1da0] sm:$0xff]  ;;  %v1059_v19 = vld [vmem:[%s4362_s23 + $0xfa8] sm:$0xff] }
 0x121   : > { %1889 = vmatpush.msra.mxu3 %v1457_v5  ;;  %1904 = vmatpush.msra.mxu0 %v770_v17  ;;  %v1122_v53 = vld [vmem:[%s4362_s23 + $0x11a0] sm:$0xff] }
 0x122   : > { %1947 = vmatpush.msra.mxu2 %v1234_v22  ;;  %1926 = vmatpush.msrb.mxu1 %v994_v25  ;;  %v626_v54 = vld [vmem:[%s4362_s23 + $0x220] sm:$0xff]  ;;  %v4759_v22 = vld [vmem:[%s5878_s0 + $0x8] sm:$0xff] }
 0x123   : > { %1890 = vmatpush.msra.mxu3 %v1441_v9  ;;  %1905 = vmatpush.msra.mxu0 %v754_v44  ;;  %v882_v56 = vld [vmem:[%s4362_s23 + $0xa20] sm:$0xff]  ;;  %v1315_v9 = vld [vmem:[%s4362_s23 + $0x17a8] sm:$0xff] }
 0x124   : > { %1948 = vmatpush.msra.mxu2 %v1218_v26  ;;  %1927 = vmatpush.msrb.mxu1 %v978_v29  ;;  %v1490_v57 = vld [vmem:[%s4362_s23 + $0x1d20] sm:$0xff]  ;;  %v771_v25 = vld [vmem:[%s4362_s23 + $0x6a8] sm:$0xff] }
 0x125   : > { %1891 = vmatpush.msra.mxu3 %v1425_v55  ;;  %1906 = vmatpush.msra.mxu0 %v738_v23  ;;  %v1106_v58 = vld [vmem:[%s4362_s23 + $0x1120] sm:$0xff]  ;;  %v1043_v23 = vld [vmem:[%s4362_s23 + $0xf28] sm:$0xff] }
 0x126   : > { %1949 = vmatpush.msra.mxu2 %v1202_v30  ;;  %1928 = vmatpush.msrb.mxu1 %v962_v33  ;;  %v610_v59 = vld [vmem:[%s4362_s23 + $0x1a0] sm:$0xff]  ;;  %v755_v29 = vld [vmem:[%s4362_s23 + $0x628] sm:$0xff] }
 0x127   : > { %1892 = vmatpush.msra.mxu3 %v1409_v14  ;;  %1907 = vmatpush.msra.mxu0 %v722_v27  ;;  %v866_v60 = vld [vmem:[%s4362_s23 + $0x9a0] sm:$0xff]  ;;  %v1299_v14 = vld [vmem:[%s4362_s23 + $0x1728] sm:$0xff] }
 0x128   : > { %1950 = vmatpush.msra.mxu2 %v1186_v35  ;;  %1929 = vmatpush.msrb.mxu1 %v946_v37  ;;  %v1474_v61 = vld [vmem:[%s4362_s23 + $0x1ca0] sm:$0xff]  ;;  %v1027_v27 = vld [vmem:[%s4362_s23 + $0xea8] sm:$0xff] }
 0x129   : > { %1893 = vmatpush.msra.mxu3 %v1393_v18  ;;  %1908 = vmatpush.msra.mxu0 %v706_v31  ;;  %v1090_v62 = vld [vmem:[%s4362_s23 + $0x10a0] sm:$0xff]  ;;  %v803_v18 = vld [vmem:[%s4362_s23 + $0x7a8] sm:$0xff] }
 0x12a   : > { %1951 = vmatpush.msra.mxu2 %v1170_v39  ;;  %1930 = vmatpush.msrb.mxu1 %v930_v41  ;;  %v594_v0 = vld [vmem:[%s4362_s23 + $0x120] sm:$0xff]  ;;  %v1011_v31 = vld [vmem:[%s4362_s23 + $0xe28] sm:$0xff] }
 0x12b   : > { %1894 = vmatpush.msra.mxu3 %v1377_v20  ;;  %1909 = vmatpush.msra.mxu0 %v690_v36  ;;  %v850_v1 = vld [vmem:[%s4362_s23 + $0x920] sm:$0xff]  ;;  %v787_v20 = vld [vmem:[%s4362_s23 + $0x728] sm:$0xff] }
 0x12c   : > { %1952 = vmatpush.msra.mxu2 %v1154_v45  ;;  %1931 = vmatpush.msrb.mxu1 %v914_v47  ;;  %v1458_v2 = vld [vmem:[%s4362_s23 + $0x1c20] sm:$0xff]  ;;  %v739_v33 = vld [vmem:[%s4362_s23 + $0x5a8] sm:$0xff] }
 0x12d   : > { %1895 = vmatpush.msra.mxu3 %v1361_v24  ;;  %1910 = vmatpush.msra.mxu0 %v674_v40  ;;  %v1074_v3 = vld [vmem:[%s4362_s23 + $0x1020] sm:$0xff]  ;;  %v1267_v24 = vld [vmem:[%s4362_s23 + $0x1628] sm:$0xff] }
 0x12e   : > { %1953 = vmatpush.msra.mxu2 %v1138_v49  ;;  %1932 = vmatpush.msrb.mxu1 %v898_v51  ;;  %v578_v6 = vld [vmem:[%s4362_s23 + $0xa0] sm:$0xff]  ;;  %v995_v35 = vld [vmem:[%s4362_s23 + $0xda8] sm:$0xff] }
 0x12f   : > { %1896 = vmatpush.msra.mxu3 %v1345_v28  ;;  %1911 = vmatpush.msra.mxu0 %v658_v46  ;;  %v1442_v8 = vld [vmem:[%s4362_s23 + $0x1ba0] sm:$0xff]  ;;  %v1251_v28 = vld [vmem:[%s4362_s23 + $0x15a8] sm:$0xff] }
 0x130   : > { %1954 = vmatpush.msra.mxu2 %v1122_v53  ;;  %1933 = vmatpush.msrb.mxu1 %v882_v56  ;;  %v834_v55 = vld [vmem:[%s4362_s23 + $0x8a0] sm:$0xff]  ;;  %v1571_v36 = vld [vmem:[%s4362_s23 + $0x1fa8] sm:$0xff] }
 0x131   : > { %1897 = vmatpush.msra.mxu3 %v1329_v32  ;;  %1912 = vmatpush.msra.mxu0 %v642_v50  ;;  %v1619_v4 = vpop.f32.mrf.mxu3  ;;  %v1426_v12 = vld [vmem:[%s4362_s23 + $0x1b20] sm:$0xff]  ;;  %v1235_v32 = vld [vmem:[%s4362_s23 + $0x1528] sm:$0xff] }
 0x132   : > { %1955 = vmatpush.msra.mxu2 %v1106_v58  ;;  %1934 = vmatpush.msrb.mxu1 %v866_v60  ;;  %v562_v15 = vld [vmem:[%s4362_s23 + $0x20] sm:$0xff]  ;;  %v1219_v37 = vld [vmem:[%s4362_s23 + $0x14a8] sm:$0xff] }
 0x133   : > { %1962 = vmatpush.msrb.mxu3 %v1570_v34  ;;  %1913 = vmatpush.msra.mxu0 %v626_v54  ;;  %v818_v16 = vld [vmem:[%s4362_s23 + $0x820] sm:$0xff]  ;;  %v979_v39 = vld [vmem:[%s4362_s23 + $0xd28] sm:$0xff] }
 0x134   : > { %1956 = vmatpush.msra.mxu2 %v1090_v62  ;;  %1935 = vmatpush.msrb.mxu1 %v850_v1  ;;  %v1410_v17 = vld [vmem:[%s4362_s23 + $0x1aa0] sm:$0xff]  ;;  %v1555_v40 = vld [vmem:[%s4362_s23 + $0x1f28] sm:$0xff] }
 0x135   : > { %1963 = vmatpush.msrb.mxu3 %v1554_v38  ;;  %1914 = vmatpush.msra.mxu0 %v610_v59  ;;  %v1394_v63 = vld [vmem:[%s4362_s23 + $0x1a20] sm:$0xff]  ;;  %v723_v38 = vld [vmem:[%s4362_s23 + $0x528] sm:$0xff] }
 0x136   : > { %1957 = vmatpush.msra.mxu2 %v1074_v3  ;;  %1936 = vmatpush.msrb.mxu1 %v834_v55  ;;  %v4750_v44 = vld [vmem:[%s5878_s0] sm:$0xff]  ;;  %v1203_v41 = vld [vmem:[%s4362_s23 + $0x1428] sm:$0xff] }
 0x137   : > { %1964 = vmatpush.msrb.mxu3 %v1538_v43  ;;  %1915 = vmatpush.msra.mxu0 %v594_v0  ;;  %v1378_v21 = vld [vmem:[%s4362_s23 + $0x19a0] sm:$0xff]  ;;  %v707_v43 = vld [vmem:[%s4362_s23 + $0x4a8] sm:$0xff] }
 0x138   : > { %1878 = vmatmul.f32.vlgmr.msrb.gmra.mxu2 %v4736_v13  ;;  %1898 = vmatmul.f32.vlgmr.msra.gmra.mxu3 %v4510_v42  ;;  %v1283_v42 = vld [vmem:[%s4362_s23 + $0x16a8] sm:$0xff]  ;;  %v1362_v26 = vld [vmem:[%s4362_s23 + $0x1920] sm:$0xff] }
 0x139   : > { %1965 = vmatpush.msrb.mxu3 %v1522_v48  ;;  %1916 = vmatpush.msra.mxu0 %v578_v6  ;;  %v1346_v30 = vld [vmem:[%s4362_s23 + $0x18a0] sm:$0xff]  ;;  %v963_v45 = vld [vmem:[%s4362_s23 + $0xca8] sm:$0xff] }
 0x13a   : > { %v1599_v5 = vpop.f32.mrf.mxu0  ;;  %v1639_v10 = vpop.f32.mrf.mxu2  ;;  %2022 = vmatpush.msrb.mxu2 %v1315_v9  ;;  %1937 = vmatpush.msrb.mxu1 %v818_v16  ;;  %v1330_v34 = vld [vmem:[%s4362_s23 + $0x1820] sm:$0xff]  ;;  %v1539_v46 = vld [vmem:[%s4362_s23 + $0x1ea8] sm:$0xff] }
 0x13b   : > { %1966 = vmatpush.msrb.mxu3 %v1506_v52  ;;  %v1620_v7 = vadd.f32 %v1619_v4, %v1599_v5  ;;  %1917 = vmatpush.msra.mxu0 %v562_v15  ;;  %v1187_v47 = vld [vmem:[%s4362_s23 + $0x13a8] sm:$0xff] }
 0x13c   : > { %2023 = vmatpush.msrb.mxu2 %v1299_v14  ;;  %1838 = vmatmul.f32.vlgmr.msrb.gmra.mxu0 %v4750_v44  ;;  %v691_v48 = vld [vmem:[%s4362_s23 + $0x428] sm:$0xff] }
 0x13d   : > { %1967 = vmatpush.msrb.mxu3 %v1490_v57  ;;  %v4730_v11 = vadd.f32 %v1639_v10, %v1620_v7  ;;  %1858 = vmatmul.f32.vlgmr.msra.gmra.mxu1 %v4759_v22  ;;  %v947_v49 = vld [vmem:[%s4362_s23 + $0xc28] sm:$0xff] }
 0x13e   : > { %1982 = vmatpush.msrb.mxu0 %v803_v18  ;;  %2002 = vmatpush.msra.mxu1 %v1059_v19  ;;  %v1523_v50 = vld [vmem:[%s4362_s23 + $0x1e28] sm:$0xff]  ;;  %v1316_v18 = vld [vmem:[%s4362_s23 + $0x17b0] sm:$0xff] }
 0x13f   : > { %1968 = vmatpush.msrb.mxu3 %v1474_v61  ;;  %2024 = vmatpush.msrb.mxu2 %v1283_v42  ;;  %v1171_v51 = vld [vmem:[%s4362_s23 + $0x1328] sm:$0xff]  ;;  %v1300_v42 = vld [vmem:[%s4362_s23 + $0x1730] sm:$0xff] }
 0x140   : > { %1983 = vmatpush.msrb.mxu0 %v787_v20  ;;  %2003 = vmatpush.msra.mxu1 %v1043_v23  ;;  %v675_v52 = vld [vmem:[%s4362_s23 + $0x3a8] sm:$0xff] }
 0x141   : > { %1969 = vmatpush.msrb.mxu3 %v1458_v2  ;;  %2025 = vmatpush.msrb.mxu2 %v1267_v24  ;;  %v931_v53 = vld [vmem:[%s4362_s23 + $0xba8] sm:$0xff]  ;;  %v4829_v24 = vld [vmem:[%s5878_s0 + $0x18] sm:$0xff] }
 0x142   : > { %1984 = vmatpush.msrb.mxu0 %v771_v25  ;;  %2004 = vmatpush.msra.mxu1 %v1027_v27  ;;  %v1507_v54 = vld [vmem:[%s4362_s23 + $0x1da8] sm:$0xff]  ;;  %v804_v25 = vld [vmem:[%s4362_s23 + $0x7b0] sm:$0xff] }
 0x143   : > { %1970 = vmatpush.msrb.mxu3 %v1442_v8  ;;  %2026 = vmatpush.msrb.mxu2 %v1251_v28  ;;  %v1155_v56 = vld [vmem:[%s4362_s23 + $0x12a8] sm:$0xff]  ;;  %v1060_v27 = vld [vmem:[%s4362_s23 + $0xfb0] sm:$0xff] }
 0x144   : > { %1985 = vmatpush.msrb.mxu0 %v755_v29  ;;  %2005 = vmatpush.msra.mxu1 %v1011_v31  ;;  %v659_v57 = vld [vmem:[%s4362_s23 + $0x328] sm:$0xff]  ;;  %v1284_v28 = vld [vmem:[%s4362_s23 + $0x16b0] sm:$0xff] }
 0x145   : > { %1971 = vmatpush.msrb.mxu3 %v1426_v12  ;;  %2027 = vmatpush.msrb.mxu2 %v1235_v32  ;;  %v915_v58 = vld [vmem:[%s4362_s23 + $0xb28] sm:$0xff]  ;;  %v788_v29 = vld [vmem:[%s4362_s23 + $0x730] sm:$0xff] }
 0x146   : > { %1986 = vmatpush.msrb.mxu0 %v739_v33  ;;  %2006 = vmatpush.msra.mxu1 %v995_v35  ;;  %v1491_v59 = vld [vmem:[%s4362_s23 + $0x1d28] sm:$0xff]  ;;  %v1044_v31 = vld [vmem:[%s4362_s23 + $0xf30] sm:$0xff] }
 0x147   : > { %1972 = vmatpush.msrb.mxu3 %v1410_v17  ;;  %2028 = vmatpush.msrb.mxu2 %v1219_v37  ;;  %v1139_v60 = vld [vmem:[%s4362_s23 + $0x1228] sm:$0xff]  ;;  %v1268_v32 = vld [vmem:[%s4362_s23 + $0x1630] sm:$0xff] }
 0x148   : > { %1987 = vmatpush.msrb.mxu0 %v723_v38  ;;  %2007 = vmatpush.msra.mxu1 %v979_v39  ;;  %v643_v62 = vld [vmem:[%s4362_s23 + $0x2a8] sm:$0xff]  ;;  %v772_v33 = vld [vmem:[%s4362_s23 + $0x6b0] sm:$0xff] }
 0x149   : > { %1973 = vmatpush.msrb.mxu3 %v1394_v63  ;;  %2029 = vmatpush.msrb.mxu2 %v1203_v41  ;;  %v899_v0 = vld [vmem:[%s4362_s23 + $0xaa8] sm:$0xff]  ;;  %v1028_v35 = vld [vmem:[%s4362_s23 + $0xeb0] sm:$0xff] }
 0x14a   : > { %1988 = vmatpush.msrb.mxu0 %v707_v43  ;;  %2008 = vmatpush.msra.mxu1 %v963_v45  ;;  %v1475_v2 = vld [vmem:[%s4362_s23 + $0x1ca8] sm:$0xff]  ;;  %v1252_v37 = vld [vmem:[%s4362_s23 + $0x15b0] sm:$0xff] }
 0x14b   : > { %1974 = vmatpush.msrb.mxu3 %v1378_v21  ;;  %2030 = vmatpush.msrb.mxu2 %v1187_v47  ;;  %v1123_v3 = vld [vmem:[%s4362_s23 + $0x11a8] sm:$0xff]  ;;  %v756_v38 = vld [vmem:[%s4362_s23 + $0x630] sm:$0xff] }
 0x14c   : > { %1989 = vmatpush.msrb.mxu0 %v691_v48  ;;  %2009 = vmatpush.msra.mxu1 %v947_v49  ;;  %v627_v4 = vld [vmem:[%s4362_s23 + $0x228] sm:$0xff]  ;;  %v1012_v39 = vld [vmem:[%s4362_s23 + $0xe30] sm:$0xff] }
 0x14d   : > { %1975 = vmatpush.msrb.mxu3 %v1362_v26  ;;  %2031 = vmatpush.msrb.mxu2 %v1171_v51  ;;  %v883_v5 = vld [vmem:[%s4362_s23 + $0xa28] sm:$0xff]  ;;  %v1236_v41 = vld [vmem:[%s4362_s23 + $0x1530] sm:$0xff] }
 0x14e   : > { %1990 = vmatpush.msrb.mxu0 %v675_v52  ;;  %2010 = vmatpush.msra.mxu1 %v931_v53  ;;  %v1459_v6 = vld [vmem:[%s4362_s23 + $0x1c28] sm:$0xff]  ;;  %v740_v43 = vld [vmem:[%s4362_s23 + $0x5b0] sm:$0xff] }
 0x14f   : > { %1976 = vmatpush.msrb.mxu3 %v1346_v30  ;;  %2032 = vmatpush.msrb.mxu2 %v1155_v56  ;;  %v1107_v7 = vld [vmem:[%s4362_s23 + $0x1128] sm:$0xff]  ;;  %v996_v45 = vld [vmem:[%s4362_s23 + $0xdb0] sm:$0xff] }
 0x150   : > { %1991 = vmatpush.msrb.mxu0 %v659_v57  ;;  %2011 = vmatpush.msra.mxu1 %v915_v58  ;;  %v611_v8 = vld [vmem:[%s4362_s23 + $0x1a8] sm:$0xff]  ;;  %v1220_v47 = vld [vmem:[%s4362_s23 + $0x14b0] sm:$0xff] }
 0x151   : > { %1977 = vmatpush.msrb.mxu3 %v1330_v34  ;;  %2033 = vmatpush.msrb.mxu2 %v1139_v60  ;;  %v867_v9 = vld [vmem:[%s4362_s23 + $0x9a8] sm:$0xff]  ;;  %v724_v48 = vld [vmem:[%s4362_s23 + $0x530] sm:$0xff] }
 0x152   : > { %1992 = vmatpush.msrb.mxu0 %v643_v62  ;;  %2012 = vmatpush.msra.mxu1 %v899_v0  ;;  %v1443_v10 = vld [vmem:[%s4362_s23 + $0x1ba8] sm:$0xff]  ;;  %v980_v49 = vld [vmem:[%s4362_s23 + $0xd30] sm:$0xff] }
 0x153   : > { %2042 = vmatpush.msra.mxu3 %v1571_v36  ;;  %2034 = vmatpush.msrb.mxu2 %v1123_v3  ;;  %v1091_v55 = vld [vmem:[%s4362_s23 + $0x10a8] sm:$0xff]  ;;  %v1572_v36 = vld [vmem:[%s4362_s23 + $0x1fb0] sm:$0xff] }
 0x154   : > { %1993 = vmatpush.msrb.mxu0 %v627_v4  ;;  %2013 = vmatpush.msra.mxu1 %v883_v5  ;;  %v851_v12 = vld [vmem:[%s4362_s23 + $0x928] sm:$0xff]  ;;  %v1204_v51 = vld [vmem:[%s4362_s23 + $0x1430] sm:$0xff] }
 0x155   : > { %2043 = vmatpush.msra.mxu3 %v1555_v40  ;;  %v1659_v61 = vpop.f32.mrf.mxu3  ;;  %2035 = vmatpush.msrb.mxu2 %v1107_v7  ;;  %v1427_v14 = vld [vmem:[%s4362_s23 + $0x1b28] sm:$0xff]  ;;  %v1556_v40 = vld [vmem:[%s4362_s23 + $0x1f30] sm:$0xff] }
 0x156   : > { %v4800_v1 = vadd.f32 %v1659_v61, %v4730_v11  ;;  %v595_v11 = vld [vmem:[%s4362_s23 + $0x128] sm:$0xff]  ;;  %1994 = vmatpush.msrb.mxu0 %v611_v8  ;;  %2014 = vmatpush.msra.mxu1 %v867_v9  ;;  %v708_v52 = vld [vmem:[%s4362_s23 + $0x4b0] sm:$0xff] }
 0x157   : > { %2044 = vmatpush.msra.mxu3 %v1539_v46  ;;  %v1075_v15 = vld [vmem:[%s4362_s23 + $0x1028] sm:$0xff]  ;;  %2036 = vmatpush.msrb.mxu2 %v1091_v55  ;;  %v1540_v46 = vld [vmem:[%s4362_s23 + $0x1eb0] sm:$0xff] }
 0x158   : > { %v579_v16 = vld [vmem:[%s4362_s23 + $0xa8] sm:$0xff]  ;;  %1995 = vmatpush.msrb.mxu0 %v595_v11  ;;  %2015 = vmatpush.msra.mxu1 %v851_v12  ;;  %v964_v53 = vld [vmem:[%s4362_s23 + $0xcb0] sm:$0xff] }
 0x159   : > { %2045 = vmatpush.msra.mxu3 %v1523_v50  ;;  %v1411_v17 = vld [vmem:[%s4362_s23 + $0x1aa8] sm:$0xff]  ;;  %2037 = vmatpush.msrb.mxu2 %v1075_v15  ;;  %v1524_v50 = vld [vmem:[%s4362_s23 + $0x1e30] sm:$0xff]  ;;  %v1679_v55 = vpop.f32.mrf.mxu0 }
 0x15a   : > { %v835_v63 = vld [vmem:[%s4362_s23 + $0x8a8] sm:$0xff]  ;;  %1958 = vmatmul.f32.vlgmr.msra.gmra.mxu2 %v4736_v13  ;;  %1996 = vmatpush.msrb.mxu0 %v579_v16  ;;  %v1188_v56 = vld [vmem:[%s4362_s23 + $0x13b0] sm:$0xff] }
 0x15b   : > { %2046 = vmatpush.msra.mxu3 %v1507_v54  ;;  %v1395_v19 = vld [vmem:[%s4362_s23 + $0x1a28] sm:$0xff]  ;;  %2102 = vmatpush.msra.mxu2 %v1316_v18  ;;  %v1508_v54 = vld [vmem:[%s4362_s23 + $0x1db0] sm:$0xff] }
 0x15c   : > { %v563_v20 = vld [vmem:[%s4362_s23 + $0x28] sm:$0xff]  ;;  %2016 = vmatpush.msra.mxu1 %v835_v63  ;;  %1978 = vmatmul.f32.vlgmr.msrb.gmra.mxu3 %v4829_v24  ;;  %v692_v57 = vld [vmem:[%s4362_s23 + $0x430] sm:$0xff] }
 0x15d   : > { %2047 = vmatpush.msra.mxu3 %v1491_v59  ;;  %v819_v21 = vld [vmem:[%s4362_s23 + $0x828] sm:$0xff]  ;;  %2103 = vmatpush.msra.mxu2 %v1300_v42  ;;  %v948_v58 = vld [vmem:[%s4362_s23 + $0xc30] sm:$0xff] }
 0x15e   : > { %v1379_v23 = vld [vmem:[%s4362_s23 + $0x19a8] sm:$0xff]  ;;  %1997 = vmatpush.msrb.mxu0 %v563_v20  ;;  %2017 = vmatpush.msra.mxu1 %v819_v21  ;;  %v1492_v59 = vld [vmem:[%s4362_s23 + $0x1d30] sm:$0xff] }
 0x15f   : > { %2048 = vmatpush.msra.mxu3 %v1475_v2  ;;  %v1363_v26 = vld [vmem:[%s4362_s23 + $0x1928] sm:$0xff]  ;;  %1918 = vmatmul.f32.vlgmr.msra.gmra.mxu0 %v4750_v44  ;;  %v1172_v60 = vld [vmem:[%s4362_s23 + $0x1330] sm:$0xff] }
 0x160   : > { %v1347_v30 = vld [vmem:[%s4362_s23 + $0x18a8] sm:$0xff]  ;;  %1938 = vmatmul.f32.vlgmr.msrb.gmra.mxu1 %v4759_v22  ;;  %2062 = vmatpush.msra.mxu0 %v804_v25  ;;  %v676_v61 = vld [vmem:[%s4362_s23 + $0x3b0] sm:$0xff] }
 0x161   : > { %2049 = vmatpush.msra.mxu3 %v1459_v6  ;;  %2082 = vmatpush.msrb.mxu1 %v1060_v27  ;;  %v1331_v34 = vld [vmem:[%s4362_s23 + $0x1828] sm:$0xff]  ;;  %v932_v62 = vld [vmem:[%s4362_s23 + $0xbb0] sm:$0xff] }
 0x162   : > { %2104 = vmatpush.msra.mxu2 %v1284_v28  ;;  %2063 = vmatpush.msra.mxu0 %v788_v29  ;;  %v1476_v0 = vld [vmem:[%s4362_s23 + $0x1cb0] sm:$0xff] }
 0x163   : > { %2050 = vmatpush.msra.mxu3 %v1443_v10  ;;  %2083 = vmatpush.msrb.mxu1 %v1044_v31  ;;  %v1156_v2 = vld [vmem:[%s4362_s23 + $0x12b0] sm:$0xff] }
 0x164   : > { %2105 = vmatpush.msra.mxu2 %v1268_v32  ;;  %2064 = vmatpush.msra.mxu0 %v772_v33  ;;  %v660_v3 = vld [vmem:[%s4362_s23 + $0x330] sm:$0xff]  ;;  %v1317_v32 = vld [vmem:[%s4362_s23 + $0x17b8] sm:$0xff] }
 0x165   : > { %2051 = vmatpush.msra.mxu3 %v1427_v14  ;;  %2084 = vmatpush.msrb.mxu1 %v1028_v35  ;;  %v916_v4 = vld [vmem:[%s4362_s23 + $0xb30] sm:$0xff]  ;;  %v1699_v14 = vpop.f32.mrf.mxu1  ;;  %v1301_v35 = vld [vmem:[%s4362_s23 + $0x1738] sm:$0xff] }
 0x166   : > { %2106 = vmatpush.msra.mxu2 %v1252_v37  ;;  %2065 = vmatpush.msra.mxu0 %v756_v38  ;;  %v1460_v5 = vld [vmem:[%s4362_s23 + $0x1c30] sm:$0xff]  ;;  %v1700_v18 = vadd.f32 %v1699_v14, %v1679_v55  ;;  %v1461_v55 = vld [vmem:[%s4362_s23 + $0x1c38] sm:$0xff] }
 0x167   : > { %2052 = vmatpush.msra.mxu3 %v1411_v17  ;;  %2085 = vmatpush.msrb.mxu1 %v1012_v39  ;;  %v1140_v6 = vld [vmem:[%s4362_s23 + $0x1230] sm:$0xff]  ;;  %v805_v39 = vld [vmem:[%s4362_s23 + $0x7b8] sm:$0xff] }
 0x168   : > { %2107 = vmatpush.msra.mxu2 %v1236_v41  ;;  %2066 = vmatpush.msra.mxu0 %v740_v43  ;;  %v644_v7 = vld [vmem:[%s4362_s23 + $0x2b0] sm:$0xff]  ;;  %v1061_v41 = vld [vmem:[%s4362_s23 + $0xfb8] sm:$0xff] }
 0x169   : > { %2053 = vmatpush.msra.mxu3 %v1395_v19  ;;  %2086 = vmatpush.msrb.mxu1 %v996_v45  ;;  %v900_v8 = vld [vmem:[%s4362_s23 + $0xab0] sm:$0xff]  ;;  %v1573_v43 = vld [vmem:[%s4362_s23 + $0x1fb8] sm:$0xff] }
 0x16a   : > { %2108 = vmatpush.msra.mxu2 %v1220_v47  ;;  %2067 = vmatpush.msra.mxu0 %v724_v48  ;;  %v1444_v9 = vld [vmem:[%s4362_s23 + $0x1bb0] sm:$0xff]  ;;  %v1285_v45 = vld [vmem:[%s4362_s23 + $0x16b8] sm:$0xff] }
 0x16b   : > { %2054 = vmatpush.msra.mxu3 %v1379_v23  ;;  %2087 = vmatpush.msrb.mxu1 %v980_v49  ;;  %v1124_v10 = vld [vmem:[%s4362_s23 + $0x11b0] sm:$0xff]  ;;  %v1045_v47 = vld [vmem:[%s4362_s23 + $0xf38] sm:$0xff] }
 0x16c   : > { %2109 = vmatpush.msra.mxu2 %v1204_v51  ;;  %2068 = vmatpush.msra.mxu0 %v708_v52  ;;  %v628_v11 = vld [vmem:[%s4362_s23 + $0x230] sm:$0xff]  ;;  %v1557_v48 = vld [vmem:[%s4362_s23 + $0x1f38] sm:$0xff] }
 0x16d   : > { %2055 = vmatpush.msra.mxu3 %v1363_v26  ;;  %2088 = vmatpush.msrb.mxu1 %v964_v53  ;;  %v884_v12 = vld [vmem:[%s4362_s23 + $0xa30] sm:$0xff]  ;;  %v1269_v49 = vld [vmem:[%s4362_s23 + $0x1638] sm:$0xff] }
 0x16e   : > { %2110 = vmatpush.msra.mxu2 %v1188_v56  ;;  %2069 = vmatpush.msra.mxu0 %v692_v57  ;;  %v1428_v16 = vld [vmem:[%s4362_s23 + $0x1b30] sm:$0xff]  ;;  %v1029_v51 = vld [vmem:[%s4362_s23 + $0xeb8] sm:$0xff] }
 0x16f   : > { %2056 = vmatpush.msra.mxu3 %v1347_v30  ;;  %2089 = vmatpush.msrb.mxu1 %v948_v58  ;;  %v1108_v17 = vld [vmem:[%s4362_s23 + $0x1130] sm:$0xff]  ;;  %v1541_v52 = vld [vmem:[%s4362_s23 + $0x1eb8] sm:$0xff] }
 0x170   : > { %2111 = vmatpush.msra.mxu2 %v1172_v60  ;;  %2070 = vmatpush.msra.mxu0 %v676_v61  ;;  %v612_v63 = vld [vmem:[%s4362_s23 + $0x1b0] sm:$0xff]  ;;  %v1253_v53 = vld [vmem:[%s4362_s23 + $0x15b8] sm:$0xff] }
 0x171   : > { %2057 = vmatpush.msra.mxu3 %v1331_v34  ;;  %2090 = vmatpush.msrb.mxu1 %v932_v62  ;;  %v868_v19 = vld [vmem:[%s4362_s23 + $0x9b0] sm:$0xff]  ;;  %v1013_v56 = vld [vmem:[%s4362_s23 + $0xe38] sm:$0xff] }
 0x172   : > { %2112 = vmatpush.msra.mxu2 %v1156_v2  ;;  %2071 = vmatpush.msra.mxu0 %v660_v3  ;;  %v1412_v20 = vld [vmem:[%s4362_s23 + $0x1ab0] sm:$0xff]  ;;  %v1525_v57 = vld [vmem:[%s4362_s23 + $0x1e38] sm:$0xff] }
 0x173   : > { %2122 = vmatpush.msrb.mxu3 %v1572_v36  ;;  %2091 = vmatpush.msrb.mxu1 %v916_v4  ;;  %v1092_v21 = vld [vmem:[%s4362_s23 + $0x10b0] sm:$0xff]  ;;  %v1237_v58 = vld [vmem:[%s4362_s23 + $0x1538] sm:$0xff] }
 0x174   : > { %2113 = vmatpush.msra.mxu2 %v1140_v6  ;;  %2072 = vmatpush.msra.mxu0 %v644_v7  ;;  %v596_v25 = vld [vmem:[%s4362_s23 + $0x130] sm:$0xff]  ;;  %v997_v60 = vld [vmem:[%s4362_s23 + $0xdb8] sm:$0xff] }
 0x175   : > { %2123 = vmatpush.msrb.mxu3 %v1556_v40  ;;  %2092 = vmatpush.msrb.mxu1 %v900_v8  ;;  %v1739_v42 = vpop.f32.mrf.mxu3  ;;  %v852_v26 = vld [vmem:[%s4362_s23 + $0x930] sm:$0xff]  ;;  %v1509_v61 = vld [vmem:[%s4362_s23 + $0x1db8] sm:$0xff] }
 0x176   : > { %2114 = vmatpush.msra.mxu2 %v1124_v10  ;;  %2073 = vmatpush.msra.mxu0 %v628_v11  ;;  %v1396_v27 = vld [vmem:[%s4362_s23 + $0x1a30] sm:$0xff]  ;;  %v1221_v62 = vld [vmem:[%s4362_s23 + $0x14b8] sm:$0xff] }
 0x177   : > { %2124 = vmatpush.msrb.mxu3 %v1540_v46  ;;  %2093 = vmatpush.msrb.mxu1 %v884_v12  ;;  %v1076_v28 = vld [vmem:[%s4362_s23 + $0x1030] sm:$0xff]  ;;  %v789_v46 = vld [vmem:[%s4362_s23 + $0x738] sm:$0xff] }
 0x178   : > { %2115 = vmatpush.msra.mxu2 %v1108_v17  ;;  %2074 = vmatpush.msra.mxu0 %v612_v63  ;;  %v580_v30 = vld [vmem:[%s4362_s23 + $0xb0] sm:$0xff]  ;;  %v981_v2 = vld [vmem:[%s4362_s23 + $0xd38] sm:$0xff] }
 0x179   : > { %2125 = vmatpush.msrb.mxu3 %v1524_v50  ;;  %2094 = vmatpush.msrb.mxu1 %v868_v19  ;;  %v1380_v31 = vld [vmem:[%s4362_s23 + $0x19b0] sm:$0xff]  ;;  %v773_v50 = vld [vmem:[%s4362_s23 + $0x6b8] sm:$0xff] }
 0x17a   : > { %v1719_v15 = vpop.f32.mrf.mxu2  ;;  %2116 = vmatpush.msra.mxu2 %v1092_v21  ;;  %2075 = vmatpush.msra.mxu0 %v596_v25  ;;  %v836_v33 = vld [vmem:[%s4362_s23 + $0x8b0] sm:$0xff]  ;;  %v1493_v3 = vld [vmem:[%s4362_s23 + $0x1d38] sm:$0xff] }
 0x17b   : > { %2126 = vmatpush.msrb.mxu3 %v1508_v54  ;;  %v1720_v23 = vadd.f32 %v1719_v15, %v1700_v18  ;;  %2095 = vmatpush.msrb.mxu1 %v852_v26  ;;  %v1364_v34 = vld [vmem:[%s4362_s23 + $0x1930] sm:$0xff]  ;;  %v757_v54 = vld [vmem:[%s4362_s23 + $0x638] sm:$0xff] }
 0x17c   : > { %2117 = vmatpush.msra.mxu2 %v1076_v28  ;;  %2076 = vmatpush.msra.mxu0 %v580_v30  ;;  %v564_v36 = vld [vmem:[%s4362_s23 + $0x30] sm:$0xff]  ;;  %v1205_v4 = vld [vmem:[%s4362_s23 + $0x1438] sm:$0xff] }
 0x17d   : > { %2127 = vmatpush.msrb.mxu3 %v1492_v59  ;;  %v4891_v29 = vadd.f32 %v1739_v42, %v1720_v23  ;;  %2038 = vmatmul.f32.vlgmr.msrb.gmra.mxu2 %v4736_v13  ;;  %v820_v37 = vld [vmem:[%s4362_s23 + $0x830] sm:$0xff]  ;;  %v741_v59 = vld [vmem:[%s4362_s23 + $0x5b8] sm:$0xff] }
 0x17e   : > { %2182 = vmatpush.msrb.mxu2 %v1317_v32  ;;  %v1348_v38 = vld [vmem:[%s4362_s23 + $0x18b0] sm:$0xff]  ;;  %2096 = vmatpush.msrb.mxu1 %v836_v33  ;;  %v965_v6 = vld [vmem:[%s4362_s23 + $0xcb8] sm:$0xff] }
 0x17f   : > { %2128 = vmatpush.msrb.mxu3 %v1476_v0  ;;  %v1332_v40 = vld [vmem:[%s4362_s23 + $0x1830] sm:$0xff]  ;;  %2077 = vmatpush.msra.mxu0 %v564_v36  ;;  %v725_v0 = vld [vmem:[%s4362_s23 + $0x538] sm:$0xff] }
 0x180   : > { %2058 = vmatmul.f32.vlgmr.msra.gmra.mxu3 %v4829_v24  ;;  %2183 = vmatpush.msrb.mxu2 %v1301_v35  ;;  %v1477_v7 = vld [vmem:[%s4362_s23 + $0x1cb8] sm:$0xff] }
 0x181   : > { %2129 = vmatpush.msrb.mxu3 %v1460_v5  ;;  %2097 = vmatpush.msrb.mxu1 %v820_v37  ;;  %v709_v5 = vld [vmem:[%s4362_s23 + $0x4b8] sm:$0xff] }
 0x182   : > { %1998 = vmatmul.f32.vlgmr.msrb.gmra.mxu0 %v4750_v44  ;;  %2018 = vmatmul.f32.vlgmr.msra.gmra.mxu1 %v4759_v22  ;;  %v1189_v8 = vld [vmem:[%s4362_s23 + $0x13b8] sm:$0xff] }
 0x183   : > { %2130 = vmatpush.msrb.mxu3 %v1444_v9  ;;  %2142 = vmatpush.msrb.mxu0 %v805_v39  ;;  %v693_v9 = vld [vmem:[%s4362_s23 + $0x438] sm:$0xff] }
 0x184   : > { %2162 = vmatpush.msra.mxu1 %v1061_v41  ;;  %2184 = vmatpush.msrb.mxu2 %v1285_v45  ;;  %v949_v10 = vld [vmem:[%s4362_s23 + $0xc38] sm:$0xff] }
 0x185   : > { %2131 = vmatpush.msrb.mxu3 %v1428_v16  ;;  %2143 = vmatpush.msrb.mxu0 %v789_v46  ;;  %v1173_v11 = vld [vmem:[%s4362_s23 + $0x1338] sm:$0xff] }
 0x186   : > { %2163 = vmatpush.msra.mxu1 %v1045_v47  ;;  %2185 = vmatpush.msrb.mxu2 %v1269_v49  ;;  %v677_v12 = vld [vmem:[%s4362_s23 + $0x3b8] sm:$0xff]  ;;  %v1318_v49 = vld [vmem:[%s4362_s23 + $0x17c0] sm:$0xff] }
 0x187   : > { %2132 = vmatpush.msrb.mxu3 %v1412_v20  ;;  %2144 = vmatpush.msrb.mxu0 %v773_v50  ;;  %v933_v14 = vld [vmem:[%s4362_s23 + $0xbb8] sm:$0xff] }
 0x188   : > { %2164 = vmatpush.msra.mxu1 %v1029_v51  ;;  %2186 = vmatpush.msrb.mxu2 %v1253_v53  ;;  %v1445_v15 = vld [vmem:[%s4362_s23 + $0x1bb8] sm:$0xff]  ;;  %v1574_v53 = vld [vmem:[%s4362_s23 + $0x1fc0] sm:$0xff] }
 0x189   : > { %2133 = vmatpush.msrb.mxu3 %v1396_v27  ;;  %2145 = vmatpush.msrb.mxu0 %v757_v54  ;;  %v1157_v16 = vld [vmem:[%s4362_s23 + $0x12b8] sm:$0xff] }
 0x18a   : > { %2165 = vmatpush.msra.mxu1 %v1013_v56  ;;  %2187 = vmatpush.msrb.mxu2 %v1237_v58  ;;  %v661_v17 = vld [vmem:[%s4362_s23 + $0x338] sm:$0xff]  ;;  %v1286_v58 = vld [vmem:[%s4362_s23 + $0x16c0] sm:$0xff] }
 0x18b   : > { %2134 = vmatpush.msrb.mxu3 %v1380_v31  ;;  %2146 = vmatpush.msrb.mxu0 %v741_v59  ;;  %v917_v18 = vld [vmem:[%s4362_s23 + $0xb38] sm:$0xff]  ;;  %v1558_v59 = vld [vmem:[%s4362_s23 + $0x1f40] sm:$0xff] }
 0x18c   : > { %2166 = vmatpush.msra.mxu1 %v997_v60  ;;  %2188 = vmatpush.msrb.mxu2 %v1221_v62  ;;  %v1429_v63 = vld [vmem:[%s4362_s23 + $0x1b38] sm:$0xff]  ;;  %v790_v60 = vld [vmem:[%s4362_s23 + $0x740] sm:$0xff] }
 0x18d   : > { %2135 = vmatpush.msrb.mxu3 %v1364_v34  ;;  %2147 = vmatpush.msrb.mxu0 %v725_v0  ;;  %v1141_v19 = vld [vmem:[%s4362_s23 + $0x1238] sm:$0xff]  ;;  %v1270_v62 = vld [vmem:[%s4362_s23 + $0x1640] sm:$0xff] }
 0x18e   : > { %2167 = vmatpush.msra.mxu1 %v981_v2  ;;  %2189 = vmatpush.msrb.mxu2 %v1205_v4  ;;  %v645_v42 = vld [vmem:[%s4362_s23 + $0x2b8] sm:$0xff]  ;;  %v1542_v0 = vld [vmem:[%s4362_s23 + $0x1ec0] sm:$0xff] }
 0x18f   : > { %2136 = vmatpush.msrb.mxu3 %v1348_v38  ;;  %2148 = vmatpush.msrb.mxu0 %v709_v5  ;;  %v901_v20 = vld [vmem:[%s4362_s23 + $0xab8] sm:$0xff]  ;;  %v774_v2 = vld [vmem:[%s4362_s23 + $0x6c0] sm:$0xff] }
 0x190   : > { %2168 = vmatpush.msra.mxu1 %v965_v6  ;;  %2190 = vmatpush.msrb.mxu2 %v1189_v8  ;;  %v1413_v21 = vld [vmem:[%s4362_s23 + $0x1ab8] sm:$0xff]  ;;  %v758_v4 = vld [vmem:[%s4362_s23 + $0x640] sm:$0xff] }
 0x191   : > { %2137 = vmatpush.msrb.mxu3 %v1332_v40  ;;  %2149 = vmatpush.msrb.mxu0 %v693_v9  ;;  %v1125_v23 = vld [vmem:[%s4362_s23 + $0x11b8] sm:$0xff]  ;;  %v1014_v5 = vld [vmem:[%s4362_s23 + $0xe40] sm:$0xff] }
 0x192   : > { %2169 = vmatpush.msra.mxu1 %v949_v10  ;;  %2191 = vmatpush.msrb.mxu2 %v1173_v11  ;;  %v1759_v25 = vpop.f32.mrf.mxu0  ;;  %v629_v26 = vld [vmem:[%s4362_s23 + $0x238] sm:$0xff]  ;;  %v1799_v30 = vpop.f32.mrf.mxu2  ;;  %v1238_v6 = vld [vmem:[%s4362_s23 + $0x1540] sm:$0xff] }
 0x193   : > { %2202 = vmatpush.msra.mxu3 %v1573_v43  ;;  %2150 = vmatpush.msrb.mxu0 %v677_v12  ;;  %v885_v27 = vld [vmem:[%s4362_s23 + $0xa38] sm:$0xff]  ;;  %v742_v8 = vld [vmem:[%s4362_s23 + $0x5c0] sm:$0xff] }
 0x194   : > { %2170 = vmatpush.msra.mxu1 %v933_v14  ;;  %2192 = vmatpush.msrb.mxu2 %v1157_v16  ;;  %v1779_v28 = vpop.f32.mrf.mxu1  ;;  %v1397_v31 = vld [vmem:[%s4362_s23 + $0x1a38] sm:$0xff]  ;;  %v998_v9 = vld [vmem:[%s4362_s23 + $0xdc0] sm:$0xff] }
 0x195   : > { %2203 = vmatpush.msra.mxu3 %v1557_v48  ;;  %2151 = vmatpush.msrb.mxu0 %v661_v17  ;;  %v1109_v32 = vld [vmem:[%s4362_s23 + $0x1138] sm:$0xff]  ;;  %v1780_v33 = vadd.f32 %v1779_v28, %v1759_v25  ;;  %v1222_v10 = vld [vmem:[%s4362_s23 + $0x14c0] sm:$0xff] }
 0x196   : > { %2171 = vmatpush.msra.mxu1 %v917_v18  ;;  %2193 = vmatpush.msrb.mxu2 %v1141_v19  ;;  %v613_v34 = vld [vmem:[%s4362_s23 + $0x1b8] sm:$0xff]  ;;  %v726_v11 = vld [vmem:[%s4362_s23 + $0x540] sm:$0xff] }
 0x197   : > { %2204 = vmatpush.msra.mxu3 %v1541_v52  ;;  %2152 = vmatpush.msrb.mxu0 %v645_v42  ;;  %v869_v35 = vld [vmem:[%s4362_s23 + $0x9b8] sm:$0xff]  ;;  %v1800_v39 = vadd.f32 %v1799_v30, %v1780_v33  ;;  %v1302_v52 = vld [vmem:[%s4362_s23 + $0x1740] sm:$0xff] }
 0x198   : > { %2172 = vmatpush.msra.mxu1 %v901_v20  ;;  %2194 = vmatpush.msrb.mxu2 %v1125_v23  ;;  %v1381_v37 = vld [vmem:[%s4362_s23 + $0x19b8] sm:$0xff]  ;;  %v982_v12 = vld [vmem:[%s4362_s23 + $0xd40] sm:$0xff] }
 0x199   : > { %2205 = vmatpush.msra.mxu3 %v1525_v57  ;;  %2153 = vmatpush.msrb.mxu0 %v629_v26  ;;  %v1093_v38 = vld [vmem:[%s4362_s23 + $0x10b8] sm:$0xff]  ;;  %v1062_v57 = vld [vmem:[%s4362_s23 + $0xfc0] sm:$0xff] }
 0x19a   : > { %2173 = vmatpush.msra.mxu1 %v885_v27  ;;  %2195 = vmatpush.msrb.mxu2 %v1109_v32  ;;  %v597_v40 = vld [vmem:[%s4362_s23 + $0x138] sm:$0xff]  ;;  %v1206_v14 = vld [vmem:[%s4362_s23 + $0x1440] sm:$0xff] }
 0x19b   : > { %2206 = vmatpush.msra.mxu3 %v1509_v61  ;;  %v853_v41 = vld [vmem:[%s4362_s23 + $0x938] sm:$0xff]  ;;  %2154 = vmatpush.msrb.mxu0 %v613_v34  ;;  %v1046_v61 = vld [vmem:[%s4362_s23 + $0xf40] sm:$0xff] }
 0x19c   : > { %2174 = vmatpush.msra.mxu1 %v869_v35  ;;  %v1365_v43 = vld [vmem:[%s4362_s23 + $0x1938] sm:$0xff]  ;;  %2196 = vmatpush.msrb.mxu2 %v1093_v38  ;;  %v710_v16 = vld [vmem:[%s4362_s23 + $0x4c0] sm:$0xff] }
 0x19d   : > { %2207 = vmatpush.msra.mxu3 %v1493_v3  ;;  %v1819_v36 = vpop.f32.mrf.mxu3  ;;  %v1077_v45 = vld [vmem:[%s4362_s23 + $0x1038] sm:$0xff]  ;;  %2155 = vmatpush.msrb.mxu0 %v597_v40  ;;  %v1254_v3 = vld [vmem:[%s4362_s23 + $0x15c0] sm:$0xff] }
 0x19e   : > { %v4963_v46 = vadd.f32 %v1819_v36, %v1800_v39  ;;  %v581_v47 = vld [vmem:[%s4362_s23 + $0xb8] sm:$0xff]  ;;  %2175 = vmatpush.msra.mxu1 %v853_v41  ;;  %2197 = vmatpush.msrb.mxu2 %v1077_v45  ;;  %v966_v17 = vld [vmem:[%s4362_s23 + $0xcc0] sm:$0xff] }
 0x19f   : > { %2208 = vmatpush.msra.mxu3 %v1477_v7  ;;  %v1349_v48 = vld [vmem:[%s4362_s23 + $0x18b8] sm:$0xff]  ;;  %2118 = vmatmul.f32.vlgmr.msra.gmra.mxu2 %v4736_v13  ;;  %v806_v13 = vld [vmem:[%s4362_s23 + $0x7c0] sm:$0xff] }
 0x1a0   : > { %v837_v50 = vld [vmem:[%s4362_s23 + $0x8b8] sm:$0xff]  ;;  %2156 = vmatpush.msrb.mxu0 %v581_v47  ;;  %2262 = vmatpush.msra.mxu2 %v1318_v49  ;;  %v1510_v7 = vld [vmem:[%s4362_s23 + $0x1dc0] sm:$0xff] }
 0x1a1   : > { %2209 = vmatpush.msra.mxu3 %v1461_v55  ;;  %v1333_v51 = vld [vmem:[%s4362_s23 + $0x1838] sm:$0xff]  ;;  %2176 = vmatpush.msra.mxu1 %v837_v50  ;;  %v1494_v55 = vld [vmem:[%s4362_s23 + $0x1d40] sm:$0xff] }
 0x1a2   : > { %v565_v54 = vld [vmem:[%s4362_s23 + $0x38] sm:$0xff]  ;;  %2138 = vmatmul.f32.vlgmr.msrb.gmra.mxu3 %v4829_v24  ;;  %2263 = vmatpush.msra.mxu2 %v1302_v52  ;;  %v1190_v18 = vld [vmem:[%s4362_s23 + $0x13c0] sm:$0xff] }
 0x1a3   : > { %2210 = vmatpush.msra.mxu3 %v1445_v15  ;;  %v821_v56 = vld [vmem:[%s4362_s23 + $0x838] sm:$0xff]  ;;  %2157 = vmatpush.msrb.mxu0 %v565_v54  ;;  %v1478_v15 = vld [vmem:[%s4362_s23 + $0x1cc0] sm:$0xff] }
 0x1a4   : > { %2177 = vmatpush.msra.mxu1 %v821_v56  ;;  %2078 = vmatmul.f32.vlgmr.msra.gmra.mxu0 %v4750_v44  ;;  %v1030_v44 = vld [vmem:[%s4362_s23 + $0xec0] sm:$0xff] }
 0x1a5   : > { %2211 = vmatpush.msra.mxu3 %v1429_v63  ;;  %2098 = vmatmul.f32.vlgmr.msrb.gmra.mxu1 %v4759_v22  ;;  %v1526_v22 = vld [vmem:[%s4362_s23 + $0x1e40] sm:$0xff] }
 0x1a6   : > { %2222 = vmatpush.msra.mxu0 %v806_v13  ;;  %2242 = vmatpush.msrb.mxu1 %v1062_v57  ;;  %v1462_v63 = vld [vmem:[%s4362_s23 + $0x1c40] sm:$0xff] }
 0x1a7   : > { %2212 = vmatpush.msra.mxu3 %v1413_v21  ;;  %2264 = vmatpush.msra.mxu2 %v1286_v58  ;;  %v694_v19 = vld [vmem:[%s4362_s23 + $0x440] sm:$0xff] }
 0x1a8   : > { %2223 = vmatpush.msra.mxu0 %v790_v60  ;;  %2243 = vmatpush.msrb.mxu1 %v1046_v61  ;;  %v950_v42 = vld [vmem:[%s4362_s23 + $0xc40] sm:$0xff] }
 0x1a9   : > { %2213 = vmatpush.msra.mxu3 %v1397_v31  ;;  %2265 = vmatpush.msra.mxu2 %v1270_v62  ;;  %v1174_v20 = vld [vmem:[%s4362_s23 + $0x1340] sm:$0xff] }
 0x1aa   : > { %2224 = vmatpush.msra.mxu0 %v774_v2  ;;  %2244 = vmatpush.msrb.mxu1 %v1030_v44  ;;  %v1446_v21 = vld [vmem:[%s4362_s23 + $0x1bc0] sm:$0xff]  ;;  %v1303_v2 = vld [vmem:[%s4362_s23 + $0x1748] sm:$0xff] }
 0x1ab   : > { %2214 = vmatpush.msra.mxu3 %v1381_v37  ;;  %2266 = vmatpush.msra.mxu2 %v1254_v3  ;;  %v678_v23 = vld [vmem:[%s4362_s23 + $0x3c0] sm:$0xff]  ;;  %v1575_v44 = vld [vmem:[%s4362_s23 + $0x1fc8] sm:$0xff] }
 0x1ac   : > { %2225 = vmatpush.msra.mxu0 %v758_v4  ;;  %2245 = vmatpush.msrb.mxu1 %v1014_v5  ;;  %v934_v25 = vld [vmem:[%s4362_s23 + $0xbc0] sm:$0xff]  ;;  %v807_v4 = vld [vmem:[%s4362_s23 + $0x7c8] sm:$0xff] }
 0x1ad   : > { %2215 = vmatpush.msra.mxu3 %v1365_v43  ;;  %2267 = vmatpush.msra.mxu2 %v1238_v6  ;;  %v1158_v26 = vld [vmem:[%s4362_s23 + $0x12c0] sm:$0xff]  ;;  %v1063_v5 = vld [vmem:[%s4362_s23 + $0xfc8] sm:$0xff] }
 0x1ae   : > { %2226 = vmatpush.msra.mxu0 %v742_v8  ;;  %2246 = vmatpush.msrb.mxu1 %v998_v9  ;;  %v1430_v27 = vld [vmem:[%s4362_s23 + $0x1b40] sm:$0xff]  ;;  %v1287_v6 = vld [vmem:[%s4362_s23 + $0x16c8] sm:$0xff] }
 0x1af   : > { %2216 = vmatpush.msra.mxu3 %v1349_v48  ;;  %2268 = vmatpush.msra.mxu2 %v1222_v10  ;;  %v662_v28 = vld [vmem:[%s4362_s23 + $0x340] sm:$0xff]  ;;  %v791_v8 = vld [vmem:[%s4362_s23 + $0x748] sm:$0xff] }
 0x1b0   : > { %2227 = vmatpush.msra.mxu0 %v726_v11  ;;  %2247 = vmatpush.msrb.mxu1 %v982_v12  ;;  %v918_v30 = vld [vmem:[%s4362_s23 + $0xb40] sm:$0xff]  ;;  %v5065_v9 = vld [vmem:[%s5878_s0 + $0x8] sm:$0xff] }
 0x1b1   : > { %2217 = vmatpush.msra.mxu3 %v1333_v51  ;;  %2269 = vmatpush.msra.mxu2 %v1206_v14  ;;  %v1142_v31 = vld [vmem:[%s4362_s23 + $0x1240] sm:$0xff]  ;;  %v1047_v10 = vld [vmem:[%s4362_s23 + $0xf48] sm:$0xff] }
 0x1b2   : > { %2228 = vmatpush.msra.mxu0 %v710_v16  ;;  %2248 = vmatpush.msrb.mxu1 %v966_v17  ;;  %v1414_v32 = vld [vmem:[%s4362_s23 + $0x1ac0] sm:$0xff]  ;;  %v1543_v11 = vld [vmem:[%s4362_s23 + $0x1ec8] sm:$0xff] }
 0x1b3   : > { %2282 = vmatpush.msrb.mxu3 %v1574_v53  ;;  %2270 = vmatpush.msra.mxu2 %v1190_v18  ;;  %v646_v33 = vld [vmem:[%s4362_s23 + $0x2c0] sm:$0xff]  ;;  %v775_v12 = vld [vmem:[%s4362_s23 + $0x6c8] sm:$0xff] }
 0x1b4   : > { %2229 = vmatpush.msra.mxu0 %v694_v19  ;;  %2249 = vmatpush.msrb.mxu1 %v950_v42  ;;  %v902_v34 = vld [vmem:[%s4362_s23 + $0xac0] sm:$0xff]  ;;  %v1031_v14 = vld [vmem:[%s4362_s23 + $0xec8] sm:$0xff] }
 0x1b5   : > { %2283 = vmatpush.msrb.mxu3 %v1558_v59  ;;  %2271 = vmatpush.msra.mxu2 %v1174_v20  ;;  %v1126_v35 = vld [vmem:[%s4362_s23 + $0x11c0] sm:$0xff]  ;;  %v1319_v59 = vld [vmem:[%s4362_s23 + $0x17c8] sm:$0xff] }
 0x1b6   : > { %2230 = vmatpush.msra.mxu0 %v678_v23  ;;  %2250 = vmatpush.msrb.mxu1 %v934_v25  ;;  %v1398_v36 = vld [vmem:[%s4362_s23 + $0x1a40] sm:$0xff]  ;;  %v1527_v16 = vld [vmem:[%s4362_s23 + $0x1e48] sm:$0xff] }
 0x1b7   : > { %2284 = vmatpush.msrb.mxu3 %v1542_v0  ;;  %2272 = vmatpush.msra.mxu2 %v1158_v26  ;;  %v630_v37 = vld [vmem:[%s4362_s23 + $0x240] sm:$0xff]  ;;  %v5043_v0 = vld [vmem:[%s5878_s0 + $0x10] sm:$0xff]  ;;  %v759_v17 = vld [vmem:[%s4362_s23 + $0x648] sm:$0xff] }
 0x1b8   : > { %2231 = vmatpush.msra.mxu0 %v662_v28  ;;  %2251 = vmatpush.msrb.mxu1 %v918_v30  ;;  %v886_v39 = vld [vmem:[%s4362_s23 + $0xa40] sm:$0xff]  ;;  %v1015_v18 = vld [vmem:[%s4362_s23 + $0xe48] sm:$0xff] }
 0x1b9   : > { %2285 = vmatpush.msrb.mxu3 %v1526_v22  ;;  %2273 = vmatpush.msra.mxu2 %v1142_v31  ;;  %v1839_v38 = vpop.f32.mrf.mxu0  ;;  %v1110_v40 = vld [vmem:[%s4362_s23 + $0x1140] sm:$0xff]  ;;  %v1511_v19 = vld [vmem:[%s4362_s23 + $0x1dc8] sm:$0xff] }
 0x1ba   : > { %2232 = vmatpush.msra.mxu0 %v646_v33  ;;  %v1859_v41 = vpop.f32.mrf.mxu1  ;;  %2252 = vmatpush.msrb.mxu1 %v902_v34  ;;  %v1382_v45 = vld [vmem:[%s4362_s23 + $0x19c0] sm:$0xff]  ;;  %v743_v42 = vld [vmem:[%s4362_s23 + $0x5c8] sm:$0xff] }
 0x1bb   : > { %2286 = vmatpush.msrb.mxu3 %v1510_v7  ;;  %v1879_v43 = vpop.f32.mrf.mxu2  ;;  %2274 = vmatpush.msra.mxu2 %v1126_v35  ;;  %v614_v47 = vld [vmem:[%s4362_s23 + $0x1c0] sm:$0xff]  ;;  %v1860_v48 = vadd.f32 %v1859_v41, %v1839_v38  ;;  %v1899_v51 = vpop.f32.mrf.mxu3  ;;  %v999_v20 = vld [vmem:[%s4362_s23 + $0xdc8] sm:$0xff] }
 0x1bc   : > { %2233 = vmatpush.msra.mxu0 %v630_v37  ;;  %v870_v49 = vld [vmem:[%s4362_s23 + $0x9c0] sm:$0xff]  ;;  %2253 = vmatpush.msrb.mxu1 %v886_v39  ;;  %v1495_v23 = vld [vmem:[%s4362_s23 + $0x1d48] sm:$0xff] }
 0x1bd   : > { %2287 = vmatpush.msrb.mxu3 %v1494_v55  ;;  %v1094_v50 = vld [vmem:[%s4362_s23 + $0x10c0] sm:$0xff]  ;;  %2275 = vmatpush.msra.mxu2 %v1110_v40  ;;  %v1880_v54 = vadd.f32 %v1879_v43, %v1860_v48  ;;  %v1271_v55 = vld [vmem:[%s4362_s23 + $0x1648] sm:$0xff] }
 0x1be   : > { %v1366_v52 = vld [vmem:[%s4362_s23 + $0x1940] sm:$0xff]  ;;  %2234 = vmatpush.msra.mxu0 %v614_v47  ;;  %2254 = vmatpush.msrb.mxu1 %v870_v49  ;;  %v727_v25 = vld [vmem:[%s4362_s23 + $0x548] sm:$0xff] }
 0x1bf   : > { %2288 = vmatpush.msrb.mxu3 %v1478_v15  ;;  %v598_v53 = vld [vmem:[%s4362_s23 + $0x140] sm:$0xff]  ;;  %2276 = vmatpush.msra.mxu2 %v1094_v50  ;;  %v5034_v58 = vadd.f32 %v1899_v51, %v1880_v54  ;;  %v1255_v15 = vld [vmem:[%s4362_s23 + $0x15c8] sm:$0xff] }
 0x1c0   : > { %v854_v56 = vld [vmem:[%s4362_s23 + $0x940] sm:$0xff]  ;;  %2235 = vmatpush.msra.mxu0 %v598_v53  ;;  %2198 = vmatmul.f32.vlgmr.msrb.gmra.mxu2 %v5043_v0  ;;  %v983_v26 = vld [vmem:[%s4362_s23 + $0xd48] sm:$0xff] }
 0x1c1   : > { %2289 = vmatpush.msrb.mxu3 %v1462_v63  ;;  %v1078_v13 = vld [vmem:[%s4362_s23 + $0x1040] sm:$0xff]  ;;  %2255 = vmatpush.msrb.mxu1 %v854_v56  ;;  %v1239_v63 = vld [vmem:[%s4362_s23 + $0x1548] sm:$0xff] }
 0x1c2   : > { %v1350_v57 = vld [vmem:[%s4362_s23 + $0x18c0] sm:$0xff]  ;;  %2277 = vmatpush.msra.mxu2 %v1078_v13  ;;  %2218 = vmatmul.f32.vlgmr.msra.gmra.mxu3 %v4829_v24  ;;  %v1559_v24 = vld [vmem:[%s4362_s23 + $0x1f48] sm:$0xff] }
 0x1c3   : > { %2290 = vmatpush.msrb.mxu3 %v1446_v21  ;;  %v582_v60 = vld [vmem:[%s4362_s23 + $0xc0] sm:$0xff]  ;;  %2178 = vmatmul.f32.vlgmr.msra.gmra.mxu1 %v5065_v9  ;;  %v1223_v21 = vld [vmem:[%s4362_s23 + $0x14c8] sm:$0xff] }
 0x1c4   : > { %v838_v61 = vld [vmem:[%s4362_s23 + $0x8c0] sm:$0xff]  ;;  %2342 = vmatpush.msrb.mxu2 %v1319_v59  ;;  %2236 = vmatpush.msra.mxu0 %v582_v60  ;;  %v1479_v28 = vld [vmem:[%s4362_s23 + $0x1cc8] sm:$0xff] }
 0x1c5   : > { %2291 = vmatpush.msrb.mxu3 %v1430_v27  ;;  %v1334_v62 = vld [vmem:[%s4362_s23 + $0x1840] sm:$0xff]  ;;  %2256 = vmatpush.msrb.mxu1 %v838_v61  ;;  %v1207_v27 = vld [vmem:[%s4362_s23 + $0x1448] sm:$0xff] }
 0x1c6   : > { %v566_v3 = vld [vmem:[%s4362_s23 + $0x40] sm:$0xff]  ;;  %2343 = vmatpush.msrb.mxu2 %v1303_v2  ;;  %v711_v30 = vld [vmem:[%s4362_s23 + $0x4c8] sm:$0xff] }
 0x1c7   : > { %2292 = vmatpush.msrb.mxu3 %v1414_v32  ;;  %v822_v22 = vld [vmem:[%s4362_s23 + $0x840] sm:$0xff]  ;;  %2237 = vmatpush.msra.mxu0 %v566_v3  ;;  %v967_v31 = vld [vmem:[%s4362_s23 + $0xcc8] sm:$0xff] }
 0x1c8   : > { %2257 = vmatpush.msrb.mxu1 %v822_v22  ;;  %v5057_v7 = vld [vmem:[%s5878_s0] sm:$0xff]  ;;  %2344 = vmatpush.msrb.mxu2 %v1287_v6  ;;  %v1191_v32 = vld [vmem:[%s4362_s23 + $0x13c8] sm:$0xff] }
 0x1c9   : > { %2293 = vmatpush.msrb.mxu3 %v1398_v36  ;;  %2158 = vmatmul.f32.vlgmr.msrb.gmra.mxu0 %v5057_v7  ;;  %v1463_v33 = vld [vmem:[%s4362_s23 + $0x1c48] sm:$0xff] }
 0x1ca   : > { %2302 = vmatpush.msrb.mxu0 %v807_v4  ;;  %2322 = vmatpush.msra.mxu1 %v1063_v5  ;;  %v695_v34 = vld [vmem:[%s4362_s23 + $0x448] sm:$0xff] }
 0x1cb   : > { %2294 = vmatpush.msrb.mxu3 %v1382_v45  ;;  %2345 = vmatpush.msrb.mxu2 %v1271_v55  ;;  %v951_v35 = vld [vmem:[%s4362_s23 + $0xc48] sm:$0xff] }
 0x1cc   : > { %2303 = vmatpush.msrb.mxu0 %v791_v8  ;;  %2323 = vmatpush.msra.mxu1 %v1047_v10  ;;  %v1175_v36 = vld [vmem:[%s4362_s23 + $0x1348] sm:$0xff]  ;;  %v1320_v10 = vld [vmem:[%s4362_s23 + $0x17d0] sm:$0xff] }
 0x1cd   : > { %2295 = vmatpush.msrb.mxu3 %v1366_v52  ;;  %2346 = vmatpush.msrb.mxu2 %v1255_v15  ;;  %v1447_v37 = vld [vmem:[%s4362_s23 + $0x1bc8] sm:$0xff]  ;;  %v1304_v15 = vld [vmem:[%s4362_s23 + $0x1750] sm:$0xff] }
 0x1ce   : > { %2304 = vmatpush.msrb.mxu0 %v775_v12  ;;  %2324 = vmatpush.msra.mxu1 %v1031_v14  ;;  %v679_v38 = vld [vmem:[%s4362_s23 + $0x3c8] sm:$0xff] }
 0x1cf   : > { %2296 = vmatpush.msrb.mxu3 %v1350_v57  ;;  %2347 = vmatpush.msrb.mxu2 %v1239_v63  ;;  %v935_v39 = vld [vmem:[%s4362_s23 + $0xbc8] sm:$0xff]  ;;  %v5133_v63 = vld [vmem:[%s5878_s0 + $0x18] sm:$0xff] }
 0x1d0   : > { %2305 = vmatpush.msrb.mxu0 %v759_v17  ;;  %2325 = vmatpush.msra.mxu1 %v1015_v18  ;;  %v1159_v40 = vld [vmem:[%s4362_s23 + $0x12c8] sm:$0xff] }
 0x1d1   : > { %2297 = vmatpush.msrb.mxu3 %v1334_v62  ;;  %2348 = vmatpush.msrb.mxu2 %v1223_v21  ;;  %v1431_v41 = vld [vmem:[%s4362_s23 + $0x1b48] sm:$0xff]  ;;  %v1560_v21 = vld [vmem:[%s4362_s23 + $0x1f50] sm:$0xff] }
 0x1d2   : > { %2306 = vmatpush.msrb.mxu0 %v743_v42  ;;  %2326 = vmatpush.msra.mxu1 %v999_v20  ;;  %v663_v43 = vld [vmem:[%s4362_s23 + $0x348] sm:$0xff]  ;;  %v1064_v42 = vld [vmem:[%s4362_s23 + $0xfd0] sm:$0xff] }
 0x1d3   : > { %2362 = vmatpush.msra.mxu3 %v1575_v44  ;;  %2349 = vmatpush.msrb.mxu2 %v1207_v27  ;;  %v919_v45 = vld [vmem:[%s4362_s23 + $0xb48] sm:$0xff]  ;;  %v1288_v20 = vld [vmem:[%s4362_s23 + $0x16d0] sm:$0xff] }
 0x1d4   : > { %2307 = vmatpush.msrb.mxu0 %v727_v25  ;;  %2327 = vmatpush.msra.mxu1 %v983_v26  ;;  %v1143_v47 = vld [vmem:[%s4362_s23 + $0x1248] sm:$0xff]  ;;  %v1048_v25 = vld [vmem:[%s4362_s23 + $0xf50] sm:$0xff] }
 0x1d5   : > { %2363 = vmatpush.msra.mxu3 %v1559_v24  ;;  %2350 = vmatpush.msrb.mxu2 %v1191_v32  ;;  %v1415_v48 = vld [vmem:[%s4362_s23 + $0x1ac8] sm:$0xff]  ;;  %v1272_v26 = vld [vmem:[%s4362_s23 + $0x1650] sm:$0xff] }
 0x1d6   : > { %2308 = vmatpush.msrb.mxu0 %v711_v30  ;;  %2328 = vmatpush.msra.mxu1 %v967_v31  ;;  %v647_v49 = vld [vmem:[%s4362_s23 + $0x2c8] sm:$0xff]  ;;  %v1544_v27 = vld [vmem:[%s4362_s23 + $0x1ed0] sm:$0xff] }
 0x1d7   : > { %2364 = vmatpush.msra.mxu3 %v1543_v11  ;;  %2351 = vmatpush.msrb.mxu2 %v1175_v36  ;;  %v903_v50 = vld [vmem:[%s4362_s23 + $0xac8] sm:$0xff]  ;;  %v1032_v30 = vld [vmem:[%s4362_s23 + $0xed0] sm:$0xff] }
 0x1d8   : > { %2309 = vmatpush.msrb.mxu0 %v695_v34  ;;  %2329 = vmatpush.msra.mxu1 %v951_v35  ;;  %v1127_v51 = vld [vmem:[%s4362_s23 + $0x11c8] sm:$0xff]  ;;  %v1256_v31 = vld [vmem:[%s4362_s23 + $0x15d0] sm:$0xff] }
 0x1d9   : > { %2365 = vmatpush.msra.mxu3 %v1527_v16  ;;  %2352 = vmatpush.msrb.mxu2 %v1159_v40  ;;  %v1399_v52 = vld [vmem:[%s4362_s23 + $0x1a48] sm:$0xff]  ;;  %v1576_v16 = vld [vmem:[%s4362_s23 + $0x1fd0] sm:$0xff] }
 0x1da   : > { %2310 = vmatpush.msrb.mxu0 %v679_v38  ;;  %2330 = vmatpush.msra.mxu1 %v935_v39  ;;  %v631_v53 = vld [vmem:[%s4362_s23 + $0x248] sm:$0xff]  ;;  %v1528_v32 = vld [vmem:[%s4362_s23 + $0x1e50] sm:$0xff] }
 0x1db   : > { %2366 = vmatpush.msra.mxu3 %v1511_v19  ;;  %2353 = vmatpush.msrb.mxu2 %v1143_v47  ;;  %v887_v54 = vld [vmem:[%s4362_s23 + $0xa48] sm:$0xff]  ;;  %v808_v19 = vld [vmem:[%s4362_s23 + $0x7d0] sm:$0xff] }
 0x1dc   : > { %2311 = vmatpush.msrb.mxu0 %v663_v43  ;;  %2331 = vmatpush.msra.mxu1 %v919_v45  ;;  %v1111_v56 = vld [vmem:[%s4362_s23 + $0x1148] sm:$0xff]  ;;  %v1919_v13 = vpop.f32.mrf.mxu0  ;;  %v1016_v34 = vld [vmem:[%s4362_s23 + $0xe50] sm:$0xff] }
 0x1dd   : > { %2367 = vmatpush.msra.mxu3 %v1495_v23  ;;  %2354 = vmatpush.msrb.mxu2 %v1127_v51  ;;  %v1383_v57 = vld [vmem:[%s4362_s23 + $0x19c8] sm:$0xff]  ;;  %v1939_v60 = vpop.f32.mrf.mxu1  ;;  %v1959_v61 = vpop.f32.mrf.mxu2  ;;  %v792_v23 = vld [vmem:[%s4362_s23 + $0x750] sm:$0xff] }
 0x1de   : > { %2312 = vmatpush.msrb.mxu0 %v647_v49  ;;  %2332 = vmatpush.msra.mxu1 %v903_v50  ;;  %v615_v59 = vld [vmem:[%s4362_s23 + $0x1c8] sm:$0xff]  ;;  %v1940_v44 = vadd.f32 %v1939_v60, %v1919_v13  ;;  %v1240_v35 = vld [vmem:[%s4362_s23 + $0x1550] sm:$0xff] }
 0x1df   : > { %2368 = vmatpush.msra.mxu3 %v1479_v28  ;;  %v871_v62 = vld [vmem:[%s4362_s23 + $0x9c8] sm:$0xff]  ;;  %2355 = vmatpush.msrb.mxu2 %v1111_v56  ;;  %v1979_v4 = vpop.f32.mrf.mxu3  ;;  %v776_v28 = vld [vmem:[%s4362_s23 + $0x6d0] sm:$0xff] }
 0x1e0   : > { %2313 = vmatpush.msrb.mxu0 %v631_v53  ;;  %v1095_v2 = vld [vmem:[%s4362_s23 + $0x10c8] sm:$0xff]  ;;  %2333 = vmatpush.msra.mxu1 %v887_v54  ;;  %v1960_v24 = vadd.f32 %v1959_v61, %v1940_v44  ;;  %v1512_v36 = vld [vmem:[%s4362_s23 + $0x1dd0] sm:$0xff] }
 0x1e1   : > { %2369 = vmatpush.msra.mxu3 %v1463_v33  ;;  %v1367_v3 = vld [vmem:[%s4362_s23 + $0x1948] sm:$0xff]  ;;  %2356 = vmatpush.msrb.mxu2 %v1095_v2  ;;  %v760_v33 = vld [vmem:[%s4362_s23 + $0x650] sm:$0xff] }
 0x1e2   : > { %v599_v22 = vld [vmem:[%s4362_s23 + $0x148] sm:$0xff]  ;;  %2314 = vmatpush.msrb.mxu0 %v615_v59  ;;  %2334 = vmatpush.msra.mxu1 %v871_v62  ;;  %v5121_v11 = vadd.f32 %v1979_v4, %v1960_v24  ;;  %v1000_v38 = vld [vmem:[%s4362_s23 + $0xdd0] sm:$0xff] }
 0x1e3   : > { %2370 = vmatpush.msra.mxu3 %v1447_v37  ;;  %v855_v5 = vld [vmem:[%s4362_s23 + $0x948] sm:$0xff]  ;;  %2278 = vmatmul.f32.vlgmr.msra.gmra.mxu2 %v5043_v0  ;;  %v744_v37 = vld [vmem:[%s4362_s23 + $0x5d0] sm:$0xff] }
 0x1e4   : > { %v1079_v6 = vld [vmem:[%s4362_s23 + $0x1048] sm:$0xff]  ;;  %2315 = vmatpush.msrb.mxu0 %v599_v22  ;;  %2335 = vmatpush.msra.mxu1 %v855_v5  ;;  %v1224_v39 = vld [vmem:[%s4362_s23 + $0x14d0] sm:$0xff] }
 0x1e5   : > { %2371 = vmatpush.msra.mxu3 %v1431_v41  ;;  %v1351_v8 = vld [vmem:[%s4362_s23 + $0x18c8] sm:$0xff]  ;;  %2357 = vmatpush.msrb.mxu2 %v1079_v6  ;;  %v1496_v40 = vld [vmem:[%s4362_s23 + $0x1d50] sm:$0xff] }
 0x1e6   : > { %v583_v55 = vld [vmem:[%s4362_s23 + $0xc8] sm:$0xff]  ;;  %2298 = vmatmul.f32.vlgmr.msrb.gmra.mxu3 %v5133_v63  ;;  %2238 = vmatmul.f32.vlgmr.msra.gmra.mxu0 %v5057_v7  ;;  %v728_v41 = vld [vmem:[%s4362_s23 + $0x550] sm:$0xff] }
 0x1e7   : > { %2372 = vmatpush.msra.mxu3 %v1415_v48  ;;  %v839_v12 = vld [vmem:[%s4362_s23 + $0x8c8] sm:$0xff]  ;;  %2422 = vmatpush.msra.mxu2 %v1320_v10  ;;  %v984_v43 = vld [vmem:[%s4362_s23 + $0xd50] sm:$0xff] }
 0x1e8   : > { %v1335_v14 = vld [vmem:[%s4362_s23 + $0x1848] sm:$0xff]  ;;  %2316 = vmatpush.msrb.mxu0 %v583_v55  ;;  %2336 = vmatpush.msra.mxu1 %v839_v12  ;;  %v1208_v45 = vld [vmem:[%s4362_s23 + $0x1450] sm:$0xff] }
 0x1e9   : > { %2373 = vmatpush.msra.mxu3 %v1399_v52  ;;  %v567_v17 = vld [vmem:[%s4362_s23 + $0x48] sm:$0xff]  ;;  %2423 = vmatpush.msra.mxu2 %v1304_v15  ;;  %v1480_v47 = vld [vmem:[%s4362_s23 + $0x1cd0] sm:$0xff] }
 0x1ea   : > { %v823_v18 = vld [vmem:[%s4362_s23 + $0x848] sm:$0xff]  ;;  %2317 = vmatpush.msrb.mxu0 %v567_v17  ;;  %2258 = vmatmul.f32.vlgmr.msrb.gmra.mxu1 %v5065_v9  ;;  %v712_v48 = vld [vmem:[%s4362_s23 + $0x4d0] sm:$0xff] }
 0x1eb   : > { %2374 = vmatpush.msra.mxu3 %v1383_v57  ;;  %2337 = vmatpush.msra.mxu1 %v823_v18  ;;  %v968_v49 = vld [vmem:[%s4362_s23 + $0xcd0] sm:$0xff] }
 0x1ec   : > { %2382 = vmatpush.msra.mxu0 %v808_v19  ;;  %2424 = vmatpush.msra.mxu2 %v1288_v20  ;;  %v1192_v50 = vld [vmem:[%s4362_s23 + $0x13d0] sm:$0xff] }
 0x1ed   : > { %2375 = vmatpush.msra.mxu3 %v1367_v3  ;;  %2402 = vmatpush.msrb.mxu1 %v1064_v42  ;;  %v1464_v51 = vld [vmem:[%s4362_s23 + $0x1c50] sm:$0xff] }
 0x1ee   : > { %2383 = vmatpush.msra.mxu0 %v792_v23  ;;  %2425 = vmatpush.msra.mxu2 %v1272_v26  ;;  %v696_v52 = vld [vmem:[%s4362_s23 + $0x450] sm:$0xff] }
 0x1ef   : > { %2376 = vmatpush.msra.mxu3 %v1351_v8  ;;  %2403 = vmatpush.msrb.mxu1 %v1048_v25  ;;  %v952_v53 = vld [vmem:[%s4362_s23 + $0xc50] sm:$0xff] }
 0x1f0   : > { %2384 = vmatpush.msra.mxu0 %v776_v28  ;;  %2426 = vmatpush.msra.mxu2 %v1256_v31  ;;  %v1176_v54 = vld [vmem:[%s4362_s23 + $0x1350] sm:$0xff] }
 0x1f1   : > { %2377 = vmatpush.msra.mxu3 %v1335_v14  ;;  %2404 = vmatpush.msrb.mxu1 %v1032_v30  ;;  %v1448_v56 = vld [vmem:[%s4362_s23 + $0x1bd0] sm:$0xff] }
 0x1f2   : > { %2385 = vmatpush.msra.mxu0 %v760_v33  ;;  %2427 = vmatpush.msra.mxu2 %v1240_v35  ;;  %v680_v13 = vld [vmem:[%s4362_s23 + $0x3d0] sm:$0xff]  ;;  %v1305_v33 = vld [vmem:[%s4362_s23 + $0x1758] sm:$0xff] }
 0x1f3   : > { %2442 = vmatpush.msrb.mxu3 %v1576_v16  ;;  %2405 = vmatpush.msrb.mxu1 %v1016_v34  ;;  %v936_v57 = vld [vmem:[%s4362_s23 + $0xbd0] sm:$0xff]  ;;  %v1577_v34 = vld [vmem:[%s4362_s23 + $0x1fd8] sm:$0xff] }
 0x1f4   : > { %2386 = vmatpush.msra.mxu0 %v744_v37  ;;  %2428 = vmatpush.msra.mxu2 %v1224_v39  ;;  %v1160_v59 = vld [vmem:[%s4362_s23 + $0x12d0] sm:$0xff]  ;;  %v809_v37 = vld [vmem:[%s4362_s23 + $0x7d8] sm:$0xff] }
 0x1f5   : > { %2443 = vmatpush.msrb.mxu3 %v1560_v21  ;;  %2406 = vmatpush.msrb.mxu1 %v1000_v38  ;;  %v1432_v60 = vld [vmem:[%s4362_s23 + $0x1b50] sm:$0xff]  ;;  %v1065_v38 = vld [vmem:[%s4362_s23 + $0xfd8] sm:$0xff] }
 0x1f6   : > { %2387 = vmatpush.msra.mxu0 %v728_v41  ;;  %2429 = vmatpush.msra.mxu2 %v1208_v45  ;;  %v664_v61 = vld [vmem:[%s4362_s23 + $0x350] sm:$0xff]  ;;  %v1289_v39 = vld [vmem:[%s4362_s23 + $0x16d8] sm:$0xff] }
 0x1f7   : > { %2444 = vmatpush.msrb.mxu3 %v1544_v27  ;;  %2407 = vmatpush.msrb.mxu1 %v984_v43  ;;  %v920_v62 = vld [vmem:[%s4362_s23 + $0xb50] sm:$0xff]  ;;  %v1321_v27 = vld [vmem:[%s4362_s23 + $0x17d8] sm:$0xff] }
 0x1f8   : > { %2388 = vmatpush.msra.mxu0 %v712_v48  ;;  %2430 = vmatpush.msra.mxu2 %v1192_v50  ;;  %v1144_v2 = vld [vmem:[%s4362_s23 + $0x1250] sm:$0xff]  ;;  %v793_v41 = vld [vmem:[%s4362_s23 + $0x758] sm:$0xff] }
 0x1f9   : > { %2445 = vmatpush.msrb.mxu3 %v1528_v32  ;;  %2408 = vmatpush.msrb.mxu1 %v968_v49  ;;  %v1416_v44 = vld [vmem:[%s4362_s23 + $0x1ad0] sm:$0xff]  ;;  %v1049_v43 = vld [vmem:[%s4362_s23 + $0xf58] sm:$0xff] }
 0x1fa   : > { %2389 = vmatpush.msra.mxu0 %v696_v52  ;;  %2431 = vmatpush.msra.mxu2 %v1176_v54  ;;  %v648_v3 = vld [vmem:[%s4362_s23 + $0x2d0] sm:$0xff]  ;;  %v1273_v45 = vld [vmem:[%s4362_s23 + $0x1658] sm:$0xff] }
 0x1fb   : > { %2446 = vmatpush.msrb.mxu3 %v1512_v36  ;;  %2409 = vmatpush.msrb.mxu1 %v952_v53  ;;  %v904_v22 = vld [vmem:[%s4362_s23 + $0xad0] sm:$0xff]  ;;  %v777_v48 = vld [vmem:[%s4362_s23 + $0x6d8] sm:$0xff] }
 0x1fc   : > { %2390 = vmatpush.msra.mxu0 %v680_v13  ;;  %2432 = vmatpush.msra.mxu2 %v1160_v59  ;;  %v1128_v4 = vld [vmem:[%s4362_s23 + $0x11d0] sm:$0xff]  ;;  %v1033_v49 = vld [vmem:[%s4362_s23 + $0xed8] sm:$0xff] }
 0x1fd   : > { %2447 = vmatpush.msrb.mxu3 %v1496_v40  ;;  %2410 = vmatpush.msrb.mxu1 %v936_v57  ;;  %v1400_v5 = vld [vmem:[%s4362_s23 + $0x1a50] sm:$0xff]  ;;  %v1561_v40 = vld [vmem:[%s4362_s23 + $0x1f58] sm:$0xff] }
 0x1fe   : > { %2391 = vmatpush.msra.mxu0 %v664_v61  ;;  %2433 = vmatpush.msra.mxu2 %v1144_v2  ;;  %v632_v6 = vld [vmem:[%s4362_s23 + $0x250] sm:$0xff]  ;;  %v1257_v50 = vld [vmem:[%s4362_s23 + $0x15d8] sm:$0xff] }
 0x1ff   : > { %2448 = vmatpush.msrb.mxu3 %v1480_v47  ;;  %2411 = vmatpush.msrb.mxu1 %v920_v62  ;;  %v888_v24 = vld [vmem:[%s4362_s23 + $0xa50] sm:$0xff]  ;;  %v1999_v12 = vpop.f32.mrf.mxu0  ;;  %v2019_v16 = vpop.f32.mrf.mxu1  ;;  %v1545_v47 = vld [vmem:[%s4362_s23 + $0x1ed8] sm:$0xff] }
 0x200   : > { %2392 = vmatpush.msra.mxu0 %v648_v3  ;;  %v1112_v8 = vld [vmem:[%s4362_s23 + $0x1150] sm:$0xff]  ;;  %2434 = vmatpush.msra.mxu2 %v1128_v4  ;;  %v2039_v17 = vpop.f32.mrf.mxu2  ;;  %v2020_v42 = vadd.f32 %v2019_v16, %v1999_v12  ;;  %v761_v52 = vld [vmem:[%s4362_s23 + $0x658] sm:$0xff] }
 0x201   : > { %2449 = vmatpush.msrb.mxu3 %v1464_v51  ;;  %2412 = vmatpush.msrb.mxu1 %v904_v22  ;;  %v1384_v10 = vld [vmem:[%s4362_s23 + $0x19d0] sm:$0xff]  ;;  %v1529_v51 = vld [vmem:[%s4362_s23 + $0x1e58] sm:$0xff] }
 0x202   : > { %v616_v55 = vld [vmem:[%s4362_s23 + $0x1d0] sm:$0xff]  ;;  %2393 = vmatpush.msra.mxu0 %v632_v6  ;;  %2435 = vmatpush.msra.mxu2 %v1112_v8  ;;  %v2040_v26 = vadd.f32 %v2039_v17, %v2020_v42  ;;  %v1017_v53 = vld [vmem:[%s4362_s23 + $0xe58] sm:$0xff] }
 0x203   : > { %2450 = vmatpush.msrb.mxu3 %v1448_v56  ;;  %v872_v14 = vld [vmem:[%s4362_s23 + $0x9d0] sm:$0xff]  ;;  %2413 = vmatpush.msrb.mxu1 %v888_v24  ;;  %v2059_v23 = vpop.f32.mrf.mxu3  ;;  %v1241_v54 = vld [vmem:[%s4362_s23 + $0x1558] sm:$0xff] }
 0x204   : > { %v1096_v15 = vld [vmem:[%s4362_s23 + $0x10d0] sm:$0xff]  ;;  %2394 = vmatpush.msra.mxu0 %v616_v55  ;;  %v5198_v32 = vadd.f32 %v2059_v23, %v2040_v26  ;;  %2358 = vmatmul.f32.vlgmr.msrb.gmra.mxu2 %v5043_v0  ;;  %v1513_v56 = vld [vmem:[%s4362_s23 + $0x1dd8] sm:$0xff] }
 0x205   : > { %2451 = vmatpush.msrb.mxu3 %v1432_v60  ;;  %v1368_v18 = vld [vmem:[%s4362_s23 + $0x1950] sm:$0xff]  ;;  %2414 = vmatpush.msrb.mxu1 %v872_v14  ;;  %v745_v13 = vld [vmem:[%s4362_s23 + $0x5d8] sm:$0xff] }
 0x206   : > { %v600_v19 = vld [vmem:[%s4362_s23 + $0x150] sm:$0xff]  ;;  %2436 = vmatpush.msra.mxu2 %v1096_v15  ;;  %2378 = vmatmul.f32.vlgmr.msra.gmra.mxu3 %v5133_v63  ;;  %v1001_v57 = vld [vmem:[%s4362_s23 + $0xdd8] sm:$0xff] }
 0x207   : > { %2452 = vmatpush.msrb.mxu3 %v1416_v44  ;;  %v856_v20 = vld [vmem:[%s4362_s23 + $0x950] sm:$0xff]  ;;  %2395 = vmatpush.msra.mxu0 %v600_v19  ;;  %v1225_v59 = vld [vmem:[%s4362_s23 + $0x14d8] sm:$0xff] }
 0x208   : > { %v1080_v21 = vld [vmem:[%s4362_s23 + $0x1050] sm:$0xff]  ;;  %2415 = vmatpush.msrb.mxu1 %v856_v20  ;;  %2318 = vmatmul.f32.vlgmr.msrb.gmra.mxu0 %v5057_v7  ;;  %v1497_v60 = vld [vmem:[%s4362_s23 + $0x1d58] sm:$0xff] }
 0x209   : > { %2453 = vmatpush.msrb.mxu3 %v1400_v5  ;;  %v1352_v25 = vld [vmem:[%s4362_s23 + $0x18d0] sm:$0xff]  ;;  %2437 = vmatpush.msra.mxu2 %v1080_v21  ;;  %v729_v61 = vld [vmem:[%s4362_s23 + $0x558] sm:$0xff] }
 0x20a   : > { %v584_v28 = vld [vmem:[%s4362_s23 + $0xd0] sm:$0xff]  ;;  %2338 = vmatmul.f32.vlgmr.msra.gmra.mxu1 %v5065_v9  ;;  %v985_v62 = vld [vmem:[%s4362_s23 + $0xd58] sm:$0xff] }
 0x20b   : > { %2454 = vmatpush.msrb.mxu3 %v1384_v10  ;;  %v840_v30 = vld [vmem:[%s4362_s23 + $0x8d0] sm:$0xff]  ;;  %2502 = vmatpush.msrb.mxu2 %v1321_v27  ;;  %v1209_v2 = vld [vmem:[%s4362_s23 + $0x1458] sm:$0xff] }
 0x20c   : > { %v1336_v31 = vld [vmem:[%s4362_s23 + $0x1850] sm:$0xff]  ;;  %2396 = vmatpush.msra.mxu0 %v584_v28  ;;  %2416 = vmatpush.msrb.mxu1 %v840_v30  ;;  %v1481_v44 = vld [vmem:[%s4362_s23 + $0x1cd8] sm:$0xff] }
 0x20d   : > { %2455 = vmatpush.msrb.mxu3 %v1368_v18  ;;  %v568_v35 = vld [vmem:[%s4362_s23 + $0x50] sm:$0xff]  ;;  %2503 = vmatpush.msrb.mxu2 %v1305_v33  ;;  %v713_v3 = vld [vmem:[%s4362_s23 + $0x4d8] sm:$0xff] }
 0x20e   : > { %v824_v36 = vld [vmem:[%s4362_s23 + $0x850] sm:$0xff]  ;;  %2397 = vmatpush.msra.mxu0 %v568_v35  ;;  %v969_v22 = vld [vmem:[%s4362_s23 + $0xcd8] sm:$0xff]  ;;  %2438 = vmatmul.f32.vlgmr.msra.gmra.mxu2 %v5043_v0  ;;  %v810_v0 = vld [vmem:[%s4362_s23 + $0x7e0] sm:$0xff] }
 0x20f   : > { %2456 = vmatpush.msrb.mxu3 %v1352_v25  ;;  %2417 = vmatpush.msrb.mxu1 %v824_v36  ;;  %v1193_v4 = vld [vmem:[%s4362_s23 + $0x13d8] sm:$0xff] }
 0x210   : > { %2462 = vmatpush.msrb.mxu0 %v809_v37  ;;  %2504 = vmatpush.msrb.mxu2 %v1289_v39  ;;  %v1465_v5 = vld [vmem:[%s4362_s23 + $0x1c58] sm:$0xff] }
 0x211   : > { %2457 = vmatpush.msrb.mxu3 %v1336_v31  ;;  %2482 = vmatpush.msra.mxu1 %v1065_v38  ;;  %v697_v6 = vld [vmem:[%s4362_s23 + $0x458] sm:$0xff] }
 0x212   : > { %2463 = vmatpush.msrb.mxu0 %v793_v41  ;;  %2505 = vmatpush.msrb.mxu2 %v1273_v45  ;;  %v953_v24 = vld [vmem:[%s4362_s23 + $0xc58] sm:$0xff] }
 0x213   : > { %2522 = vmatpush.msra.mxu3 %v1577_v34  ;;  %2483 = vmatpush.msra.mxu1 %v1049_v43  ;;  %v1177_v8 = vld [vmem:[%s4362_s23 + $0x1358] sm:$0xff] }
 0x214   : > { %2464 = vmatpush.msrb.mxu0 %v777_v48  ;;  %2506 = vmatpush.msrb.mxu2 %v1257_v50  ;;  %v1449_v10 = vld [vmem:[%s4362_s23 + $0x1bd8] sm:$0xff] }
 0x215   : > { %2523 = vmatpush.msra.mxu3 %v1561_v40  ;;  %2484 = vmatpush.msra.mxu1 %v1033_v49  ;;  %v681_v55 = vld [vmem:[%s4362_s23 + $0x3d8] sm:$0xff] }
 0x216   : > { %2465 = vmatpush.msrb.mxu0 %v761_v52  ;;  %2507 = vmatpush.msrb.mxu2 %v1241_v54  ;;  %v937_v12 = vld [vmem:[%s4362_s23 + $0xbd8] sm:$0xff]  ;;  %v1306_v52 = vld [vmem:[%s4362_s23 + $0x1760] sm:$0xff] }
 0x217   : > { %2524 = vmatpush.msra.mxu3 %v1545_v47  ;;  %2485 = vmatpush.msra.mxu1 %v1017_v53  ;;  %v1161_v14 = vld [vmem:[%s4362_s23 + $0x12d8] sm:$0xff]  ;;  %v1322_v47 = vld [vmem:[%s4362_s23 + $0x17e0] sm:$0xff] }
 0x218   : > { %2466 = vmatpush.msrb.mxu0 %v745_v13  ;;  %2508 = vmatpush.msrb.mxu2 %v1225_v59  ;;  %v1433_v15 = vld [vmem:[%s4362_s23 + $0x1b58] sm:$0xff]  ;;  %v1578_v54 = vld [vmem:[%s4362_s23 + $0x1fe0] sm:$0xff] }
 0x219   : > { %2525 = vmatpush.msra.mxu3 %v1529_v51  ;;  %2486 = vmatpush.msra.mxu1 %v1001_v57  ;;  %v665_v16 = vld [vmem:[%s4362_s23 + $0x358] sm:$0xff]  ;;  %v1066_v57 = vld [vmem:[%s4362_s23 + $0xfe0] sm:$0xff] }
 0x21a   : > { %2467 = vmatpush.msrb.mxu0 %v729_v61  ;;  %2509 = vmatpush.msrb.mxu2 %v1209_v2  ;;  %v921_v17 = vld [vmem:[%s4362_s23 + $0xb58] sm:$0xff]  ;;  %v1290_v59 = vld [vmem:[%s4362_s23 + $0x16e0] sm:$0xff] }
 0x21b   : > { %2526 = vmatpush.msra.mxu3 %v1513_v56  ;;  %2487 = vmatpush.msra.mxu1 %v985_v62  ;;  %v1145_v18 = vld [vmem:[%s4362_s23 + $0x1258] sm:$0xff]  ;;  %v794_v61 = vld [vmem:[%s4362_s23 + $0x760] sm:$0xff] }
 0x21c   : > { %2468 = vmatpush.msrb.mxu0 %v713_v3  ;;  %2510 = vmatpush.msrb.mxu2 %v1193_v4  ;;  %v1417_v19 = vld [vmem:[%s4362_s23 + $0x1ad8] sm:$0xff]  ;;  %v1050_v62 = vld [vmem:[%s4362_s23 + $0xf60] sm:$0xff] }
 0x21d   : > { %2527 = vmatpush.msra.mxu3 %v1497_v60  ;;  %2488 = vmatpush.msra.mxu1 %v969_v22  ;;  %v649_v42 = vld [vmem:[%s4362_s23 + $0x2d8] sm:$0xff]  ;;  %v1562_v60 = vld [vmem:[%s4362_s23 + $0x1f60] sm:$0xff] }
 0x21e   : > { %2469 = vmatpush.msrb.mxu0 %v697_v6  ;;  %2511 = vmatpush.msrb.mxu2 %v1177_v8  ;;  %v905_v20 = vld [vmem:[%s4362_s23 + $0xad8] sm:$0xff]  ;;  %v1274_v2 = vld [vmem:[%s4362_s23 + $0x1660] sm:$0xff] }
 0x21f   : > { %2528 = vmatpush.msra.mxu3 %v1481_v44  ;;  %2489 = vmatpush.msra.mxu1 %v953_v24  ;;  %v1129_v21 = vld [vmem:[%s4362_s23 + $0x11d8] sm:$0xff]  ;;  %v1546_v44 = vld [vmem:[%s4362_s23 + $0x1ee0] sm:$0xff] }
 0x220   : > { %2470 = vmatpush.msrb.mxu0 %v681_v55  ;;  %2512 = vmatpush.msrb.mxu2 %v1161_v14  ;;  %v1401_v23 = vld [vmem:[%s4362_s23 + $0x1a58] sm:$0xff]  ;;  %v778_v3 = vld [vmem:[%s4362_s23 + $0x6e0] sm:$0xff] }
 0x221   : > { %2529 = vmatpush.msra.mxu3 %v1465_v5  ;;  %2490 = vmatpush.msra.mxu1 %v937_v12  ;;  %v633_v25 = vld [vmem:[%s4362_s23 + $0x258] sm:$0xff]  ;;  %v2079_v34 = vpop.f32.mrf.mxu0  ;;  %v1258_v22 = vld [vmem:[%s4362_s23 + $0x15e0] sm:$0xff] }
 0x222   : > { %2471 = vmatpush.msrb.mxu0 %v665_v16  ;;  %2513 = vmatpush.msrb.mxu2 %v1145_v18  ;;  %v889_v26 = vld [vmem:[%s4362_s23 + $0xa58] sm:$0xff]  ;;  %v2099_v37 = vpop.f32.mrf.mxu1  ;;  %v2119_v38 = vpop.f32.mrf.mxu2  ;;  %v762_v4 = vld [vmem:[%s4362_s23 + $0x660] sm:$0xff] }
 0x223   : > { %2530 = vmatpush.msra.mxu3 %v1449_v10  ;;  %2491 = vmatpush.msra.mxu1 %v921_v17  ;;  %v1113_v27 = vld [vmem:[%s4362_s23 + $0x1158] sm:$0xff]  ;;  %v2100_v41 = vadd.f32 %v2099_v37, %v2079_v34  ;;  %v1018_v5 = vld [vmem:[%s4362_s23 + $0xe60] sm:$0xff] }
 0x224   : > { %2472 = vmatpush.msrb.mxu0 %v649_v42  ;;  %2514 = vmatpush.msrb.mxu2 %v1129_v21  ;;  %v1385_v28 = vld [vmem:[%s4362_s23 + $0x19d8] sm:$0xff]  ;;  %v1242_v6 = vld [vmem:[%s4362_s23 + $0x1560] sm:$0xff] }
 0x225   : > { %2531 = vmatpush.msra.mxu3 %v1433_v15  ;;  %2492 = vmatpush.msra.mxu1 %v905_v20  ;;  %v617_v30 = vld [vmem:[%s4362_s23 + $0x1d8] sm:$0xff]  ;;  %v2139_v45 = vpop.f32.mrf.mxu3  ;;  %v2120_v49 = vadd.f32 %v2119_v38, %v2100_v41  ;;  %v1514_v24 = vld [vmem:[%s4362_s23 + $0x1de0] sm:$0xff] }
 0x226   : > { %2473 = vmatpush.msrb.mxu0 %v633_v25  ;;  %v873_v31 = vld [vmem:[%s4362_s23 + $0x9d8] sm:$0xff]  ;;  %2515 = vmatpush.msrb.mxu2 %v1113_v27  ;;  %v746_v8 = vld [vmem:[%s4362_s23 + $0x5e0] sm:$0xff] }
 0x227   : > { %2532 = vmatpush.msra.mxu3 %v1417_v19  ;;  %v1097_v33 = vld [vmem:[%s4362_s23 + $0x10d8] sm:$0xff]  ;;  %2493 = vmatpush.msra.mxu1 %v889_v26  ;;  %v5270_v53 = vadd.f32 %v2139_v45, %v2120_v49  ;;  %v1002_v10 = vld [vmem:[%s4362_s23 + $0xde0] sm:$0xff] }
 0x228   : > { %v1369_v35 = vld [vmem:[%s4362_s23 + $0x1958] sm:$0xff]  ;;  %2474 = vmatpush.msrb.mxu0 %v617_v30  ;;  %2516 = vmatpush.msrb.mxu2 %v1097_v33  ;;  %v1226_v55 = vld [vmem:[%s4362_s23 + $0x14e0] sm:$0xff] }
 0x229   : > { %2533 = vmatpush.msra.mxu3 %v1401_v23  ;;  %v601_v36 = vld [vmem:[%s4362_s23 + $0x158] sm:$0xff]  ;;  %2494 = vmatpush.msra.mxu1 %v873_v31  ;;  %v1498_v12 = vld [vmem:[%s4362_s23 + $0x1d60] sm:$0xff] }
 0x22a   : > { %v857_v39 = vld [vmem:[%s4362_s23 + $0x958] sm:$0xff]  ;;  %2475 = vmatpush.msrb.mxu0 %v601_v36  ;;  %2458 = vmatmul.f32.vlgmr.msrb.gmra.mxu3 %v5133_v63  ;;  %v730_v14 = vld [vmem:[%s4362_s23 + $0x560] sm:$0xff] }
 0x22b   : > { %2534 = vmatpush.msra.mxu3 %v1385_v28  ;;  %v1081_v40 = vld [vmem:[%s4362_s23 + $0x1058] sm:$0xff]  ;;  %2495 = vmatpush.msra.mxu1 %v857_v39  ;;  %v986_v15 = vld [vmem:[%s4362_s23 + $0xd60] sm:$0xff] }
 0x22c   : > { %v1353_v43 = vld [vmem:[%s4362_s23 + $0x18d8] sm:$0xff]  ;;  %2517 = vmatpush.msrb.mxu2 %v1081_v40  ;;  %2398 = vmatmul.f32.vlgmr.msra.gmra.mxu0 %v5057_v7  ;;  %v1034_v7 = vld [vmem:[%s4362_s23 + $0xee0] sm:$0xff] }
 0x22d   : > { %2535 = vmatpush.msra.mxu3 %v1369_v35  ;;  %v585_v48 = vld [vmem:[%s4362_s23 + $0xd8] sm:$0xff]  ;;  %2418 = vmatmul.f32.vlgmr.msrb.gmra.mxu1 %v5065_v9  ;;  %v1530_v9 = vld [vmem:[%s4362_s23 + $0x1e60] sm:$0xff] }
 0x22e   : > { %v841_v50 = vld [vmem:[%s4362_s23 + $0x8d8] sm:$0xff]  ;;  %2582 = vmatpush.msra.mxu2 %v1322_v47  ;;  %2476 = vmatpush.msrb.mxu0 %v585_v48  ;;  %v1210_v16 = vld [vmem:[%s4362_s23 + $0x1460] sm:$0xff] }
 0x22f   : > { %v1337_v51 = vld [vmem:[%s4362_s23 + $0x1858] sm:$0xff]  ;;  %2536 = vmatpush.msra.mxu3 %v1353_v43  ;;  %2496 = vmatpush.msra.mxu1 %v841_v50  ;;  %v1482_v17 = vld [vmem:[%s4362_s23 + $0x1ce0] sm:$0xff] }
 0x230   : > { %v569_v56 = vld [vmem:[%s4362_s23 + $0x58] sm:$0xff]  ;;  %2583 = vmatpush.msra.mxu2 %v1306_v52  ;;  %v714_v18 = vld [vmem:[%s4362_s23 + $0x4e0] sm:$0xff] }
 0x231   : > { %2537 = vmatpush.msra.mxu3 %v1337_v51  ;;  %v825_v13 = vld [vmem:[%s4362_s23 + $0x858] sm:$0xff]  ;;  %2477 = vmatpush.msrb.mxu0 %v569_v56  ;;  %v970_v19 = vld [vmem:[%s4362_s23 + $0xce0] sm:$0xff] }
 0x232   : > { %2497 = vmatpush.msra.mxu1 %v825_v13  ;;  %2584 = vmatpush.msra.mxu2 %v1290_v59  ;;  %v1194_v42 = vld [vmem:[%s4362_s23 + $0x13e0] sm:$0xff] }
 0x233   : > { %2602 = vmatpush.msrb.mxu3 %v1578_v54  ;;  %2542 = vmatpush.msra.mxu0 %v810_v0  ;;  %v1466_v20 = vld [vmem:[%s4362_s23 + $0x1c60] sm:$0xff] }
 0x234   : > { %2562 = vmatpush.msrb.mxu1 %v1066_v57  ;;  %2585 = vmatpush.msra.mxu2 %v1274_v2  ;;  %v698_v21 = vld [vmem:[%s4362_s23 + $0x460] sm:$0xff] }
 0x235   : > { %2603 = vmatpush.msrb.mxu3 %v1562_v60  ;;  %2543 = vmatpush.msra.mxu0 %v794_v61  ;;  %v954_v23 = vld [vmem:[%s4362_s23 + $0xc60] sm:$0xff]  ;;  %v1323_v61 = vld [vmem:[%s4362_s23 + $0x17e8] sm:$0xff] }
 0x236   : > { %2563 = vmatpush.msrb.mxu1 %v1050_v62  ;;  %2586 = vmatpush.msra.mxu2 %v1258_v22  ;;  %v1178_v25 = vld [vmem:[%s4362_s23 + $0x1360] sm:$0xff]  ;;  %v5341_v22 = vld [vmem:[%s5878_s0 + $0x10] sm:$0xff] }
 0x237   : > { %2604 = vmatpush.msrb.mxu3 %v1546_v44  ;;  %2544 = vmatpush.msra.mxu0 %v778_v3  ;;  %v1450_v26 = vld [vmem:[%s4362_s23 + $0x1be0] sm:$0xff] }
 0x238   : > { %2564 = vmatpush.msrb.mxu1 %v1034_v7  ;;  %2587 = vmatpush.msra.mxu2 %v1242_v6  ;;  %v682_v27 = vld [vmem:[%s4362_s23 + $0x3e0] sm:$0xff] }
 0x239   : > { %2605 = vmatpush.msrb.mxu3 %v1530_v9  ;;  %2545 = vmatpush.msra.mxu0 %v762_v4  ;;  %v938_v28 = vld [vmem:[%s4362_s23 + $0xbe0] sm:$0xff]  ;;  %v1307_v9 = vld [vmem:[%s4362_s23 + $0x1768] sm:$0xff] }
 0x23a   : > { %2565 = vmatpush.msrb.mxu1 %v1018_v5  ;;  %2588 = vmatpush.msra.mxu2 %v1226_v55  ;;  %v1162_v30 = vld [vmem:[%s4362_s23 + $0x12e0] sm:$0xff]  ;;  %v1579_v5 = vld [vmem:[%s4362_s23 + $0x1fe8] sm:$0xff] }
 0x23b   : > { %2606 = vmatpush.msrb.mxu3 %v1514_v24  ;;  %2546 = vmatpush.msra.mxu0 %v746_v8  ;;  %v1434_v31 = vld [vmem:[%s4362_s23 + $0x1b60] sm:$0xff]  ;;  %v811_v8 = vld [vmem:[%s4362_s23 + $0x7e8] sm:$0xff] }
 0x23c   : > { %2566 = vmatpush.msrb.mxu1 %v1002_v10  ;;  %2589 = vmatpush.msra.mxu2 %v1210_v16  ;;  %v666_v33 = vld [vmem:[%s4362_s23 + $0x360] sm:$0xff]  ;;  %v1067_v10 = vld [vmem:[%s4362_s23 + $0xfe8] sm:$0xff] }
 0x23d   : > { %2607 = vmatpush.msrb.mxu3 %v1498_v12  ;;  %2547 = vmatpush.msra.mxu0 %v730_v14  ;;  %v922_v34 = vld [vmem:[%s4362_s23 + $0xb60] sm:$0xff]  ;;  %v1291_v55 = vld [vmem:[%s4362_s23 + $0x16e8] sm:$0xff] }
 0x23e   : > { %2567 = vmatpush.msrb.mxu1 %v986_v15  ;;  %2590 = vmatpush.msra.mxu2 %v1194_v42  ;;  %v1146_v35 = vld [vmem:[%s4362_s23 + $0x1260] sm:$0xff]  ;;  %v795_v14 = vld [vmem:[%s4362_s23 + $0x768] sm:$0xff] }
 0x23f   : > { %2608 = vmatpush.msrb.mxu3 %v1482_v17  ;;  %2548 = vmatpush.msra.mxu0 %v714_v18  ;;  %v1418_v36 = vld [vmem:[%s4362_s23 + $0x1ae0] sm:$0xff]  ;;  %v5365_v15 = vld [vmem:[%s5878_s0 + $0x8] sm:$0xff] }
 0x240   : > { %2568 = vmatpush.msrb.mxu1 %v970_v19  ;;  %2591 = vmatpush.msra.mxu2 %v1178_v25  ;;  %v650_v37 = vld [vmem:[%s4362_s23 + $0x2e0] sm:$0xff]  ;;  %v2179_v56 = vpop.f32.mrf.mxu1  ;;  %v1051_v16 = vld [vmem:[%s4362_s23 + $0xf68] sm:$0xff] }
 0x241   : > { %2609 = vmatpush.msrb.mxu3 %v1466_v20  ;;  %2549 = vmatpush.msra.mxu0 %v698_v21  ;;  %v906_v38 = vld [vmem:[%s4362_s23 + $0xae0] sm:$0xff]  ;;  %v1275_v17 = vld [vmem:[%s4362_s23 + $0x1668] sm:$0xff] }
 0x242   : > { %2569 = vmatpush.msrb.mxu1 %v954_v23  ;;  %2592 = vmatpush.msra.mxu2 %v1162_v30  ;;  %v1130_v39 = vld [vmem:[%s4362_s23 + $0x11e0] sm:$0xff]  ;;  %v1547_v18 = vld [vmem:[%s4362_s23 + $0x1ee8] sm:$0xff] }
 0x243   : > { %2610 = vmatpush.msrb.mxu3 %v1450_v26  ;;  %2550 = vmatpush.msra.mxu0 %v682_v27  ;;  %v1402_v40 = vld [vmem:[%s4362_s23 + $0x1a60] sm:$0xff]  ;;  %v2199_v13 = vpop.f32.mrf.mxu2  ;;  %v779_v19 = vld [vmem:[%s4362_s23 + $0x6e8] sm:$0xff] }
 0x244   : > { %2570 = vmatpush.msrb.mxu1 %v938_v28  ;;  %2593 = vmatpush.msra.mxu2 %v1146_v35  ;;  %v634_v41 = vld [vmem:[%s4362_s23 + $0x260] sm:$0xff]  ;;  %v1035_v42 = vld [vmem:[%s4362_s23 + $0xee8] sm:$0xff] }
 0x245   : > { %2611 = vmatpush.msrb.mxu3 %v1434_v31  ;;  %2551 = vmatpush.msra.mxu0 %v666_v33  ;;  %v890_v43 = vld [vmem:[%s4362_s23 + $0xa60] sm:$0xff]  ;;  %v2219_v44 = vpop.f32.mrf.mxu3  ;;  %v1259_v20 = vld [vmem:[%s4362_s23 + $0x15e8] sm:$0xff] }
 0x246   : > { %2571 = vmatpush.msrb.mxu1 %v922_v34  ;;  %v1114_v45 = vld [vmem:[%s4362_s23 + $0x1160] sm:$0xff]  ;;  %2594 = vmatpush.msra.mxu2 %v1130_v39  ;;  %v2159_v51 = vpop.f32.mrf.mxu0  ;;  %v1531_v21 = vld [vmem:[%s4362_s23 + $0x1e68] sm:$0xff] }
 0x247   : > { %2612 = vmatpush.msrb.mxu3 %v1418_v36  ;;  %2552 = vmatpush.msra.mxu0 %v650_v37  ;;  %v1386_v47 = vld [vmem:[%s4362_s23 + $0x19e0] sm:$0xff]  ;;  %v2180_v59 = vadd.f32 %v2179_v56, %v2159_v51  ;;  %v763_v23 = vld [vmem:[%s4362_s23 + $0x668] sm:$0xff] }
 0x248   : > { %2572 = vmatpush.msrb.mxu1 %v906_v38  ;;  %v618_v48 = vld [vmem:[%s4362_s23 + $0x1e0] sm:$0xff]  ;;  %2595 = vmatpush.msra.mxu2 %v1114_v45  ;;  %v1019_v25 = vld [vmem:[%s4362_s23 + $0xe68] sm:$0xff] }
 0x249   : > { %2613 = vmatpush.msrb.mxu3 %v1402_v40  ;;  %2553 = vmatpush.msra.mxu0 %v634_v41  ;;  %v874_v49 = vld [vmem:[%s4362_s23 + $0x9e0] sm:$0xff]  ;;  %v2200_v2 = vadd.f32 %v2199_v13, %v2180_v59  ;;  %v1243_v26 = vld [vmem:[%s4362_s23 + $0x1568] sm:$0xff] }
 0x24a   : > { %v1098_v50 = vld [vmem:[%s4362_s23 + $0x10e0] sm:$0xff]  ;;  %2573 = vmatpush.msrb.mxu1 %v890_v43  ;;  %2518 = vmatmul.f32.vlgmr.msrb.gmra.mxu2 %v5341_v22  ;;  %v1515_v27 = vld [vmem:[%s4362_s23 + $0x1de8] sm:$0xff] }
 0x24b   : > { %v1370_v52 = vld [vmem:[%s4362_s23 + $0x1960] sm:$0xff]  ;;  %2614 = vmatpush.msrb.mxu3 %v1386_v47  ;;  %2554 = vmatpush.msra.mxu0 %v618_v48  ;;  %v5345_v4 = vadd.f32 %v2219_v44, %v2200_v2  ;;  %v747_v28 = vld [vmem:[%s4362_s23 + $0x5e8] sm:$0xff] }
 0x24c   : > { %v602_v54 = vld [vmem:[%s4362_s23 + $0x160] sm:$0xff]  ;;  %2574 = vmatpush.msrb.mxu1 %v874_v49  ;;  %2596 = vmatpush.msra.mxu2 %v1098_v50  ;;  %v1003_v30 = vld [vmem:[%s4362_s23 + $0xde8] sm:$0xff] }
 0x24d   : > { %v858_v0 = vld [vmem:[%s4362_s23 + $0x960] sm:$0xff]  ;;  %2615 = vmatpush.msrb.mxu3 %v1370_v52  ;;  %2555 = vmatpush.msra.mxu0 %v602_v54  ;;  %v1227_v31 = vld [vmem:[%s4362_s23 + $0x14e8] sm:$0xff] }
 0x24e   : > { %v1082_v57 = vld [vmem:[%s4362_s23 + $0x1060] sm:$0xff]  ;;  %2575 = vmatpush.msrb.mxu1 %v858_v0  ;;  %2538 = vmatmul.f32.vlgmr.msra.gmra.mxu3 %v5133_v63  ;;  %v1563_v63 = vld [vmem:[%s4362_s23 + $0x1f68] sm:$0xff] }
 0x24f   : > { %v1354_v60 = vld [vmem:[%s4362_s23 + $0x18e0] sm:$0xff]  ;;  %2597 = vmatpush.msra.mxu2 %v1082_v57  ;;  %2498 = vmatmul.f32.vlgmr.msra.gmra.mxu1 %v5365_v15  ;;  %v1499_v33 = vld [vmem:[%s4362_s23 + $0x1d68] sm:$0xff] }
 0x250   : > { %v586_v62 = vld [vmem:[%s4362_s23 + $0xe0] sm:$0xff]  ;;  %2616 = vmatpush.msrb.mxu3 %v1354_v60  ;;  %v731_v34 = vld [vmem:[%s4362_s23 + $0x568] sm:$0xff] }
 0x251   : > { %v842_v3 = vld [vmem:[%s4362_s23 + $0x8e0] sm:$0xff]  ;;  %2662 = vmatpush.msrb.mxu2 %v1323_v61  ;;  %2556 = vmatpush.msra.mxu0 %v586_v62  ;;  %v987_v35 = vld [vmem:[%s4362_s23 + $0xd68] sm:$0xff] }
 0x252   : > { %v1338_v7 = vld [vmem:[%s4362_s23 + $0x1860] sm:$0xff]  ;;  %2576 = vmatpush.msrb.mxu1 %v842_v3  ;;  %v1211_v36 = vld [vmem:[%s4362_s23 + $0x1468] sm:$0xff]  ;;  %2598 = vmatmul.f32.vlgmr.msra.gmra.mxu2 %v5341_v22 }
 0x253   : > { %v570_v6 = vld [vmem:[%s4362_s23 + $0x60] sm:$0xff]  ;;  %2617 = vmatpush.msrb.mxu3 %v1338_v7  ;;  %2663 = vmatpush.msrb.mxu2 %v1307_v9  ;;  %v1483_v37 = vld [vmem:[%s4362_s23 + $0x1ce8] sm:$0xff] }
 0x254   : > { %v826_v24 = vld [vmem:[%s4362_s23 + $0x860] sm:$0xff]  ;;  %2557 = vmatpush.msra.mxu0 %v570_v6  ;;  %v715_v38 = vld [vmem:[%s4362_s23 + $0x4e8] sm:$0xff] }
 0x255   : > { %2682 = vmatpush.msra.mxu3 %v1579_v5  ;;  %2577 = vmatpush.msrb.mxu1 %v826_v24  ;;  %v5357_v12 = vld [vmem:[%s5878_s0] sm:$0xff]  ;;  %v971_v39 = vld [vmem:[%s4362_s23 + $0xce8] sm:$0xff] }
 0x256   : > { %2478 = vmatmul.f32.vlgmr.msrb.gmra.mxu0 %v5357_v12  ;;  %2664 = vmatpush.msrb.mxu2 %v1291_v55  ;;  %v1195_v40 = vld [vmem:[%s4362_s23 + $0x13e8] sm:$0xff] }
 0x257   : > { %2622 = vmatpush.msrb.mxu0 %v811_v8  ;;  %2642 = vmatpush.msra.mxu1 %v1067_v10  ;;  %v1467_v41 = vld [vmem:[%s4362_s23 + $0x1c68] sm:$0xff] }
 0x258   : > { %2683 = vmatpush.msra.mxu3 %v1563_v63  ;;  %2665 = vmatpush.msrb.mxu2 %v1275_v17  ;;  %v699_v43 = vld [vmem:[%s4362_s23 + $0x468] sm:$0xff] }
 0x259   : > { %2623 = vmatpush.msrb.mxu0 %v795_v14  ;;  %2643 = vmatpush.msra.mxu1 %v1051_v16  ;;  %v955_v45 = vld [vmem:[%s4362_s23 + $0xc68] sm:$0xff] }
 0x25a   : > { %2684 = vmatpush.msra.mxu3 %v1547_v18  ;;  %2666 = vmatpush.msrb.mxu2 %v1259_v20  ;;  %v1179_v47 = vld [vmem:[%s4362_s23 + $0x1368] sm:$0xff]  ;;  %v1324_v18 = vld [vmem:[%s4362_s23 + $0x17f0] sm:$0xff] }
 0x25b   : > { %2624 = vmatpush.msrb.mxu0 %v779_v19  ;;  %2644 = vmatpush.msra.mxu1 %v1035_v42  ;;  %v1451_v48 = vld [vmem:[%s4362_s23 + $0x1be8] sm:$0xff] }
 0x25c   : > { %2685 = vmatpush.msra.mxu3 %v1531_v21  ;;  %2667 = vmatpush.msrb.mxu2 %v1243_v26  ;;  %v683_v49 = vld [vmem:[%s4362_s23 + $0x3e8] sm:$0xff] }
 0x25d   : > { %2625 = vmatpush.msrb.mxu0 %v763_v23  ;;  %2645 = vmatpush.msra.mxu1 %v1019_v25  ;;  %v939_v50 = vld [vmem:[%s4362_s23 + $0xbe8] sm:$0xff]  ;;  %v1308_v25 = vld [vmem:[%s4362_s23 + $0x1770] sm:$0xff] }
 0x25e   : > { %2686 = vmatpush.msra.mxu3 %v1515_v27  ;;  %2668 = vmatpush.msrb.mxu2 %v1227_v31  ;;  %v1163_v51 = vld [vmem:[%s4362_s23 + $0x12e8] sm:$0xff]  ;;  %v1580_v27 = vld [vmem:[%s4362_s23 + $0x1ff0] sm:$0xff]  ;;  %v5433_v31 = vld [vmem:[%s5878_s0 + $0x18] sm:$0xff] }
 0x25f   : > { %2626 = vmatpush.msrb.mxu0 %v747_v28  ;;  %2646 = vmatpush.msra.mxu1 %v1003_v30  ;;  %v1435_v52 = vld [vmem:[%s4362_s23 + $0x1b68] sm:$0xff] }
 0x260   : > { %2687 = vmatpush.msra.mxu3 %v1499_v33  ;;  %2669 = vmatpush.msrb.mxu2 %v1211_v36  ;;  %v667_v54 = vld [vmem:[%s4362_s23 + $0x368] sm:$0xff]  ;;  %v812_v33 = vld [vmem:[%s4362_s23 + $0x7f0] sm:$0xff] }
 0x261   : > { %2627 = vmatpush.msrb.mxu0 %v731_v34  ;;  %2647 = vmatpush.msra.mxu1 %v987_v35  ;;  %v923_v56 = vld [vmem:[%s4362_s23 + $0xb68] sm:$0xff]  ;;  %v1068_v34 = vld [vmem:[%s4362_s23 + $0xff0] sm:$0xff] }
 0x262   : > { %2688 = vmatpush.msra.mxu3 %v1483_v37  ;;  %2670 = vmatpush.msrb.mxu2 %v1195_v40  ;;  %v1147_v13 = vld [vmem:[%s4362_s23 + $0x1268] sm:$0xff]  ;;  %v1292_v35 = vld [vmem:[%s4362_s23 + $0x16f0] sm:$0xff] }
 0x263   : > { %2628 = vmatpush.msrb.mxu0 %v715_v38  ;;  %2648 = vmatpush.msra.mxu1 %v971_v39  ;;  %v1419_v0 = vld [vmem:[%s4362_s23 + $0x1ae8] sm:$0xff]  ;;  %v2239_v6 = vpop.f32.mrf.mxu0  ;;  %v1564_v36 = vld [vmem:[%s4362_s23 + $0x1f70] sm:$0xff] }
 0x264   : > { %2689 = vmatpush.msra.mxu3 %v1467_v41  ;;  %2671 = vmatpush.msrb.mxu2 %v1179_v47  ;;  %v651_v57 = vld [vmem:[%s4362_s23 + $0x2e8] sm:$0xff]  ;;  %v796_v37 = vld [vmem:[%s4362_s23 + $0x770] sm:$0xff] }
 0x265   : > { %2629 = vmatpush.msrb.mxu0 %v699_v43  ;;  %2649 = vmatpush.msra.mxu1 %v955_v45  ;;  %v907_v59 = vld [vmem:[%s4362_s23 + $0xae8] sm:$0xff]  ;;  %v1052_v38 = vld [vmem:[%s4362_s23 + $0xf70] sm:$0xff] }
 0x266   : > { %2690 = vmatpush.msra.mxu3 %v1451_v48  ;;  %2672 = vmatpush.msrb.mxu2 %v1163_v51  ;;  %v1131_v60 = vld [vmem:[%s4362_s23 + $0x11e8] sm:$0xff]  ;;  %v2279_v55 = vpop.f32.mrf.mxu2  ;;  %v1276_v39 = vld [vmem:[%s4362_s23 + $0x1670] sm:$0xff] }
 0x267   : > { %2630 = vmatpush.msrb.mxu0 %v683_v49  ;;  %2650 = vmatpush.msra.mxu1 %v939_v50  ;;  %v1403_v61 = vld [vmem:[%s4362_s23 + $0x1a68] sm:$0xff]  ;;  %v2259_v10 = vpop.f32.mrf.mxu1  ;;  %v1548_v40 = vld [vmem:[%s4362_s23 + $0x1ef0] sm:$0xff] }
 0x268   : > { %2691 = vmatpush.msra.mxu3 %v1435_v52  ;;  %2673 = vmatpush.msrb.mxu2 %v1147_v13  ;;  %v635_v62 = vld [vmem:[%s4362_s23 + $0x268] sm:$0xff]  ;;  %v2260_v16 = vadd.f32 %v2259_v10, %v2239_v6  ;;  %v780_v41 = vld [vmem:[%s4362_s23 + $0x6f0] sm:$0xff] }
 0x269   : > { %2631 = vmatpush.msrb.mxu0 %v667_v54  ;;  %2651 = vmatpush.msra.mxu1 %v923_v56  ;;  %v891_v2 = vld [vmem:[%s4362_s23 + $0xa68] sm:$0xff]  ;;  %v2299_v20 = vpop.f32.mrf.mxu3  ;;  %v1036_v43 = vld [vmem:[%s4362_s23 + $0xef0] sm:$0xff] }
 0x26a   : > { %2692 = vmatpush.msra.mxu3 %v1419_v0  ;;  %v1115_v44 = vld [vmem:[%s4362_s23 + $0x1168] sm:$0xff]  ;;  %2674 = vmatpush.msrb.mxu2 %v1131_v60  ;;  %v2280_v42 = vadd.f32 %v2279_v55, %v2260_v16  ;;  %v1260_v45 = vld [vmem:[%s4362_s23 + $0x15f0] sm:$0xff] }
 0x26b   : > { %2632 = vmatpush.msrb.mxu0 %v651_v57  ;;  %2652 = vmatpush.msra.mxu1 %v907_v59  ;;  %v1387_v3 = vld [vmem:[%s4362_s23 + $0x19e8] sm:$0xff]  ;;  %v1532_v47 = vld [vmem:[%s4362_s23 + $0x1e70] sm:$0xff] }
 0x26c   : > { %v619_v7 = vld [vmem:[%s4362_s23 + $0x1e8] sm:$0xff]  ;;  %2693 = vmatpush.msra.mxu3 %v1403_v61  ;;  %2675 = vmatpush.msrb.mxu2 %v1115_v44  ;;  %v5425_v26 = vadd.f32 %v2299_v20, %v2280_v42  ;;  %v764_v48 = vld [vmem:[%s4362_s23 + $0x670] sm:$0xff] }
 0x26d   : > { %2633 = vmatpush.msrb.mxu0 %v635_v62  ;;  %v875_v9 = vld [vmem:[%s4362_s23 + $0x9e8] sm:$0xff]  ;;  %2653 = vmatpush.msra.mxu1 %v891_v2  ;;  %v1020_v49 = vld [vmem:[%s4362_s23 + $0xe70] sm:$0xff] }
 0x26e   : > { %v1099_v5 = vld [vmem:[%s4362_s23 + $0x10e8] sm:$0xff]  ;;  %2694 = vmatpush.msra.mxu3 %v1387_v3  ;;  %2558 = vmatmul.f32.vlgmr.msra.gmra.mxu0 %v5357_v12  ;;  %v1244_v50 = vld [vmem:[%s4362_s23 + $0x1570] sm:$0xff] }
 0x26f   : > { %v1371_v24 = vld [vmem:[%s4362_s23 + $0x1968] sm:$0xff]  ;;  %2634 = vmatpush.msrb.mxu0 %v619_v7  ;;  %2654 = vmatpush.msra.mxu1 %v875_v9  ;;  %v1516_v51 = vld [vmem:[%s4362_s23 + $0x1df0] sm:$0xff] }
 0x270   : > { %v603_v8 = vld [vmem:[%s4362_s23 + $0x168] sm:$0xff]  ;;  %2676 = vmatpush.msrb.mxu2 %v1099_v5  ;;  %2695 = vmatpush.msra.mxu3 %v1371_v24  ;;  %v748_v52 = vld [vmem:[%s4362_s23 + $0x5f0] sm:$0xff] }
 0x271   : > { %v859_v63 = vld [vmem:[%s4362_s23 + $0x968] sm:$0xff]  ;;  %2635 = vmatpush.msrb.mxu0 %v603_v8  ;;  %2618 = vmatmul.f32.vlgmr.msrb.gmra.mxu3 %v5433_v31  ;;  %v1004_v54 = vld [vmem:[%s4362_s23 + $0xdf0] sm:$0xff] }
 0x272   : > { %v1083_v14 = vld [vmem:[%s4362_s23 + $0x1068] sm:$0xff]  ;;  %2655 = vmatpush.msra.mxu1 %v859_v63  ;;  %v1228_v56 = vld [vmem:[%s4362_s23 + $0x14f0] sm:$0xff] }
 0x273   : > { %v1355_v17 = vld [vmem:[%s4362_s23 + $0x18e8] sm:$0xff]  ;;  %2677 = vmatpush.msrb.mxu2 %v1083_v14  ;;  %2578 = vmatmul.f32.vlgmr.msrb.gmra.mxu1 %v5365_v15  ;;  %v1500_v13 = vld [vmem:[%s4362_s23 + $0x1d70] sm:$0xff] }
 0x274   : > { %v587_v19 = vld [vmem:[%s4362_s23 + $0xe8] sm:$0xff]  ;;  %2696 = vmatpush.msra.mxu3 %v1355_v17  ;;  %v732_v0 = vld [vmem:[%s4362_s23 + $0x570] sm:$0xff]  ;;  %2678 = vmatmul.f32.vlgmr.msrb.gmra.mxu2 %v5341_v22 }
 0x275   : > { %v843_v21 = vld [vmem:[%s4362_s23 + $0x8e8] sm:$0xff]  ;;  %2742 = vmatpush.msra.mxu2 %v1324_v18  ;;  %2636 = vmatpush.msrb.mxu0 %v587_v19  ;;  %v988_v57 = vld [vmem:[%s4362_s23 + $0xd70] sm:$0xff] }
 0x276   : > { %v1339_v23 = vld [vmem:[%s4362_s23 + $0x1868] sm:$0xff]  ;;  %2656 = vmatpush.msra.mxu1 %v843_v21  ;;  %v1212_v59 = vld [vmem:[%s4362_s23 + $0x1470] sm:$0xff] }
 0x277   : > { %v571_v28 = vld [vmem:[%s4362_s23 + $0x68] sm:$0xff]  ;;  %2697 = vmatpush.msra.mxu3 %v1339_v23  ;;  %2743 = vmatpush.msra.mxu2 %v1308_v25  ;;  %v1484_v60 = vld [vmem:[%s4362_s23 + $0x1cf0] sm:$0xff] }
 0x278   : > { %v827_v30 = vld [vmem:[%s4362_s23 + $0x868] sm:$0xff]  ;;  %2637 = vmatpush.msrb.mxu0 %v571_v28  ;;  %v716_v61 = vld [vmem:[%s4362_s23 + $0x4f0] sm:$0xff] }
 0x279   : > { %2762 = vmatpush.msrb.mxu3 %v1580_v27  ;;  %2657 = vmatpush.msra.mxu1 %v827_v30  ;;  %v972_v62 = vld [vmem:[%s4362_s23 + $0xcf0] sm:$0xff] }
 0x27a   : > { %2702 = vmatpush.msra.mxu0 %v812_v33  ;;  %2744 = vmatpush.msra.mxu2 %v1292_v35  ;;  %v1196_v2 = vld [vmem:[%s4362_s23 + $0x13f0] sm:$0xff] }
 0x27b   : > { %2722 = vmatpush.msrb.mxu1 %v1068_v34  ;;  %2763 = vmatpush.msrb.mxu3 %v1564_v36  ;;  %v1468_v44 = vld [vmem:[%s4362_s23 + $0x1c70] sm:$0xff] }
 0x27c   : > { %2703 = vmatpush.msra.mxu0 %v796_v37  ;;  %2745 = vmatpush.msra.mxu2 %v1276_v39  ;;  %v700_v3 = vld [vmem:[%s4362_s23 + $0x470] sm:$0xff] }
 0x27d   : > { %2723 = vmatpush.msrb.mxu1 %v1052_v38  ;;  %2764 = vmatpush.msrb.mxu3 %v1548_v40  ;;  %v956_v7 = vld [vmem:[%s4362_s23 + $0xc70] sm:$0xff]  ;;  %v1325_v38 = vld [vmem:[%s4362_s23 + $0x17f8] sm:$0xff] }
 0x27e   : > { %2704 = vmatpush.msra.mxu0 %v780_v41  ;;  %2746 = vmatpush.msra.mxu2 %v1260_v45  ;;  %v1180_v9 = vld [vmem:[%s4362_s23 + $0x1370] sm:$0xff]  ;;  %v1581_v45 = vld [vmem:[%s4362_s23 + $0x1ff8] sm:$0xff] }
 0x27f   : > { %2724 = vmatpush.msrb.mxu1 %v1036_v43  ;;  %2765 = vmatpush.msrb.mxu3 %v1532_v47  ;;  %v1452_v5 = vld [vmem:[%s4362_s23 + $0x1bf0] sm:$0xff]  ;;  %v1309_v43 = vld [vmem:[%s4362_s23 + $0x1778] sm:$0xff] }
 0x280   : > { %2705 = vmatpush.msra.mxu0 %v764_v48  ;;  %2747 = vmatpush.msra.mxu2 %v1244_v50  ;;  %v684_v6 = vld [vmem:[%s4362_s23 + $0x3f0] sm:$0xff]  ;;  %v1069_v50 = vld [vmem:[%s4362_s23 + $0xff8] sm:$0xff] }
 0x281   : > { %2725 = vmatpush.msrb.mxu1 %v1020_v49  ;;  %2766 = vmatpush.msrb.mxu3 %v1516_v51  ;;  %v940_v24 = vld [vmem:[%s4362_s23 + $0xbf0] sm:$0xff]  ;;  %v813_v49 = vld [vmem:[%s4362_s23 + $0x7f8] sm:$0xff] }
 0x282   : > { %2706 = vmatpush.msra.mxu0 %v748_v52  ;;  %2748 = vmatpush.msra.mxu2 %v1228_v56  ;;  %v1164_v8 = vld [vmem:[%s4362_s23 + $0x12f0] sm:$0xff]  ;;  %v1293_v51 = vld [vmem:[%s4362_s23 + $0x16f8] sm:$0xff] }
 0x283   : > { %2726 = vmatpush.msrb.mxu1 %v1004_v54  ;;  %2767 = vmatpush.msrb.mxu3 %v1500_v13  ;;  %v1436_v10 = vld [vmem:[%s4362_s23 + $0x1b70] sm:$0xff]  ;;  %v1565_v52 = vld [vmem:[%s4362_s23 + $0x1f78] sm:$0xff] }
 0x284   : > { %2707 = vmatpush.msra.mxu0 %v732_v0  ;;  %2749 = vmatpush.msra.mxu2 %v1212_v59  ;;  %v668_v55 = vld [vmem:[%s4362_s23 + $0x370] sm:$0xff]  ;;  %v797_v54 = vld [vmem:[%s4362_s23 + $0x778] sm:$0xff] }
 0x285   : > { %2727 = vmatpush.msrb.mxu1 %v988_v57  ;;  %2768 = vmatpush.msrb.mxu3 %v1484_v60  ;;  %v924_v63 = vld [vmem:[%s4362_s23 + $0xb70] sm:$0xff]  ;;  %v1053_v56 = vld [vmem:[%s4362_s23 + $0xf78] sm:$0xff] }
 0x286   : > { %2708 = vmatpush.msra.mxu0 %v716_v61  ;;  %2750 = vmatpush.msra.mxu2 %v1196_v2  ;;  %v1148_v14 = vld [vmem:[%s4362_s23 + $0x1270] sm:$0xff]  ;;  %v1277_v13 = vld [vmem:[%s4362_s23 + $0x1678] sm:$0xff] }
 0x287   : > { %2728 = vmatpush.msrb.mxu1 %v972_v62  ;;  %2769 = vmatpush.msrb.mxu3 %v1468_v44  ;;  %v1420_v16 = vld [vmem:[%s4362_s23 + $0x1af0] sm:$0xff]  ;;  %v1549_v0 = vld [vmem:[%s4362_s23 + $0x1ef8] sm:$0xff] }
 0x288   : > { %2709 = vmatpush.msra.mxu0 %v700_v3  ;;  %2751 = vmatpush.msra.mxu2 %v1180_v9  ;;  %v652_v17 = vld [vmem:[%s4362_s23 + $0x2f0] sm:$0xff]  ;;  %v781_v57 = vld [vmem:[%s4362_s23 + $0x6f8] sm:$0xff] }
 0x289   : > { %2729 = vmatpush.msrb.mxu1 %v956_v7  ;;  %2770 = vmatpush.msrb.mxu3 %v1452_v5  ;;  %v908_v18 = vld [vmem:[%s4362_s23 + $0xaf0] sm:$0xff]  ;;  %v1037_v59 = vld [vmem:[%s4362_s23 + $0xef8] sm:$0xff] }
 0x28a   : > { %2710 = vmatpush.msra.mxu0 %v684_v6  ;;  %2752 = vmatpush.msra.mxu2 %v1164_v8  ;;  %v1132_v19 = vld [vmem:[%s4362_s23 + $0x11f0] sm:$0xff]  ;;  %v1261_v60 = vld [vmem:[%s4362_s23 + $0x15f8] sm:$0xff] }
 0x28b   : > { %2730 = vmatpush.msrb.mxu1 %v940_v24  ;;  %2771 = vmatpush.msrb.mxu3 %v1436_v10  ;;  %v1404_v42 = vld [vmem:[%s4362_s23 + $0x1a70] sm:$0xff]  ;;  %v1533_v61 = vld [vmem:[%s4362_s23 + $0x1e78] sm:$0xff] }
 0x28c   : > { %2711 = vmatpush.msra.mxu0 %v668_v55  ;;  %2753 = vmatpush.msra.mxu2 %v1148_v14  ;;  %v636_v20 = vld [vmem:[%s4362_s23 + $0x270] sm:$0xff]  ;;  %v765_v62 = vld [vmem:[%s4362_s23 + $0x678] sm:$0xff] }
 0x28d   : > { %2731 = vmatpush.msrb.mxu1 %v924_v63  ;;  %2772 = vmatpush.msrb.mxu3 %v1420_v16  ;;  %v892_v21 = vld [vmem:[%s4362_s23 + $0xa70] sm:$0xff]  ;;  %v1021_v2 = vld [vmem:[%s4362_s23 + $0xe78] sm:$0xff] }
 0x28e   : > { %2712 = vmatpush.msra.mxu0 %v652_v17  ;;  %v1116_v23 = vld [vmem:[%s4362_s23 + $0x1170] sm:$0xff]  ;;  %2754 = vmatpush.msra.mxu2 %v1132_v19  ;;  %v1245_v44 = vld [vmem:[%s4362_s23 + $0x1578] sm:$0xff] }
 0x28f   : > { %2732 = vmatpush.msrb.mxu1 %v908_v18  ;;  %v1388_v25 = vld [vmem:[%s4362_s23 + $0x19f0] sm:$0xff]  ;;  %2773 = vmatpush.msrb.mxu3 %v1404_v42  ;;  %v1517_v3 = vld [vmem:[%s4362_s23 + $0x1df8] sm:$0xff] }
 0x290   : > { %v620_v27 = vld [vmem:[%s4362_s23 + $0x1f0] sm:$0xff]  ;;  %2713 = vmatpush.msra.mxu0 %v636_v20  ;;  %2755 = vmatpush.msra.mxu2 %v1116_v23  ;;  %v749_v7 = vld [vmem:[%s4362_s23 + $0x5f8] sm:$0xff] }
 0x291   : > { %v876_v28 = vld [vmem:[%s4362_s23 + $0x9f0] sm:$0xff]  ;;  %2733 = vmatpush.msrb.mxu1 %v892_v21  ;;  %2774 = vmatpush.msrb.mxu3 %v1388_v25  ;;  %v1005_v9 = vld [vmem:[%s4362_s23 + $0xdf8] sm:$0xff] }
 0x292   : > { %v1100_v30 = vld [vmem:[%s4362_s23 + $0x10f0] sm:$0xff]  ;;  %2714 = vmatpush.msra.mxu0 %v620_v27  ;;  %2698 = vmatmul.f32.vlgmr.msra.gmra.mxu3 %v5433_v31  ;;  %v1229_v5 = vld [vmem:[%s4362_s23 + $0x14f8] sm:$0xff] }
 0x293   : > { %v1372_v33 = vld [vmem:[%s4362_s23 + $0x1970] sm:$0xff]  ;;  %2734 = vmatpush.msrb.mxu1 %v876_v28  ;;  %2756 = vmatpush.msra.mxu2 %v1100_v30  ;;  %v1501_v6 = vld [vmem:[%s4362_s23 + $0x1d78] sm:$0xff] }
 0x294   : > { %v604_v34 = vld [vmem:[%s4362_s23 + $0x170] sm:$0xff]  ;;  %2775 = vmatpush.msrb.mxu3 %v1372_v33  ;;  %2638 = vmatmul.f32.vlgmr.msrb.gmra.mxu0 %v5357_v12  ;;  %v733_v24 = vld [vmem:[%s4362_s23 + $0x578] sm:$0xff] }
 0x295   : > { %v860_v35 = vld [vmem:[%s4362_s23 + $0x970] sm:$0xff]  ;;  %2715 = vmatpush.msra.mxu0 %v604_v34  ;;  %2658 = vmatmul.f32.vlgmr.msra.gmra.mxu1 %v5365_v15  ;;  %v989_v8 = vld [vmem:[%s4362_s23 + $0xd78] sm:$0xff] }
 0x296   : > { %v1084_v36 = vld [vmem:[%s4362_s23 + $0x1070] sm:$0xff]  ;;  %2735 = vmatpush.msrb.mxu1 %v860_v35  ;;  %v1213_v10 = vld [vmem:[%s4362_s23 + $0x1478] sm:$0xff] }
 0x297   : > { %v1356_v37 = vld [vmem:[%s4362_s23 + $0x18f0] sm:$0xff]  ;;  %2757 = vmatpush.msra.mxu2 %v1084_v36  ;;  %v1485_v55 = vld [vmem:[%s4362_s23 + $0x1cf8] sm:$0xff] }
 0x298   : > { %v588_v39 = vld [vmem:[%s4362_s23 + $0xf0] sm:$0xff]  ;;  %2776 = vmatpush.msrb.mxu3 %v1356_v37  ;;  %v717_v63 = vld [vmem:[%s4362_s23 + $0x4f8] sm:$0xff]  ;;  %2758 = vmatmul.f32.vlgmr.msra.gmra.mxu2 %v5341_v22 }
 0x299   : > { %v844_v40 = vld [vmem:[%s4362_s23 + $0x8f0] sm:$0xff]  ;;  %2822 = vmatpush.msrb.mxu2 %v1325_v38  ;;  %2716 = vmatpush.msra.mxu0 %v588_v39  ;;  %v973_v14 = vld [vmem:[%s4362_s23 + $0xcf8] sm:$0xff] }
 0x29a   : > { %v1340_v41 = vld [vmem:[%s4362_s23 + $0x1870] sm:$0xff]  ;;  %2736 = vmatpush.msrb.mxu1 %v844_v40  ;;  %v1197_v16 = vld [vmem:[%s4362_s23 + $0x13f8] sm:$0xff] }
 0x29b   : > { %v572_v47 = vld [vmem:[%s4362_s23 + $0x70] sm:$0xff]  ;;  %2777 = vmatpush.msrb.mxu3 %v1340_v41  ;;  %2823 = vmatpush.msrb.mxu2 %v1309_v43  ;;  %v1469_v17 = vld [vmem:[%s4362_s23 + $0x1c78] sm:$0xff] }
 0x29c   : > { %v828_v48 = vld [vmem:[%s4362_s23 + $0x870] sm:$0xff]  ;;  %2717 = vmatpush.msra.mxu0 %v572_v47  ;;  %v701_v18 = vld [vmem:[%s4362_s23 + $0x478] sm:$0xff]  ;;  %2778 = vmatmul.f32.vlgmr.msrb.gmra.mxu3 %v5433_v31 }
 0x29d   : > { %2842 = vmatpush.msra.mxu3 %v1581_v45  ;;  %2737 = vmatpush.msrb.mxu1 %v828_v48  ;;  %v957_v19 = vld [vmem:[%s4362_s23 + $0xc78] sm:$0xff] }
 0x29e   : > { %2782 = vmatpush.msrb.mxu0 %v813_v49  ;;  %2824 = vmatpush.msrb.mxu2 %v1293_v51  ;;  %v1181_v42 = vld [vmem:[%s4362_s23 + $0x1378] sm:$0xff] }
 0x29f   : > { %2802 = vmatpush.msra.mxu1 %v1069_v50  ;;  %2843 = vmatpush.msra.mxu3 %v1565_v52  ;;  %v1453_v20 = vld [vmem:[%s4362_s23 + $0x1bf8] sm:$0xff] }
 0x2a0   : > { %2783 = vmatpush.msrb.mxu0 %v797_v54  ;;  %2825 = vmatpush.msrb.mxu2 %v1277_v13  ;;  %v685_v21 = vld [vmem:[%s4362_s23 + $0x3f8] sm:$0xff] }
 0x2a1   : > { %2803 = vmatpush.msra.mxu1 %v1053_v56  ;;  %2844 = vmatpush.msra.mxu3 %v1549_v0  ;;  %v941_v23 = vld [vmem:[%s4362_s23 + $0xbf8] sm:$0xff] }
 0x2a2   : > { %2784 = vmatpush.msrb.mxu0 %v781_v57  ;;  %2826 = vmatpush.msrb.mxu2 %v1261_v60  ;;  %v1165_v25 = vld [vmem:[%s4362_s23 + $0x12f8] sm:$0xff]  ;;  %v2319_v60 = vpop.f32.mrf.mxu0 }
 0x2a3   : > { %2804 = vmatpush.msra.mxu1 %v1037_v59  ;;  %2845 = vmatpush.msra.mxu3 %v1533_v61  ;;  %v1437_v27 = vld [vmem:[%s4362_s23 + $0x1b78] sm:$0xff]  ;;  %v2339_v61 = vpop.f32.mrf.mxu1 }
 0x2a4   : > { %2785 = vmatpush.msrb.mxu0 %v765_v62  ;;  %2827 = vmatpush.msrb.mxu2 %v1245_v44  ;;  %v669_v28 = vld [vmem:[%s4362_s23 + $0x378] sm:$0xff]  ;;  %v5575_v62 = vpop.f32.mrf.mxu2 }
 0x2a5   : > { %2805 = vmatpush.msra.mxu1 %v1021_v2  ;;  %2846 = vmatpush.msra.mxu3 %v1517_v3  ;;  %v925_v30 = vld [vmem:[%s4362_s23 + $0xb78] sm:$0xff]  ;;  %v5577_v2 = vpop.f32.mrf.mxu3 }
 0x2a6   : > { %2786 = vmatpush.msrb.mxu0 %v749_v7  ;;  %2828 = vmatpush.msrb.mxu2 %v1229_v5  ;;  %v1149_v33 = vld [vmem:[%s4362_s23 + $0x1278] sm:$0xff] }
 0x2a7   : > { %2806 = vmatpush.msra.mxu1 %v1005_v9  ;;  %2847 = vmatpush.msra.mxu3 %v1501_v6  ;;  %v1421_v34 = vld [vmem:[%s4362_s23 + $0x1af8] sm:$0xff] }
 0x2a8   : > { %2787 = vmatpush.msrb.mxu0 %v733_v24  ;;  %2829 = vmatpush.msrb.mxu2 %v1213_v10  ;;  %v653_v35 = vld [vmem:[%s4362_s23 + $0x2f8] sm:$0xff] }
 0x2a9   : > { %2807 = vmatpush.msra.mxu1 %v989_v8  ;;  %2848 = vmatpush.msra.mxu3 %v1485_v55  ;;  %v909_v36 = vld [vmem:[%s4362_s23 + $0xaf8] sm:$0xff] }
 0x2aa   : > { %2788 = vmatpush.msrb.mxu0 %v717_v63  ;;  %2830 = vmatpush.msrb.mxu2 %v1197_v16  ;;  %v1133_v37 = vld [vmem:[%s4362_s23 + $0x11f8] sm:$0xff] }
 0x2ab   : > { %2808 = vmatpush.msra.mxu1 %v973_v14  ;;  %2849 = vmatpush.msra.mxu3 %v1469_v17  ;;  %v1405_v38 = vld [vmem:[%s4362_s23 + $0x1a78] sm:$0xff]  ;;  %v2419_v44 = vpop.f32.mrf.mxu1 }
 0x2ac   : > { %2789 = vmatpush.msrb.mxu0 %v701_v18  ;;  %2831 = vmatpush.msrb.mxu2 %v1181_v42  ;;  %v637_v39 = vld [vmem:[%s4362_s23 + $0x278] sm:$0xff]  ;;  %v5579_v3 = vpop.f32.mrf.mxu2 }
 0x2ad   : > { %2809 = vmatpush.msra.mxu1 %v957_v19  ;;  %2850 = vmatpush.msra.mxu3 %v1453_v20  ;;  %v893_v40 = vld [vmem:[%s4362_s23 + $0xa78] sm:$0xff]  ;;  %v5581_v7 = vpop.f32.mrf.mxu3 }
 0x2ae   : > { %2790 = vmatpush.msrb.mxu0 %v685_v21  ;;  %2832 = vmatpush.msrb.mxu2 %v1165_v25  ;;  %v1117_v41 = vld [vmem:[%s4362_s23 + $0x1178] sm:$0xff] }
 0x2af   : > { %2810 = vmatpush.msra.mxu1 %v941_v23  ;;  %2851 = vmatpush.msra.mxu3 %v1437_v27  ;;  %v1389_v43 = vld [vmem:[%s4362_s23 + $0x19f8] sm:$0xff] }
 0x2b0   : > { %2791 = vmatpush.msrb.mxu0 %v669_v28  ;;  %2833 = vmatpush.msrb.mxu2 %v1149_v33  ;;  %v621_v45 = vld [vmem:[%s4362_s23 + $0x1f8] sm:$0xff] }
 0x2b1   : > { %2811 = vmatpush.msra.mxu1 %v925_v30  ;;  %2852 = vmatpush.msra.mxu3 %v1421_v34  ;;  %v877_v47 = vld [vmem:[%s4362_s23 + $0x9f8] sm:$0xff] }
 0x2b2   : > { %2792 = vmatpush.msrb.mxu0 %v653_v35  ;;  %2834 = vmatpush.msrb.mxu2 %v1133_v37  ;;  %v1101_v48 = vld [vmem:[%s4362_s23 + $0x10f8] sm:$0xff] }
 0x2b3   : > { %2812 = vmatpush.msra.mxu1 %v909_v36  ;;  %2853 = vmatpush.msra.mxu3 %v1405_v38  ;;  %v1373_v49 = vld [vmem:[%s4362_s23 + $0x1978] sm:$0xff] }
 0x2b4   : > { %2793 = vmatpush.msrb.mxu0 %v637_v39  ;;  %2835 = vmatpush.msrb.mxu2 %v1117_v41  ;;  %v605_v50 = vld [vmem:[%s4362_s23 + $0x178] sm:$0xff] }
 0x2b5   : > { %2813 = vmatpush.msra.mxu1 %v893_v40  ;;  %2854 = vmatpush.msra.mxu3 %v1389_v43  ;;  %v861_v51 = vld [vmem:[%s4362_s23 + $0x978] sm:$0xff]  ;;  %v3012_v40 = vld [vmem:[%s4370_s22 + $0x3c0] sm:$0xff] }
 0x2b6   : > { %2718 = vmatmul.f32.vlgmr.msra.gmra.mxu0 %v5357_v12  ;;  %2738 = vmatmul.f32.vlgmr.msrb.gmra.mxu1 %v5365_v15  ;;  %v1085_v52 = vld [vmem:[%s4362_s23 + $0x1078] sm:$0xff] }
 0x2b7   : > { %2794 = vmatpush.msrb.mxu0 %v621_v45  ;;  %2814 = vmatpush.msra.mxu1 %v877_v47  ;;  %v1357_v54 = vld [vmem:[%s4362_s23 + $0x18f8] sm:$0xff]  ;;  %v4153_v45 = vmov 0   ;;  %v3260_v47 = vunpack.c.l.bf16 %v3012_v40 }
 0x2b8   : > { %2836 = vmatpush.msrb.mxu2 %v1101_v48  ;;  %2855 = vmatpush.msra.mxu3 %v1373_v49  ;;  %v589_v56 = vld [vmem:[%s4362_s23 + $0xf8] sm:$0xff]  ;;  %v3261_v48 = vunpack.c.h.bf16 %v3012_v40  ;;  %v5596_v49 = vld [vmem:[%s4370_s22 + $0x3c8] sm:$0xff] }
 0x2b9   : > { %2795 = vmatpush.msrb.mxu0 %v605_v50  ;;  %v845_v13 = vld [vmem:[%s4362_s23 + $0x8f8] sm:$0xff]  ;;  %2815 = vmatpush.msra.mxu1 %v861_v51  ;;  %v3004_v50 = vld [vmem:[%s4370_s22 + $0x380] sm:$0xff]  ;;  %v5600_v51 = vld [vmem:[%s4370_s22 + $0x388] sm:$0xff] }
 0x2ba   : > { %2837 = vmatpush.msrb.mxu2 %v1085_v52  ;;  %v1341_v0 = vld [vmem:[%s4362_s23 + $0x1878] sm:$0xff]  ;;  %2856 = vmatpush.msra.mxu3 %v1357_v54  ;;  %v3262_v52 = vunpack.c.l.bf16 %v5596_v49  ;;  %v3244_v54 = vunpack.c.l.bf16 %v3004_v50 }
 0x2bb   : > { %2838 = vmatmul.f32.vlgmr.msrb.gmra.mxu2 %v5341_v22  ;;  %v573_v57 = vld [vmem:[%s4362_s23 + $0x78] sm:$0xff]  ;;  %2796 = vmatpush.msrb.mxu0 %v589_v56  ;;  %v2399_v22 = vpop.f32.mrf.mxu0  ;;  %v3245_v56 = vunpack.c.h.bf16 %v3004_v50 }
 0x2bc   : > { %2816 = vmatpush.msra.mxu1 %v845_v13  ;;  %v829_v59 = vld [vmem:[%s4362_s23 + $0x878] sm:$0xff]  ;;  %2857 = vmatpush.msra.mxu3 %v1341_v0  ;;  %s3865_s23 = sshll.u32 %s5918_s13, 3  ;;  %v2420_v38 = vadd.f32 %v2419_v44, %v2399_v22  ;;  %v2340_v13 = vadd.f32 %v2339_v61, %v2319_v60  ;;  %v2996_v22 = vld [vmem:[%s4370_s22 + $0x340] sm:$0xff]  ;;  %v5606_v44 = vld [vmem:[%s4370_s22 + $0x348] sm:$0xff] }
 0x2bd   : > { %2858 = vmatmul.f32.vlgmr.msra.gmra.mxu3 %v5433_v31  ;;  %2797 = vmatpush.msrb.mxu0 %v573_v57  ;;  %s542_s21 = scalar_lea.vmem %s5882_s4, %s3865_s23  ;;  %v3229_v60 = vunpack.c.h.bf16 %v2996_v22  ;;  %v3230_v61 = vunpack.c.l.bf16 %v5606_v44 }
 0x2be   : > { %2817 = vmatpush.msra.mxu1 %v829_v59  ;;  %2798 = vmatmul.f32.vlgmr.msrb.gmra.mxu0 %v5357_v12  ;;  %v2863_v39 = vld [vmem:[%s542_s21] sm:$0xff]  ;;  %v3246_v59 = vunpack.c.l.bf16 %v5600_v51 }
 0x2bf   : > { %2818 = vmatmul.f32.vlgmr.msra.gmra.mxu1 %v5365_v15  ;;  %3940 = vset.pattern.permute.xlu0 %v4153_v45 }
 0x2c0   : > { %2866 = vperm.xlu0 %3940, %v2863_v39   ;;  %3941 = vset.pattern.permute.xlu1 %v4153_v45  ;;  %v5648_v39 = vld [vmem:[%s4370_s22 + $0x1c8] sm:$0xff]  ;;  %v2940_v45 = vld [vmem:[%s4370_s22 + $0x180] sm:$0xff] }
 0x2c1   : > { %3276 = vmatpush.msrb.mxu1 %v3260_v47  ;;  %3296 = vmatpush.msra.mxu2 %v3261_v48  ;;  %v5654_v47 = vld [vmem:[%s4370_s22 + $0x188] sm:$0xff]  ;;  %v3117_v48 = vunpack.c.h.bf16 %v2940_v45 }
 0x2c2   : > { %3316 = vmatpush.msrb.mxu3 %v3262_v52  ;;  %v3118_v50 = vunpack.c.l.bf16 %v5654_v47  ;;  %v2932_v52 = vld [vmem:[%s4370_s22 + $0x140] sm:$0xff] }
 0x2c3   : > { %3277 = vmatpush.msrb.mxu1 %v3244_v54  ;;  %3297 = vmatpush.msra.mxu2 %v3245_v56  ;;  %v5660_v54 = vld [vmem:[%s4370_s22 + $0x148] sm:$0xff]  ;;  %v3101_v56 = vunpack.c.h.bf16 %v2932_v52 }
 0x2c4   : > { %3317 = vmatpush.msrb.mxu3 %v3246_v59 }
 0x2c5   : > { %3298 = vmatpush.msra.mxu2 %v3229_v60  ;;  %v5672_v60 = vld [vmem:[%s4370_s22 + $0xc8] sm:$0xff] }
 0x2c6   : > { %3318 = vmatpush.msrb.mxu3 %v3230_v61 }
 0x2cc   : > { %v2499_v9 = vpop.f32.mrf.mxu1 }
 0x2cd   : > { %v2519_v5 = vpop.f32.mrf.mxu2 }
 0x2d1   : > { %v5583_v12 = vpop.f32.mrf.mxu3 }
 0x2d3   : > { %v2479_v31 = vpop.f32.mrf.mxu0 }
 0x2d4   : > { %v2500_v35 = vadd.f32 %v2499_v9, %v2479_v31  ;;  %v3228_v31 = vunpack.c.l.bf16 %v2996_v22  ;;  %v2440_v9 = vadd.f32 %v5579_v3, %v2420_v38  ;;  %v3599_v3 = vld [vmem:[%s5611_s18 + $0x8] sm:$0xff]  ;;  %v2948_v38 = vld [vmem:[%s4370_s22 + $0x1c0] sm:$0xff] }
 0x2d5   : > { %v2599_v24 = vpop.f32.mrf.mxu2  ;;  %3607 = vperm.xlu0 %3940, %v3599_v3   ;;  %v3132_v40 = vunpack.c.l.bf16 %v2948_v38  ;;  %v2862_v3 = vld [vmem:[%s4378_s26] sm:$0xff] }
 0x2d6   : > { %v2520_v0 = vadd.f32 %v2519_v5, %v2500_v35  ;;  %3278 = vmatpush.msrb.mxu1 %v3228_v31  ;;  %v5642_v35 = vld [vmem:[%s4370_s22 + $0x208] sm:$0xff]  ;;  %v2916_v31 = vld [vmem:[%s4370_s22 + $0xc0] sm:$0xff] }
 0x2d7   : > { %v3069_v61 = vunpack.c.h.bf16 %v2916_v31 }
 0x2eb   : > { %v2559_v15 = vpop.f32.mrf.mxu0 }
 0x2f0   : > { %v2579_v6 = vpop.f32.mrf.mxu1 }
 0x2f1   : > { %v2580_v28 = vadd.f32 %v2579_v6, %v2559_v15  ;;  %v2988_v15 = vld [vmem:[%s4370_s22 + $0x300] sm:$0xff]  ;;  %v5617_v6 = vld [vmem:[%s4370_s22 + $0x308] sm:$0xff] }
 0x2f3   : > { %v2600_v41 = vadd.f32 %v2599_v24, %v2580_v28  ;;  %v3212_v24 = vunpack.c.l.bf16 %v2988_v15 }
 0x2f4   : > { %v2619_v8 = vpop.f32.mrf.mxu3 }
 0x2f5   : > { %v2620_v5 = vadd.f32 %v2619_v8, %v2600_v41  ;;  %v3214_v8 = vunpack.c.l.bf16 %v5617_v6  ;;  %3279 = vmatpush.msrb.mxu1 %v3212_v24  ;;  %v3133_v41 = vunpack.c.h.bf16 %v2948_v38 }
 0x2f7   : > { %v2679_v63 = vpop.f32.mrf.mxu2  ;;  %3319 = vmatpush.msrb.mxu3 %v3214_v8  ;;  %v3263_v8 = vunpack.c.h.bf16 %v5596_v49  ;;  %v5698_v49 = vld [vmem:[%s4370_s22 + $0x3d8] sm:$0xff] }
 0x311   : > { %v2639_v10 = vpop.f32.mrf.mxu0 }
 0x312   : > { %v2659_v55 = vpop.f32.mrf.mxu1 }
 0x313   : > { %v2660_v23 = vadd.f32 %v2659_v55, %v2639_v10  ;;  %v3213_v10 = vunpack.c.h.bf16 %v2988_v15  ;;  %v2360_v55 = vadd.f32 %v5575_v62, %v2340_v13  ;;  %v2460_v62 = vadd.f32 %v5581_v7, %v2440_v9  ;;  %v2964_v7 = vld [vmem:[%s4370_s22 + $0x240] sm:$0xff] }
 0x314   : > { %v3164_v28 = vunpack.c.l.bf16 %v2964_v7  ;;  %v3102_v13 = vunpack.c.l.bf16 %v5660_v54  ;;  %v3070_v9 = vunpack.c.l.bf16 %v5672_v60 }
 0x315   : > { %v2699_v14 = vpop.f32.mrf.mxu3  ;;  %v2680_v36 = vadd.f32 %v2679_v63, %v2660_v23  ;;  %v2540_v63 = vadd.f32 %v5583_v12, %v2520_v0  ;;  %3299 = vmatpush.msra.mxu2 %v3213_v10  ;;  %v2380_v23 = vadd.f32 %v5577_v2, %v2360_v55  ;;  %v2924_v0 = vld [vmem:[%s4370_s22 + $0x100] sm:$0xff] }
 0x316   : > { %v3085_v59 = vunpack.c.h.bf16 %v2924_v0  ;;  %v2900_v55 = vld [vmem:[%s4370_s22 + $0x40] sm:$0xff] }
 0x317   : > { %v2700_v57 = vadd.f32 %v2699_v14, %v2680_v36  ;;  %v2980_v14 = vld [vmem:[%s4370_s22 + $0x2c0] sm:$0xff] }
 0x31b   : > { %v2759_v18 = vpop.f32.mrf.mxu2 }
 0x31f   : > { %v2779_v19 = vpop.f32.mrf.mxu3 }
 0x333   : > { %v2719_v16 = vpop.f32.mrf.mxu0  ;;  %v2739_v17 = vpop.f32.mrf.mxu1 }
 0x334   : > { %v2740_v42 = vadd.f32 %v2739_v17, %v2719_v16  ;;  %v5625_v16 = vld [vmem:[%s4370_s22 + $0x2c8] sm:$0xff]  ;;  %v3196_v17 = vunpack.c.l.bf16 %v2980_v14 }
 0x335   : > { %v3198_v12 = vunpack.c.l.bf16 %v5625_v16  ;;  %v3199_v38 = vunpack.c.h.bf16 %v5625_v16 }
 0x336   : > { %v2760_v30 = vadd.f32 %v2759_v18, %v2740_v42  ;;  %v3197_v18 = vunpack.c.h.bf16 %v2980_v14  ;;  %v5631_v42 = vld [vmem:[%s4370_s22 + $0x288] sm:$0xff]  ;;  %3280 = vmatpush.msrb.mxu1 %v3196_v17  ;;  %v3037_v14 = vunpack.c.h.bf16 %v2900_v55  ;;  %v2892_v17 = vld [vmem:[%s4370_s22] sm:$0xff] }
 0x337   : > { %3320 = vmatpush.msrb.mxu3 %v3198_v12  ;;  %v3021_v12 = vunpack.c.h.bf16 %v2892_v17 }
 0x338   : > { %v2780_v43 = vadd.f32 %v2779_v19, %v2760_v30  ;;  %v2972_v19 = vld [vmem:[%s4370_s22 + $0x280] sm:$0xff]  ;;  %3300 = vmatpush.msra.mxu2 %v3197_v18  ;;  %v3165_v30 = vunpack.c.h.bf16 %v2964_v7  ;;  %v3266_v7 = vunpack.c.l.bf16 %v5698_v49 }
 0x33b   : > { %v2799_v20 = vpop.f32.mrf.mxu0 }
 0x33c   : > { %v2819_v21 = vpop.f32.mrf.mxu1 }
 0x33d   : > { %v2820_v25 = vadd.f32 %v2819_v21, %v2799_v20  ;;  %v3180_v20 = vunpack.c.l.bf16 %v2972_v19  ;;  %v3181_v21 = vunpack.c.h.bf16 %v2972_v19  ;;  %v3014_v19 = vld [vmem:[%s4370_s22 + $0x3d0] sm:$0xff] }
 0x33e   : > { %v2839_v27 = vpop.f32.mrf.mxu2 }
 0x33f   : > { %v2840_v33 = vadd.f32 %v2839_v27, %v2820_v25  ;;  %v3182_v25 = vunpack.c.l.bf16 %v5631_v42  ;;  %v5637_v27 = vld [vmem:[%s4370_s22 + $0x248] sm:$0xff]  ;;  %3281 = vmatpush.msrb.mxu1 %v3180_v20  ;;  %3301 = vmatpush.msra.mxu2 %v3181_v21  ;;  %v3264_v21 = vunpack.c.l.bf16 %v3014_v19 }
 0x340   : > { %v2859_v34 = vpop.f32.mrf.mxu3 }
 0x341   : > { %v2860_v37 = vadd.f32 %v2859_v34, %v2840_v33  ;;  %v3166_v33 = vunpack.c.l.bf16 %v5637_v27  ;;  %v2956_v34 = vld [vmem:[%s4370_s22 + $0x200] sm:$0xff]  ;;  %3321 = vmatpush.msrb.mxu3 %v3182_v25  ;;  %3282 = vmatpush.msrb.mxu1 %v3164_v28  ;;  %v3231_v25 = vunpack.c.h.bf16 %v5606_v44 }
 0x342   : > { %v3148_v2 = vunpack.c.l.bf16 %v2956_v34  ;;  %v3149_v36 = vunpack.c.h.bf16 %v2956_v34  ;;  %3302 = vmatpush.msra.mxu2 %v3165_v30  ;;  %v2998_v30 = vld [vmem:[%s4370_s22 + $0x350] sm:$0xff] }
 0x343   : > { %2869 = vmatpush.msra.mxu0 %v2860_v37  ;;  %v3150_v37 = vunpack.c.l.bf16 %v5642_v35  ;;  %3322 = vmatpush.msrb.mxu3 %v3166_v33  ;;  %v3215_v33 = vunpack.c.h.bf16 %v5617_v6 }
 0x344   : > { %3283 = vmatpush.msrb.mxu1 %v3148_v2  ;;  %3303 = vmatpush.msra.mxu2 %v3149_v36  ;;  %v5710_v2 = vld [vmem:[%s4370_s22 + $0x358] sm:$0xff]  ;;  %v3232_v36 = vunpack.c.l.bf16 %v2998_v30 }
 0x345   : > { %2870 = vmatpush.msra.mxu0 %v2780_v43  ;;  %v3134_v43 = vunpack.c.l.bf16 %v5648_v39  ;;  %3323 = vmatpush.msrb.mxu3 %v3150_v37  ;;  %v2990_v37 = vld [vmem:[%s4370_s22 + $0x310] sm:$0xff]  ;;  %v3234_v6 = vunpack.c.l.bf16 %v5710_v2 }
 0x346   : > { %3284 = vmatpush.msrb.mxu1 %v3132_v40  ;;  %3304 = vmatpush.msra.mxu2 %v3133_v41  ;;  %v3233_v40 = vunpack.c.h.bf16 %v2998_v30  ;;  %v5716_v41 = vld [vmem:[%s4370_s22 + $0x318] sm:$0xff] }
 0x347   : > { %2871 = vmatpush.msra.mxu0 %v2700_v57  ;;  %3324 = vmatpush.msrb.mxu3 %v3134_v43  ;;  %v5666_v57 = vld [vmem:[%s4370_s22 + $0x108] sm:$0xff]  ;;  %v3216_v43 = vunpack.c.l.bf16 %v2990_v37  ;;  %v3218_v16 = vunpack.c.l.bf16 %v5716_v41 }
 0x348   : > { %3305 = vmatpush.msra.mxu2 %v3117_v48  ;;  %v3086_v22 = vunpack.c.l.bf16 %v5666_v57  ;;  %v3217_v48 = vunpack.c.h.bf16 %v2990_v37 }
 0x349   : > { %2872 = vmatpush.msra.mxu0 %v2620_v5  ;;  %3325 = vmatpush.msrb.mxu3 %v3118_v50  ;;  %v2908_v5 = vld [vmem:[%s4370_s22 + $0x80] sm:$0xff]  ;;  %v5722_v50 = vld [vmem:[%s4370_s22 + $0x2d8] sm:$0xff] }
 0x34a   : > { %3306 = vmatpush.msra.mxu2 %v3101_v56  ;;  %v3052_v15 = vunpack.c.l.bf16 %v2908_v5  ;;  %v3053_v24 = vunpack.c.h.bf16 %v2908_v5  ;;  %v3167_v56 = vunpack.c.h.bf16 %v5637_v27  ;;  %v3135_v5 = vunpack.c.h.bf16 %v5648_v39 }
 0x34b   : > { %2873 = vmatpush.msra.mxu0 %v2540_v63  ;;  %3326 = vmatpush.msrb.mxu3 %v3102_v13  ;;  %v3036_v63 = vunpack.c.l.bf16 %v2900_v55  ;;  %v2950_v55 = vld [vmem:[%s4370_s22 + $0x1d0] sm:$0xff]  ;;  %v3103_v39 = vunpack.c.h.bf16 %v5660_v54 }
 0x34c   : > { %3307 = vmatpush.msra.mxu2 %v3085_v59  ;;  %v2966_v59 = vld [vmem:[%s4370_s22 + $0x250] sm:$0xff] }
 0x34d   : > { %2874 = vmatpush.msra.mxu0 %v2460_v62  ;;  %3327 = vmatpush.msrb.mxu3 %v3086_v22  ;;  %v3020_v62 = vunpack.c.l.bf16 %v2892_v17  ;;  %v3151_v22 = vunpack.c.h.bf16 %v5642_v35  ;;  %v3136_v17 = vunpack.c.l.bf16 %v2950_v55 }
 0x34e   : > { %3308 = vmatpush.msra.mxu2 %v3069_v61  ;;  %v3168_v61 = vunpack.c.l.bf16 %v2966_v59 }
 0x34f   : > { %2875 = vmatpush.msra.mxu0 %v2380_v23  ;;  %3328 = vmatpush.msrb.mxu3 %v3070_v9  ;;  %v3006_v23 = vld [vmem:[%s4370_s22 + $0x390] sm:$0xff] }
 0x350   : > { %3309 = vmatpush.msra.mxu2 %v3053_v24  ;;  %v3248_v28 = vunpack.c.l.bf16 %v3006_v23  ;;  %v3249_v34 = vunpack.c.h.bf16 %v3006_v23  ;;  %v2958_v9 = vld [vmem:[%s4370_s22 + $0x210] sm:$0xff]  ;;  %v2959_v24 = vld [vmem:[%s4370_s22 + $0x218] sm:$0xff] }
 0x351   : > { %2876 = vmatpush.msra.mxu0 %v5425_v26  ;;  %v3116_v26 = vunpack.c.l.bf16 %v2940_v45  ;;  %v2982_v45 = vld [vmem:[%s4370_s22 + $0x2d0] sm:$0xff] }
 0x352   : > { %3310 = vmatpush.msra.mxu2 %v3037_v14  ;;  %v3201_v13 = vunpack.c.h.bf16 %v2982_v45  ;;  %v3154_v14 = vunpack.c.l.bf16 %v2959_v24 }
 0x353   : > { %2877 = vmatpush.msra.mxu0 %v5345_v4  ;;  %v3100_v4 = vunpack.c.l.bf16 %v2932_v52  ;;  %3285 = vmatpush.msrb.mxu1 %v3116_v26  ;;  %v3183_v26 = vunpack.c.h.bf16 %v5631_v42  ;;  %v3200_v52 = vunpack.c.l.bf16 %v2982_v45  ;;  %v3202_v42 = vunpack.c.l.bf16 %v5722_v50  ;;  %v2919_v45 = vld [vmem:[%s4370_s22 + $0xd8] sm:$0xff] }
 0x354   : > { %3311 = vmatpush.msra.mxu2 %v3021_v12 }
 0x355   : > { %2878 = vmatpush.msra.mxu0 %v5270_v53  ;;  %v3084_v53 = vunpack.c.l.bf16 %v2924_v0  ;;  %3286 = vmatpush.msrb.mxu1 %v3100_v4  ;;  %v2974_v4 = vld [vmem:[%s4370_s22 + $0x290] sm:$0xff]  ;;  %v5728_v0 = vld [vmem:[%s4370_s22 + $0x298] sm:$0xff] }
 0x356   : > { %v3186_v27 = vunpack.c.l.bf16 %v5728_v0 }
 0x357   : > { %2879 = vmatpush.msra.mxu0 %v5198_v32  ;;  %v3068_v32 = vunpack.c.l.bf16 %v2916_v31  ;;  %3287 = vmatpush.msrb.mxu1 %v3084_v53  ;;  %v3184_v53 = vunpack.c.l.bf16 %v2974_v4  ;;  %v3185_v31 = vunpack.c.h.bf16 %v2974_v4  ;;  %v3075_v4 = vunpack.c.h.bf16 %v2919_v45 }
 0x359   : > { %2880 = vmatpush.msra.mxu0 %v5121_v11  ;;  %v5678_v11 = vld [vmem:[%s4370_s22 + $0x88] sm:$0xff]  ;;  %3288 = vmatpush.msrb.mxu1 %v3068_v32  ;;  %v5734_v32 = vld [vmem:[%s4370_s22 + $0x258] sm:$0xff] }
 0x35a   : > { %v3054_v10 = vunpack.c.l.bf16 %v5678_v11  ;;  %v3170_v35 = vunpack.c.l.bf16 %v5734_v32  ;;  %v3055_v12 = vunpack.c.h.bf16 %v5678_v11  ;;  %v3219_v11 = vunpack.c.h.bf16 %v5716_v41  ;;  %v2918_v41 = vld [vmem:[%s4370_s22 + $0xd0] sm:$0xff] }
 0x35b   : > { %2881 = vmatpush.msra.mxu0 %v5034_v58  ;;  %v5684_v58 = vld [vmem:[%s4370_s22 + $0x48] sm:$0xff]  ;;  %3289 = vmatpush.msrb.mxu1 %v3052_v15  ;;  %v3169_v15 = vunpack.c.h.bf16 %v2966_v59 }
 0x35c   : > { %v3038_v18 = vunpack.c.l.bf16 %v5684_v58  ;;  %3329 = vmatpush.msrb.mxu3 %v3054_v10  ;;  %v3152_v10 = vunpack.c.l.bf16 %v2958_v9  ;;  %v3039_v54 = vunpack.c.h.bf16 %v5684_v58  ;;  %v3203_v58 = vunpack.c.h.bf16 %v5722_v50 }
 0x35d   : > { %2882 = vmatpush.msra.mxu0 %v4963_v46  ;;  %v5691_v46 = vld [vmem:[%s4370_s22 + $0x8] sm:$0xff]  ;;  %3290 = vmatpush.msrb.mxu1 %v3036_v63  ;;  %v3119_v63 = vunpack.c.h.bf16 %v5654_v47  ;;  %v3071_v47 = vunpack.c.h.bf16 %v5672_v60  ;;  %v3235_v60 = vunpack.c.h.bf16 %v5710_v2  ;;  %v2926_v2 = vld [vmem:[%s4370_s22 + $0x110] sm:$0xff]  ;;  %v3072_v50 = vunpack.c.l.bf16 %v2918_v41 }
 0x35e   : > { %v3022_v20 = vunpack.c.l.bf16 %v5691_v46  ;;  %3330 = vmatpush.msrb.mxu3 %v3038_v18  ;;  %v3137_v18 = vunpack.c.h.bf16 %v2950_v55 }
 0x35f   : > { %2883 = vmatpush.msra.mxu0 %v4891_v29  ;;  %v3247_v29 = vunpack.c.h.bf16 %v5600_v51  ;;  %v5704_v51 = vld [vmem:[%s4370_s22 + $0x398] sm:$0xff]  ;;  %3291 = vmatpush.msrb.mxu1 %v3020_v62 }
 0x360   : > { %3331 = vmatpush.msrb.mxu3 %v3022_v20  ;;  %v3250_v44 = vunpack.c.l.bf16 %v5704_v51  ;;  %v3267_v20 = vunpack.c.h.bf16 %v5698_v49  ;;  %v3171_v49 = vunpack.c.h.bf16 %v5734_v32 }
 0x361   : > { %2884 = vmatpush.msra.mxu0 %v4800_v1  ;;  %v3265_v1 = vunpack.c.h.bf16 %v3014_v19  ;;  %3356 = vmatpush.msra.mxu1 %v3264_v21  ;;  %v3023_v19 = vunpack.c.h.bf16 %v5691_v46  ;;  %v3187_v46 = vunpack.c.h.bf16 %v5728_v0  ;;  %v3155_v21 = vunpack.c.h.bf16 %v2959_v24 }
 0x362   : > { %2885 = vmatmul.f32.vlgmr.msra.gmra.mxu0 %v2862_v3  ;;  %3396 = vmatpush.msra.mxu3 %v3266_v7  ;;  %v3153_v3 = vunpack.c.h.bf16 %v2958_v9 }
 0x363   : > { %3336 = vmatpush.msrb.mxu0 %v3263_v8  ;;  %3376 = vmatpush.msrb.mxu2 %v3265_v1  ;;  %v2951_v8 = vld [vmem:[%s4370_s22 + $0x1d8] sm:$0xff] }
 0x364   : > { %3357 = vmatpush.msra.mxu1 %v3248_v28  ;;  %3397 = vmatpush.msra.mxu3 %v3250_v44  ;;  %v3138_v62 = vunpack.c.l.bf16 %v2951_v8  ;;  %v3139_v23 = vunpack.c.h.bf16 %v2951_v8  ;;  %v2943_v1 = vld [vmem:[%s4370_s22 + $0x198] sm:$0xff] }
 0x365   : > { %3337 = vmatpush.msrb.mxu0 %v3247_v29  ;;  %3377 = vmatpush.msrb.mxu2 %v3249_v34  ;;  %v3087_v29 = vunpack.c.h.bf16 %v5666_v57  ;;  %v3251_v57 = vunpack.c.h.bf16 %v5704_v51  ;;  %v2934_v51 = vld [vmem:[%s4370_s22 + $0x150] sm:$0xff]  ;;  %v3122_v30 = vunpack.c.l.bf16 %v2943_v1  ;;  %v2935_v34 = vld [vmem:[%s4370_s22 + $0x158] sm:$0xff] }
 0x366   : > { %3358 = vmatpush.msra.mxu1 %v3232_v36  ;;  %3398 = vmatpush.msra.mxu3 %v3234_v6  ;;  %v2927_v44 = vld [vmem:[%s4370_s22 + $0x118] sm:$0xff]  ;;  %v3104_v36 = vunpack.c.l.bf16 %v2934_v51  ;;  %v3105_v37 = vunpack.c.h.bf16 %v2934_v51  ;;  %v3088_v6 = vunpack.c.l.bf16 %v2926_v2 }
 0x367   : > { %3338 = vmatpush.msrb.mxu0 %v3231_v25  ;;  %3378 = vmatpush.msrb.mxu2 %v3233_v40  ;;  %v2942_v25 = vld [vmem:[%s4370_s22 + $0x190] sm:$0xff]  ;;  %v3107_v40 = vunpack.c.h.bf16 %v2935_v34 }
 0x368   : > { %3359 = vmatpush.msra.mxu1 %v3216_v43  ;;  %3399 = vmatpush.msra.mxu3 %v3218_v16  ;;  %v3120_v7 = vunpack.c.l.bf16 %v2942_v25  ;;  %v3121_v28 = vunpack.c.h.bf16 %v2942_v25  ;;  %v3089_v43 = vunpack.c.h.bf16 %v2926_v2  ;;  %v3073_v16 = vunpack.c.h.bf16 %v2918_v41  ;;  %v2993_v25 = vld [vmem:[%s4370_s22 + $0x328] sm:$0xff] }
 0x369   : > { %3339 = vmatpush.msrb.mxu0 %v3215_v33  ;;  %3379 = vmatpush.msrb.mxu2 %v3217_v48  ;;  %v3123_v33 = vunpack.c.h.bf16 %v2943_v1  ;;  %v3091_v48 = vunpack.c.h.bf16 %v2927_v44  ;;  %v2985_v2 = vld [vmem:[%s4370_s22 + $0x2e8] sm:$0xff] }
 0x36a   : > { %3360 = vmatpush.msra.mxu1 %v3200_v52  ;;  %3400 = vmatpush.msra.mxu3 %v3202_v42  ;;  %v3074_v52 = vunpack.c.l.bf16 %v2919_v45  ;;  %v3207_v41 = vunpack.c.h.bf16 %v2985_v2 }
 0x36b   : > { %3340 = vmatpush.msrb.mxu0 %v3199_v38  ;;  %3380 = vmatpush.msrb.mxu2 %v3201_v13  ;;  %v3106_v38 = vunpack.c.l.bf16 %v2935_v34  ;;  %v2911_v13 = vld [vmem:[%s4370_s22 + $0x98] sm:$0xff]  ;;  %v2984_v34 = vld [vmem:[%s4370_s22 + $0x2e0] sm:$0xff] }
 0x36c   : > { %3361 = vmatpush.msra.mxu1 %v3184_v53  ;;  %3401 = vmatpush.msra.mxu3 %v3186_v27  ;;  %v3058_v53 = vunpack.c.l.bf16 %v2911_v13  ;;  %v3059_v59 = vunpack.c.h.bf16 %v2911_v13 }
 0x36d   : > { %3341 = vmatpush.msrb.mxu0 %v3183_v26  ;;  %3381 = vmatpush.msrb.mxu2 %v3185_v31  ;;  %v3090_v26 = vunpack.c.l.bf16 %v2927_v44  ;;  %v2903_v31 = vld [vmem:[%s4370_s22 + $0x58] sm:$0xff]  ;;  %v2976_v44 = vld [vmem:[%s4370_s22 + $0x2a0] sm:$0xff] }
 0x36e   : > { %3362 = vmatpush.msra.mxu1 %v3168_v61  ;;  %3402 = vmatpush.msra.mxu3 %v3170_v35  ;;  %v3042_v61 = vunpack.c.l.bf16 %v2903_v31  ;;  %v3043_v9 = vunpack.c.h.bf16 %v2903_v31  ;;  %v3189_v45 = vunpack.c.h.bf16 %v2976_v44 }
 0x36f   : > { %3342 = vmatpush.msrb.mxu0 %v3167_v56  ;;  %3382 = vmatpush.msrb.mxu2 %v3169_v15  ;;  %v2910_v56 = vld [vmem:[%s4370_s22 + $0x90] sm:$0xff]  ;;  %v2895_v15 = vld [vmem:[%s4370_s22 + $0x18] sm:$0xff] }
 0x370   : > { %3363 = vmatpush.msra.mxu1 %v3152_v10  ;;  %3403 = vmatpush.msra.mxu3 %v3154_v14  ;;  %v3056_v0 = vunpack.c.l.bf16 %v2910_v56  ;;  %v3057_v42 = vunpack.c.h.bf16 %v2910_v56  ;;  %v3026_v10 = vunpack.c.l.bf16 %v2895_v15  ;;  %v3027_v55 = vunpack.c.h.bf16 %v2895_v15  ;;  %v3016_v14 = vld [vmem:[%s4370_s22 + $0x3e0] sm:$0xff]  ;;  %v2961_v56 = vld [vmem:[%s4370_s22 + $0x228] sm:$0xff] }
 0x371   : > { %3343 = vmatpush.msrb.mxu0 %v3151_v22  ;;  %3383 = vmatpush.msrb.mxu2 %v3153_v3  ;;  %v2902_v22 = vld [vmem:[%s4370_s22 + $0x50] sm:$0xff]  ;;  %v3158_v31 = vunpack.c.l.bf16 %v2961_v56 }
 0x372   : > { %3364 = vmatpush.msra.mxu1 %v3136_v17  ;;  %3404 = vmatpush.msra.mxu3 %v3138_v62  ;;  %v3040_v32 = vunpack.c.l.bf16 %v2902_v22  ;;  %v3041_v27 = vunpack.c.h.bf16 %v2902_v22  ;;  %v3017_v17 = vld [vmem:[%s4370_s22 + $0x3e8] sm:$0xff]  ;;  %v3268_v62 = vunpack.c.l.bf16 %v3016_v14 }
 0x373   : > { %3344 = vmatpush.msrb.mxu0 %v3135_v5  ;;  %3384 = vmatpush.msrb.mxu2 %v3137_v18  ;;  %v2894_v5 = vld [vmem:[%s4370_s22 + $0x10] sm:$0xff]  ;;  %v3008_v18 = vld [vmem:[%s4370_s22 + $0x3a0] sm:$0xff]  ;;  %v2953_v22 = vld [vmem:[%s4370_s22 + $0x1e8] sm:$0xff] }
 0x374   : > { %3365 = vmatpush.msra.mxu1 %v3120_v7  ;;  %3405 = vmatpush.msra.mxu3 %v3122_v30  ;;  %v3024_v24 = vunpack.c.l.bf16 %v2894_v5  ;;  %v3025_v35 = vunpack.c.h.bf16 %v2894_v5  ;;  %v3222_v30 = vunpack.c.l.bf16 %v2993_v25  ;;  %v2945_v5 = vld [vmem:[%s4370_s22 + $0x1a8] sm:$0xff]  ;;  %v3142_v15 = vunpack.c.l.bf16 %v2953_v22 }
 0x375   : > { %3345 = vmatpush.msrb.mxu0 %v3119_v63  ;;  %3385 = vmatpush.msrb.mxu2 %v3121_v28  ;;  %v2867_v63 = vpop.permute.xlu0 %2866 }
 0x376   : > { %3366 = vmatpush.msra.mxu1 %v3104_v36  ;;  %3406 = vmatpush.msra.mxu3 %v3106_v38  ;;  %v3204_v36 = vunpack.c.l.bf16 %v2984_v34  ;;  %v2977_v38 = vld [vmem:[%s4370_s22 + $0x2a8] sm:$0xff] }
 0x377   : > { %3346 = vmatpush.msrb.mxu0 %v3103_v39  ;;  %3386 = vmatpush.msrb.mxu2 %v3105_v37  ;;  %v3205_v37 = vunpack.c.h.bf16 %v2984_v34 }
 0x378   : > { %3367 = vmatpush.msra.mxu1 %v3088_v6  ;;  %3407 = vmatpush.msra.mxu3 %v3090_v26  ;;  %v2968_v6 = vld [vmem:[%s4370_s22 + $0x260] sm:$0xff]  ;;  %v2969_v26 = vld [vmem:[%s4370_s22 + $0x268] sm:$0xff] }
 0x379   : > { %3347 = vmatpush.msrb.mxu0 %v3087_v29  ;;  %3387 = vmatpush.msrb.mxu2 %v3089_v43  ;;  %v3269_v29 = vunpack.c.h.bf16 %v3016_v14  ;;  %v3188_v43 = vunpack.c.l.bf16 %v2976_v44  ;;  %v3174_v13 = vunpack.c.l.bf16 %v2969_v26  ;;  %v2928_v14 = vld [vmem:[%s4370_s22 + $0x120] sm:$0xff]  ;;  %v2897_v44 = vld [vmem:[%s4370_s22 + $0x28] sm:$0xff] }
 0x37a   : > { %3368 = vmatpush.msra.mxu1 %v3072_v50  ;;  %3408 = vmatpush.msra.mxu3 %v3074_v52  ;;  %v3191_v50 = vunpack.c.h.bf16 %v2977_v38  ;;  %v3172_v52 = vunpack.c.l.bf16 %v2968_v6 }
 0x37b   : > { %3348 = vmatpush.msrb.mxu0 %v3071_v47  ;;  %3388 = vmatpush.msrb.mxu2 %v3073_v16  ;;  %v3009_v47 = vld [vmem:[%s4370_s22 + $0x3a8] sm:$0xff]  ;;  %v2960_v16 = vld [vmem:[%s4370_s22 + $0x220] sm:$0xff] }
 0x37c   : > { %3369 = vmatpush.msra.mxu1 %v3056_v0  ;;  %3409 = vmatpush.msra.mxu3 %v3058_v53  ;;  %v3175_v0 = vunpack.c.h.bf16 %v2969_v26  ;;  %v3156_v53 = vunpack.c.l.bf16 %v2960_v16  ;;  %v3010_v26 = vld [vmem:[%s4370_s22 + $0x3b0] sm:$0xff] }
 0x37d   : > { %3349 = vmatpush.msrb.mxu0 %v3055_v12  ;;  %3389 = vmatpush.msrb.mxu2 %v3057_v42  ;;  %v2952_v42 = vld [vmem:[%s4370_s22 + $0x1e0] sm:$0xff] }
 0x37e   : > { %3370 = vmatpush.msra.mxu1 %v3040_v32  ;;  %3410 = vmatpush.msra.mxu3 %v3042_v61  ;;  %v3159_v32 = vunpack.c.h.bf16 %v2961_v56  ;;  %v3140_v61 = vunpack.c.l.bf16 %v2952_v42  ;;  %v3002_v56 = vld [vmem:[%s4370_s22 + $0x370] sm:$0xff] }
 0x37f   : > { %3350 = vmatpush.msrb.mxu0 %v3039_v54  ;;  %3390 = vmatpush.msrb.mxu2 %v3041_v27  ;;  %v3270_v54 = vunpack.c.l.bf16 %v3017_v17  ;;  %v2944_v27 = vld [vmem:[%s4370_s22 + $0x1a0] sm:$0xff] }
 0x380   : > { %3371 = vmatpush.msra.mxu1 %v3024_v24  ;;  %3411 = vmatpush.msra.mxu3 %v3026_v10  ;;  %v3143_v24 = vunpack.c.h.bf16 %v2953_v22  ;;  %v3124_v10 = vunpack.c.l.bf16 %v2944_v27  ;;  %v2994_v22 = vld [vmem:[%s4370_s22 + $0x330] sm:$0xff] }
 0x381   : > { %3351 = vmatpush.msrb.mxu0 %v3023_v19  ;;  %3391 = vmatpush.msrb.mxu2 %v3025_v35  ;;  %v3271_v19 = vunpack.c.h.bf16 %v3017_v17  ;;  %v2936_v35 = vld [vmem:[%s4370_s22 + $0x160] sm:$0xff] }
 0x382   : > { %v3108_v17 = vunpack.c.l.bf16 %v2936_v35 }
 0x383   : > { %3416 = vmatpush.msra.mxu0 %v3267_v20  ;;  %v3000_v20 = vld [vmem:[%s4370_s22 + $0x360] sm:$0xff] }
 0x385   : > { %3417 = vmatpush.msra.mxu0 %v3251_v57  ;;  %v3252_v57 = vunpack.c.l.bf16 %v3008_v18 }
 0x387   : > { %3418 = vmatpush.msra.mxu0 %v3235_v60  ;;  %v3253_v60 = vunpack.c.h.bf16 %v3008_v18  ;;  %v2929_v18 = vld [vmem:[%s4370_s22 + $0x128] sm:$0xff] }
 0x389   : > { %3419 = vmatpush.msra.mxu0 %v3219_v11  ;;  %v3001_v11 = vld [vmem:[%s4370_s22 + $0x368] sm:$0xff] }
 0x38a   : > { %v3238_v1 = vunpack.c.l.bf16 %v3001_v11  ;;  %v3239_v51 = vunpack.c.h.bf16 %v3001_v11  ;;  %v2912_v11 = vld [vmem:[%s4370_s22 + $0xa0] sm:$0xff] }
 0x38b   : > { %3420 = vmatpush.msra.mxu0 %v3203_v58  ;;  %v3254_v58 = vunpack.c.l.bf16 %v3009_v47 }
 0x38d   : > { %3421 = vmatpush.msra.mxu0 %v3187_v46  ;;  %v3255_v46 = vunpack.c.h.bf16 %v3009_v47  ;;  %v2920_v47 = vld [vmem:[%s4370_s22 + $0xe0] sm:$0xff] }
 0x38f   : > { %3422 = vmatpush.msra.mxu0 %v3171_v49  ;;  %v2992_v49 = vld [vmem:[%s4370_s22 + $0x320] sm:$0xff] }
 0x390   : > { %v3220_v7 = vunpack.c.l.bf16 %v2992_v49  ;;  %v3221_v28 = vunpack.c.h.bf16 %v2992_v49  ;;  %v2913_v49 = vld [vmem:[%s4370_s22 + $0xa8] sm:$0xff] }
 0x391   : > { %3423 = vmatpush.msra.mxu0 %v3155_v21  ;;  %v3236_v21 = vunpack.c.l.bf16 %v3000_v20 }
 0x393   : > { %3424 = vmatpush.msra.mxu0 %v3139_v23  ;;  %v3237_v23 = vunpack.c.h.bf16 %v3000_v20  ;;  %v2921_v20 = vld [vmem:[%s4370_s22 + $0xe8] sm:$0xff] }
 0x395   : > { %3425 = vmatpush.msra.mxu0 %v3123_v33  ;;  %v3223_v33 = vunpack.c.h.bf16 %v2993_v25  ;;  %v2904_v25 = vld [vmem:[%s4370_s22 + $0x60] sm:$0xff] }
 0x396   : > { %v3044_v34 = vunpack.c.l.bf16 %v2904_v25 }
 0x397   : > { %3426 = vmatpush.msra.mxu0 %v3107_v40  ;;  %v3206_v40 = vunpack.c.l.bf16 %v2985_v2  ;;  %v3045_v2 = vunpack.c.h.bf16 %v2904_v25  ;;  %v2955_v25 = vld [vmem:[%s4370_s22 + $0x1f8] sm:$0xff] }
 0x399   : > { %3427 = vmatpush.msra.mxu0 %v3091_v48  ;;  %v3190_v48 = vunpack.c.l.bf16 %v2977_v38 }
 0x39b   : > { %3428 = vmatpush.msra.mxu0 %v3075_v4  ;;  %v3173_v4 = vunpack.c.h.bf16 %v2968_v6  ;;  %v3031_v6 = vunpack.c.h.bf16 %v2897_v44 }
 0x39d   : > { %3429 = vmatpush.msra.mxu0 %v3059_v59  ;;  %v3157_v59 = vunpack.c.h.bf16 %v2960_v16  ;;  %v3011_v16 = vld [vmem:[%s4370_s22 + $0x3b8] sm:$0xff] }
 0x39f   : > { %3430 = vmatpush.msra.mxu0 %v3043_v9  ;;  %v3141_v9 = vunpack.c.h.bf16 %v2952_v42  ;;  %v3003_v42 = vld [vmem:[%s4370_s22 + $0x378] sm:$0xff] }
 0x3a1   : > { %3431 = vmatpush.msra.mxu0 %v3027_v55  ;;  %v3125_v55 = vunpack.c.h.bf16 %v2944_v27  ;;  %v2995_v27 = vld [vmem:[%s4370_s22 + $0x338] sm:$0xff] }
 0x3df   : > { %v2886_v3 = vpop.f32.mrf.mxu0 }
 0x3e0   : > { %v2887_v8 = vadd.f32 %v2886_v3, %v2867_v63  ;;  %v2937_v63 = vld [vmem:[%s4370_s22 + $0x168] sm:$0xff]  ;;  %v3126_v3 = vunpack.c.l.bf16 %v2945_v5 }
 0x3e2   : > { %vm2889_vm0 = vcmp.ge.f32.partialorder %v2887_v8, 0.0  ;;  %v2890_v39 = vmul.f32 0.01, %v2887_v8 }
 0x3e4   : > { %v5775_v12 = vsel %vm2889_vm0, %v2887_v8, %v2890_v39  ;;  %v3127_v8 = vunpack.c.h.bf16 %v2945_v5  ;;  %v3109_v39 = vunpack.c.h.bf16 %v2936_v35  ;;  %v2986_v5 = vld [vmem:[%s4370_s22 + $0x2f0] sm:$0xff]  ;;  %v2987_v35 = vld [vmem:[%s4370_s22 + $0x2f8] sm:$0xff] }
 0x3e5   : > { %3292 = vmatmul.f32.vlgmr.msrb.gmra.mxu1 %v5775_v12  ;;  %3312 = vmatmul.f32.vlgmr.msra.gmra.mxu2 %v5775_v12 }
 0x3e6   : > { %3332 = vmatmul.f32.vlgmr.msrb.gmra.mxu3 %v5775_v12  ;;  %3352 = vmatmul.f32.vlgmr.msrb.gmra.mxu0 %v5775_v12 }
 0x3e7   : > { %3436 = vmatpush.msrb.mxu1 %v3268_v62  ;;  %3456 = vmatpush.msra.mxu2 %v3269_v29  ;;  %v3110_v62 = vunpack.c.l.bf16 %v2937_v63  ;;  %v3111_v29 = vunpack.c.h.bf16 %v2937_v63  ;;  %v2978_v63 = vld [vmem:[%s4370_s22 + $0x2b0] sm:$0xff] }
 0x3e8   : > { %3476 = vmatpush.msrb.mxu3 %v3270_v54  ;;  %3496 = vmatpush.msrb.mxu0 %v3271_v19  ;;  %v3092_v54 = vunpack.c.l.bf16 %v2928_v14  ;;  %v3093_v19 = vunpack.c.h.bf16 %v2928_v14  ;;  %v2979_v14 = vld [vmem:[%s4370_s22 + $0x2b8] sm:$0xff] }
 0x3e9   : > { %3437 = vmatpush.msrb.mxu1 %v3252_v57  ;;  %3457 = vmatpush.msra.mxu2 %v3253_v60  ;;  %v3094_v57 = vunpack.c.l.bf16 %v2929_v18  ;;  %v3095_v60 = vunpack.c.h.bf16 %v2929_v18  ;;  %v2970_v18 = vld [vmem:[%s4370_s22 + $0x270] sm:$0xff] }
 0x3ea   : > { %3477 = vmatpush.msrb.mxu3 %v3254_v58  ;;  %3497 = vmatpush.msrb.mxu0 %v3255_v46  ;;  %v3076_v58 = vunpack.c.l.bf16 %v2920_v47  ;;  %v3077_v46 = vunpack.c.h.bf16 %v2920_v47  ;;  %v2971_v47 = vld [vmem:[%s4370_s22 + $0x278] sm:$0xff] }
 0x3eb   : > { %3438 = vmatpush.msrb.mxu1 %v3236_v21  ;;  %3458 = vmatpush.msra.mxu2 %v3237_v23  ;;  %v3078_v21 = vunpack.c.l.bf16 %v2921_v20  ;;  %v3079_v23 = vunpack.c.h.bf16 %v2921_v20  ;;  %v2962_v20 = vld [vmem:[%s4370_s22 + $0x230] sm:$0xff] }
 0x3ec   : > { %3478 = vmatpush.msrb.mxu3 %v3238_v1  ;;  %3498 = vmatpush.msrb.mxu0 %v3239_v51  ;;  %v3060_v1 = vunpack.c.l.bf16 %v2912_v11  ;;  %v3061_v51 = vunpack.c.h.bf16 %v2912_v11  ;;  %v2963_v11 = vld [vmem:[%s4370_s22 + $0x238] sm:$0xff] }
 0x3ed   : > { %3439 = vmatpush.msrb.mxu1 %v3220_v7  ;;  %3459 = vmatpush.msra.mxu2 %v3221_v28  ;;  %v2905_v7 = vld [vmem:[%s4370_s22 + $0x68] sm:$0xff]  ;;  %v3062_v28 = vunpack.c.l.bf16 %v2913_v49 }
 0x3ee   : > { %3479 = vmatpush.msrb.mxu3 %v3222_v30  ;;  %3499 = vmatpush.msrb.mxu0 %v3223_v33  ;;  %v3063_v30 = vunpack.c.h.bf16 %v2913_v49  ;;  %v2896_v33 = vld [vmem:[%s4370_s22 + $0x20] sm:$0xff]  ;;  %v2954_v49 = vld [vmem:[%s4370_s22 + $0x1f0] sm:$0xff] }
 0x3ef   : > { %3372 = vmatmul.f32.vlgmr.msra.gmra.mxu1 %v5775_v12  ;;  %3392 = vmatmul.f32.vlgmr.msrb.gmra.mxu2 %v5775_v12  ;;  %v3028_v38 = vunpack.c.l.bf16 %v2896_v33 }
 0x3f0   : > { %3412 = vmatmul.f32.vlgmr.msra.gmra.mxu3 %v5775_v12  ;;  %3432 = vmatmul.f32.vlgmr.msra.gmra.mxu0 %v5775_v12 }
 0x3f1   : > { %3440 = vmatpush.msrb.mxu1 %v3204_v36  ;;  %3460 = vmatpush.msra.mxu2 %v3205_v37  ;;  %v3046_v36 = vunpack.c.l.bf16 %v2905_v7  ;;  %v3047_v37 = vunpack.c.h.bf16 %v2905_v7  ;;  %v2946_v7 = vld [vmem:[%s4370_s22 + $0x1b0] sm:$0xff] }
 0x3f2   : > { %3480 = vmatpush.msrb.mxu3 %v3206_v40  ;;  %3500 = vmatpush.msrb.mxu0 %v3207_v41  ;;  %v3029_v40 = vunpack.c.h.bf16 %v2896_v33  ;;  %v3030_v41 = vunpack.c.l.bf16 %v2897_v44  ;;  %v2947_v33 = vld [vmem:[%s4370_s22 + $0x1b8] sm:$0xff]  ;;  %v2938_v44 = vld [vmem:[%s4370_s22 + $0x170] sm:$0xff] }
 0x3f3   : > { %3441 = vmatpush.msrb.mxu1 %v3188_v43  ;;  %3461 = vmatpush.msra.mxu2 %v3189_v45  ;;  %v3018_v43 = vld [vmem:[%s4370_s22 + $0x3f0] sm:$0xff]  ;;  %v3019_v45 = vld [vmem:[%s4370_s22 + $0x3f8] sm:$0xff] }
 0x3f4   : > { %3481 = vmatpush.msrb.mxu3 %v3190_v48  ;;  %3501 = vmatpush.msrb.mxu0 %v3191_v50  ;;  %v3272_v48 = vunpack.c.l.bf16 %v3018_v43  ;;  %v3273_v50 = vunpack.c.h.bf16 %v3018_v43  ;;  %v3112_v43 = vunpack.c.l.bf16 %v2938_v44 }
 0x3f5   : > { %3442 = vmatpush.msrb.mxu1 %v3172_v52  ;;  %3462 = vmatpush.msra.mxu2 %v3173_v4  ;;  %v3274_v52 = vunpack.c.l.bf16 %v3019_v45  ;;  %v3275_v4 = vunpack.c.h.bf16 %v3019_v45  ;;  %v3113_v45 = vunpack.c.h.bf16 %v2938_v44 }
 0x3f6   : > { %3482 = vmatpush.msrb.mxu3 %v3174_v13  ;;  %3502 = vmatpush.msrb.mxu0 %v3175_v0  ;;  %v3256_v13 = vunpack.c.l.bf16 %v3010_v26  ;;  %v3257_v0 = vunpack.c.h.bf16 %v3010_v26  ;;  %v2931_v26 = vld [vmem:[%s4370_s22 + $0x138] sm:$0xff] }
 0x3f7   : > { %3443 = vmatpush.msrb.mxu1 %v3156_v53  ;;  %3463 = vmatpush.msra.mxu2 %v3157_v59  ;;  %v3258_v53 = vunpack.c.l.bf16 %v3011_v16  ;;  %v3259_v59 = vunpack.c.h.bf16 %v3011_v16  ;;  %v2922_v16 = vld [vmem:[%s4370_s22 + $0xf0] sm:$0xff] }
 0x3f8   : > { %3483 = vmatpush.msrb.mxu3 %v3158_v31  ;;  %3503 = vmatpush.msrb.mxu0 %v3159_v32  ;;  %v3240_v31 = vunpack.c.l.bf16 %v3002_v56  ;;  %v3241_v32 = vunpack.c.h.bf16 %v3002_v56  ;;  %v2923_v56 = vld [vmem:[%s4370_s22 + $0xf8] sm:$0xff] }
 0x3f9   : > { %3444 = vmatpush.msrb.mxu1 %v3140_v61  ;;  %3464 = vmatpush.msra.mxu2 %v3141_v9  ;;  %v3242_v61 = vunpack.c.l.bf16 %v3003_v42  ;;  %v3243_v9 = vunpack.c.h.bf16 %v3003_v42  ;;  %v2914_v42 = vld [vmem:[%s4370_s22 + $0xb0] sm:$0xff] }
 0x3fa   : > { %3484 = vmatpush.msrb.mxu3 %v3142_v15  ;;  %3504 = vmatpush.msrb.mxu0 %v3143_v24  ;;  %v3224_v15 = vunpack.c.l.bf16 %v2994_v22  ;;  %v3225_v24 = vunpack.c.h.bf16 %v2994_v22  ;;  %v2915_v22 = vld [vmem:[%s4370_s22 + $0xb8] sm:$0xff] }
 0x3fb   : > { %3445 = vmatpush.msrb.mxu1 %v3124_v10  ;;  %3465 = vmatpush.msra.mxu2 %v3125_v55  ;;  %v3226_v10 = vunpack.c.l.bf16 %v2995_v27  ;;  %v3227_v55 = vunpack.c.h.bf16 %v2995_v27  ;;  %v2906_v27 = vld [vmem:[%s4370_s22 + $0x70] sm:$0xff] }
 0x3fc   : > { %3485 = vmatpush.msrb.mxu3 %v3126_v3  ;;  %3505 = vmatpush.msrb.mxu0 %v3127_v8  ;;  %v3208_v3 = vunpack.c.l.bf16 %v2986_v5  ;;  %v3209_v8 = vunpack.c.h.bf16 %v2986_v5  ;;  %v2907_v5 = vld [vmem:[%s4370_s22 + $0x78] sm:$0xff] }
 0x3fd   : > { %3446 = vmatpush.msrb.mxu1 %v3108_v17  ;;  %3466 = vmatpush.msra.mxu2 %v3109_v39  ;;  %v3210_v17 = vunpack.c.l.bf16 %v2987_v35  ;;  %v3211_v39 = vunpack.c.h.bf16 %v2987_v35  ;;  %v2898_v35 = vld [vmem:[%s4370_s22 + $0x30] sm:$0xff] }
 0x3fe   : > { %3486 = vmatpush.msrb.mxu3 %v3110_v62  ;;  %3506 = vmatpush.msrb.mxu0 %v3111_v29  ;;  %v3192_v62 = vunpack.c.l.bf16 %v2978_v63  ;;  %v3193_v29 = vunpack.c.h.bf16 %v2978_v63  ;;  %v2899_v63 = vld [vmem:[%s4370_s22 + $0x38] sm:$0xff] }
 0x3ff   : > { %3447 = vmatpush.msrb.mxu1 %v3092_v54  ;;  %3467 = vmatpush.msra.mxu2 %v3093_v19  ;;  %v3194_v54 = vunpack.c.l.bf16 %v2979_v14  ;;  %v3195_v19 = vunpack.c.h.bf16 %v2979_v14  ;;  %v3032_v14 = vunpack.c.l.bf16 %v2898_v35 }
 0x400   : > { %3487 = vmatpush.msrb.mxu3 %v3094_v57  ;;  %3507 = vmatpush.msrb.mxu0 %v3095_v60  ;;  %v3176_v57 = vunpack.c.l.bf16 %v2970_v18  ;;  %v3177_v60 = vunpack.c.h.bf16 %v2970_v18  ;;  %v3035_v18 = vunpack.c.h.bf16 %v2899_v63 }
 0x401   : > { %3448 = vmatpush.msrb.mxu1 %v3076_v58  ;;  %3468 = vmatpush.msra.mxu2 %v3077_v46  ;;  %v3178_v58 = vunpack.c.l.bf16 %v2971_v47  ;;  %v3179_v46 = vunpack.c.h.bf16 %v2971_v47 }
 0x402   : > { %3488 = vmatpush.msrb.mxu3 %v3078_v21  ;;  %3508 = vmatpush.msrb.mxu0 %v3079_v23  ;;  %v3160_v21 = vunpack.c.l.bf16 %v2962_v20  ;;  %v3161_v23 = vunpack.c.h.bf16 %v2962_v20 }
 0x403   : > { %3449 = vmatpush.msrb.mxu1 %v3060_v1  ;;  %3469 = vmatpush.msra.mxu2 %v3061_v51  ;;  %v3162_v1 = vunpack.c.l.bf16 %v2963_v11  ;;  %v3163_v51 = vunpack.c.h.bf16 %v2963_v11 }
 0x404   : > { %3489 = vmatpush.msrb.mxu3 %v3062_v28  ;;  %3509 = vmatpush.msrb.mxu0 %v3063_v30  ;;  %v3144_v28 = vunpack.c.l.bf16 %v2954_v49  ;;  %v3145_v30 = vunpack.c.h.bf16 %v2954_v49 }
 0x405   : > { %3450 = vmatpush.msrb.mxu1 %v3044_v34  ;;  %3470 = vmatpush.msra.mxu2 %v3045_v2  ;;  %v3146_v34 = vunpack.c.l.bf16 %v2955_v25  ;;  %v3147_v2 = vunpack.c.h.bf16 %v2955_v25 }
 0x406   : > { %3490 = vmatpush.msrb.mxu3 %v3046_v36  ;;  %3510 = vmatpush.msrb.mxu0 %v3047_v37  ;;  %v3128_v36 = vunpack.c.l.bf16 %v2946_v7  ;;  %v3129_v37 = vunpack.c.h.bf16 %v2946_v7  ;;  %v3596_v7 = vld [vmem:[%s4380_s1] sm:$0xff] }
 0x407   : > { %3451 = vmatpush.msrb.mxu1 %v3028_v38  ;;  %3471 = vmatpush.msra.mxu2 %v3029_v40  ;;  %v2939_v38 = vld [vmem:[%s4370_s22 + $0x178] sm:$0xff]  ;;  %v3130_v40 = vunpack.c.l.bf16 %v2947_v33 }
 0x408   : > { %3491 = vmatpush.msrb.mxu3 %v3030_v41  ;;  %3511 = vmatpush.msrb.mxu0 %v3031_v6  ;;  %v3131_v41 = vunpack.c.h.bf16 %v2947_v33  ;;  %v2930_v6 = vld [vmem:[%s4370_s22 + $0x130] sm:$0xff] }
 0x409   : > { %3452 = vmatmul.f32.vlgmr.msrb.gmra.mxu1 %v5775_v12  ;;  %3472 = vmatmul.f32.vlgmr.msra.gmra.mxu2 %v5775_v12 }
 0x40a   : > { %3492 = vmatmul.f32.vlgmr.msrb.gmra.mxu3 %v5775_v12  ;;  %3512 = vmatmul.f32.vlgmr.msrb.gmra.mxu0 %v5775_v12 }
 0x40b   : > { %3516 = vmatpush.msra.mxu1 %v3272_v48  ;;  %3536 = vmatpush.msrb.mxu2 %v3273_v50  ;;  %v3114_v48 = vunpack.c.l.bf16 %v2939_v38  ;;  %v3115_v50 = vunpack.c.h.bf16 %v2939_v38 }
 0x40c   : > { %3556 = vmatpush.msra.mxu3 %v3274_v52  ;;  %3576 = vmatpush.msra.mxu0 %v3275_v4  ;;  %v3096_v52 = vunpack.c.l.bf16 %v2930_v6  ;;  %v3097_v4 = vunpack.c.h.bf16 %v2930_v6 }
 0x40d   : > { %3517 = vmatpush.msra.mxu1 %v3256_v13  ;;  %3537 = vmatpush.msrb.mxu2 %v3257_v0  ;;  %v3098_v13 = vunpack.c.l.bf16 %v2931_v26  ;;  %v3099_v0 = vunpack.c.h.bf16 %v2931_v26 }
 0x40e   : > { %3557 = vmatpush.msra.mxu3 %v3258_v53  ;;  %3577 = vmatpush.msra.mxu0 %v3259_v59  ;;  %v3080_v53 = vunpack.c.l.bf16 %v2922_v16  ;;  %v3081_v59 = vunpack.c.h.bf16 %v2922_v16 }
 0x40f   : > { %3518 = vmatpush.msra.mxu1 %v3240_v31  ;;  %3538 = vmatpush.msrb.mxu2 %v3241_v32  ;;  %v3082_v31 = vunpack.c.l.bf16 %v2923_v56  ;;  %v3083_v32 = vunpack.c.h.bf16 %v2923_v56 }
 0x410   : > { %3558 = vmatpush.msra.mxu3 %v3242_v61  ;;  %3578 = vmatpush.msra.mxu0 %v3243_v9  ;;  %v3064_v61 = vunpack.c.l.bf16 %v2914_v42  ;;  %v3065_v9 = vunpack.c.h.bf16 %v2914_v42 }
 0x411   : > { %3519 = vmatpush.msra.mxu1 %v3224_v15  ;;  %3539 = vmatpush.msrb.mxu2 %v3225_v24  ;;  %v3066_v15 = vunpack.c.l.bf16 %v2915_v22  ;;  %v3067_v24 = vunpack.c.h.bf16 %v2915_v22 }
 0x412   : > { %3559 = vmatpush.msra.mxu3 %v3226_v10  ;;  %3579 = vmatpush.msra.mxu0 %v3227_v55  ;;  %v3048_v10 = vunpack.c.l.bf16 %v2906_v27  ;;  %v3049_v55 = vunpack.c.h.bf16 %v2906_v27 }
 0x413   : > { %3520 = vmatpush.msra.mxu1 %v3208_v3  ;;  %3540 = vmatpush.msrb.mxu2 %v3209_v8  ;;  %v3050_v3 = vunpack.c.l.bf16 %v2907_v5  ;;  %v3051_v8 = vunpack.c.h.bf16 %v2907_v5 }
 0x414   : > { %3560 = vmatpush.msra.mxu3 %v3210_v17  ;;  %3580 = vmatpush.msra.mxu0 %v3211_v39  ;;  %v3033_v17 = vunpack.c.h.bf16 %v2898_v35  ;;  %v3034_v39 = vunpack.c.l.bf16 %v2899_v63 }
 0x415   : > { %3521 = vmatpush.msra.mxu1 %v3192_v62  ;;  %3541 = vmatpush.msrb.mxu2 %v3193_v29 }
 0x416   : > { %3561 = vmatpush.msra.mxu3 %v3194_v54  ;;  %3581 = vmatpush.msra.mxu0 %v3195_v19 }
 0x417   : > { %3522 = vmatpush.msra.mxu1 %v3176_v57  ;;  %3542 = vmatpush.msrb.mxu2 %v3177_v60 }
 0x418   : > { %3562 = vmatpush.msra.mxu3 %v3178_v58  ;;  %3582 = vmatpush.msra.mxu0 %v3179_v46 }
 0x419   : > { %3523 = vmatpush.msra.mxu1 %v3160_v21  ;;  %3543 = vmatpush.msrb.mxu2 %v3161_v23 }
 0x41a   : > { %3563 = vmatpush.msra.mxu3 %v3162_v1  ;;  %3583 = vmatpush.msra.mxu0 %v3163_v51  ;;  %v3598_v1 = vld [vmem:[%s5611_s18] sm:$0xff] }
 0x41b   : > { %3524 = vmatpush.msra.mxu1 %v3144_v28  ;;  %3544 = vmatpush.msrb.mxu2 %v3145_v30  ;;  %v3640_v51 = vld [vmem:[%s550_s28] sm:$0x1]  ;;  %v3597_v28 = vld [vmem:[%s4380_s1 + $0x8] sm:$0xff] }
 0x41c   : > { %3564 = vmatpush.msra.mxu3 %v3146_v34  ;;  %3584 = vmatpush.msra.mxu0 %v3147_v2  ;;  %v3608_v2 = vpop.permute.xlu0 %3607 }
 0x41d   : > { %3525 = vmatpush.msra.mxu1 %v3128_v36  ;;  %3545 = vmatpush.msrb.mxu2 %v3129_v37 }
 0x41e   : > { %3565 = vmatpush.msra.mxu3 %v3130_v40  ;;  %3585 = vmatpush.msra.mxu0 %v3131_v41  ;;  %v3639_v41 = vld [vmem:[%s474_s2] sm:$0x1] }
 0x41f   : > { %3526 = vmatpush.msra.mxu1 %v3112_v43  ;;  %3546 = vmatpush.msrb.mxu2 %v3113_v45 }
 0x420   : > { %3566 = vmatpush.msra.mxu3 %v3114_v48  ;;  %3586 = vmatpush.msra.mxu0 %v3115_v50 }
 0x421   : > { %3527 = vmatpush.msra.mxu1 %v3096_v52  ;;  %3547 = vmatpush.msrb.mxu2 %v3097_v4 }
 0x422   : > { %3567 = vmatpush.msra.mxu3 %v3098_v13  ;;  %3587 = vmatpush.msra.mxu0 %v3099_v0 }
 0x423   : > { %3528 = vmatpush.msra.mxu1 %v3080_v53  ;;  %3548 = vmatpush.msrb.mxu2 %v3081_v59 }
 0x424   : > { %3568 = vmatpush.msra.mxu3 %v3082_v31  ;;  %3588 = vmatpush.msra.mxu0 %v3083_v32 }
 0x425   : > { %3529 = vmatpush.msra.mxu1 %v3064_v61  ;;  %3549 = vmatpush.msrb.mxu2 %v3065_v9 }
 0x426   : > { %3569 = vmatpush.msra.mxu3 %v3066_v15  ;;  %3589 = vmatpush.msra.mxu0 %v3067_v24 }
 0x427   : > { %3530 = vmatpush.msra.mxu1 %v3048_v10  ;;  %3550 = vmatpush.msrb.mxu2 %v3049_v55 }
 0x428   : > { %3570 = vmatpush.msra.mxu3 %v3050_v3  ;;  %3590 = vmatpush.msra.mxu0 %v3051_v8 }
 0x429   : > { %3531 = vmatpush.msra.mxu1 %v3032_v14  ;;  %3551 = vmatpush.msrb.mxu2 %v3033_v17 }
 0x42a   : > { %3571 = vmatpush.msra.mxu3 %v3034_v39  ;;  %3591 = vmatpush.msra.mxu0 %v3035_v18 }
 0x42b   : > { %3532 = vmatmul.f32.vlgmr.msra.gmra.mxu1 %v5775_v12  ;;  %3552 = vmatmul.f32.vlgmr.msrb.gmra.mxu2 %v5775_v12 }
 0x42c   : > { %3572 = vmatmul.f32.vlgmr.msra.gmra.mxu3 %v5775_v12  ;;  %3592 = vmatmul.f32.vlgmr.msra.gmra.mxu0 %v5775_v12 }
 0x42d   : > { %3602 = vperm.xlu1 %3941, %v3598_v1  }
 0x435   : > { %3643 = vperm.xlu1 %3941, %v3640_v51  }
 0x462   : > { %v3293_v54 = vpop.f32.mrf.mxu1 }
 0x463   : > { %v3353_v62 = vpop.f32.mrf.mxu0 }
 0x468   : > { %v3313_v47 = vpop.f32.mrf.mxu2 }
 0x469   : > { %v3333_v29 = vpop.f32.mrf.mxu3 }
 0x46c   : > { %v3373_v11 = vpop.f32.mrf.mxu1 }
 0x46d   : > { %v3433_v19 = vpop.f32.mrf.mxu0 }
 0x472   : > { %v3393_v57 = vpop.f32.mrf.mxu2 }
 0x473   : > { %v3413_v20 = vpop.f32.mrf.mxu3 }
 0x486   : > { %v3453_v21 = vpop.f32.mrf.mxu1 }
 0x487   : > { %v3513_v60 = vpop.f32.mrf.mxu0 }
 0x48c   : > { %v3473_v46 = vpop.f32.mrf.mxu2 }
 0x48d   : > { %v3493_v58 = vpop.f32.mrf.mxu3 }
 0x49f   : > { %v3603_v33 = vpop.permute.xlu1 %3602 }
 0x4a7   : > { %v3644_v43 = vpop.permute.xlu1 %3643 }
 0x4a8   : > { %v3533_v12 = vpop.f32.mrf.mxu1  ;;  %v3646_v45 = vperm.slane %v3644_v43, 0 }
 0x4a9   : > { %v3593_v49 = vpop.f32.mrf.mxu0 }
 0x4aa   : > { %3610 = vmatpush.msrb.mxu1 %v3593_v49 }
 0x4ae   : > { %v3553_v25 = vpop.f32.mrf.mxu2 }
 0x4af   : > { %v3573_v23 = vpop.f32.mrf.mxu3 }
 0x4b0   : > { %3611 = vmatpush.msrb.mxu1 %v3573_v23 }
 0x4b2   : > { %3612 = vmatpush.msrb.mxu1 %v3553_v25 }
 0x4b4   : > { %3613 = vmatpush.msrb.mxu1 %v3533_v12 }
 0x4b6   : > { %3614 = vmatpush.msrb.mxu1 %v3513_v60 }
 0x4b8   : > { %3615 = vmatpush.msrb.mxu1 %v3493_v58 }
 0x4ba   : > { %3616 = vmatpush.msrb.mxu1 %v3473_v46 }
 0x4bc   : > { %3617 = vmatpush.msrb.mxu1 %v3453_v21 }
 0x4be   : > { %3618 = vmatpush.msrb.mxu1 %v3433_v19 }
 0x4c0   : > { %3619 = vmatpush.msrb.mxu1 %v3413_v20 }
 0x4c2   : > { %3620 = vmatpush.msrb.mxu1 %v3393_v57 }
 0x4c4   : > { %3621 = vmatpush.msrb.mxu1 %v3373_v11 }
 0x4c6   : > { %3622 = vmatpush.msrb.mxu1 %v3353_v62 }
 0x4c8   : > { %3623 = vmatpush.msrb.mxu1 %v3333_v29 }
 0x4ca   : > { %3624 = vmatpush.msrb.mxu1 %v3313_v47 }
 0x4cc   : > { %3625 = vmatpush.msrb.mxu1 %v3293_v54 }
 0x4cd   : > { %3626 = vmatmul.f32.vlgmr.msrb.gmra.mxu1 %v3596_v7 }
 0x4d5   : > { %3629 = vmatmul.f32.gmra.mxu1 %v3597_v28 }
 0x54a   : > { %v3627_v30 = vpop.f32.mrf.mxu1 }
 0x54b   : > { %v3628_v34 = vadd.f32 %v3627_v30, %v3603_v33 }
 0x54d   : > { %v3635_v37 = vmul.f32 0.01, %v3628_v34  ;;  %vm3633_vm2 = vcmp.ge.f32.partialorder %v3628_v34, 0.0 }
 0x54f   : > { %v3637_v6 = vsel %vm3633_vm2, %v3628_v34, %v3635_v37 }
 0x552   : > { %v3630_v44 = vpop.f32.mrf.mxu1 }
 0x553   : > { %v3631_v36 = vadd.f32 %v3630_v44, %v3608_v2 }
 0x555   : > { %vm3634_vm1 = vcmp.ge.f32.partialorder %v3631_v36, 0.0  ;;  %v3636_v38 = vmul.f32 0.01, %v3631_v36 }
 0x557   : > { %v3638_v40 = vsel %vm3634_vm1, %v3631_v36, %v3636_v38 }
 0x558   : > { %3665 = vmatpush.msra.mxu2 %v3638_v40 }
 0x55a   : > { %3666 = vmatpush.msra.mxu2 %v3637_v6 }
 0x55b   : > { %3868 = vmatmul.msk.f32.vlgmr.msra.gmra.mxu2 %vm3647_vm3, %v3639_v41 }
 0x5de   : > { %v3668_v26 = vpop.f32.mrf.mxu2 }
 0x5df   : > { %v3669_v48 = vadd.f32 %v3668_v26, %v3646_v45 }
 0x5e1   : > { %3671 = vst [vmem:[%s553_s24] sm:$0x1] %v3669_v48 }
 0x5e2 PF: > { %s5912_s12 = sld [smem:[#allocation14_spill]]  ;;  %s5915_s30 = smov %s4138_s10 }
 0x5e3   : > { %s5913_s27 = sld [smem:[#allocation13_spill]] }
 0x5e4   : > { %s5914_s11 = sld [smem:[#allocation15_spill]] }
 0x5e8   : > { %p25_p8 = scmp.ge.s32.totalorder %s5912_s12, 4  }
 0x5e9   : > { %s5916_s10 = smov %s5913_s27 }
 0x5ea   :  { %27 = sbr.rel (!%p25_p8) target bundleno = 13 (0xd), region = 153 }
 0x5ef   :  { %3689 = vsyncpa [#allocation3], 1 }
 0x5f0   :  { %3691 = vsyncpa [#allocation3 + $0x1], 1 }
 0x5f1   :  { %3692 = vsyncpa [#allocation5], 1 }
 0x5f2   :  { %3694 = vsyncpa [#allocation5 + $0x1], 1 }
 0x5f3   :  { %3695 = vsyncpa [#allocation8], 1 }
 0x5f4   :  { %3697 = vsyncpa [#allocation8 + $0x1], 1 }

</bundles_post_ra>
